<compile_context>
chip_gen: v6e
topology: v6e:2x2x1
jax: 0.10.0
libtpu: 0.0.40
codegen_flags: <defaults>
</compile_context>

<pallas_src>
import jax
import jax.numpy as jnp
from jax.experimental import pallas as pl
from jax.experimental.pallas import tpu as pltpu


def vae_kernel(x_ref, eps_ref,
               w1_ref, b1_ref, w2_ref, b2_ref,
               w3_ref, b3_ref,               # fused fc31|fc32
               w4_ref, b4_ref, w5_ref, b5_ref, w6_ref, b6_ref,
               recon_ref, stats_ref):
    f32 = jnp.float32
    bf16 = jnp.bfloat16

    x = x_ref[...]                                          # (TB, 784) bf16

    # ---- encoder (bf16 MXU matmuls, f32 accumulation & elementwise) ----
    h = jnp.dot(x, w1_ref[...], preferred_element_type=f32) + b1_ref[...]
    h = jnp.maximum(h, 0.0)                                 # relu(fc1)
    h = jnp.dot(h.astype(bf16), w2_ref[...],
                preferred_element_type=f32) + b2_ref[...]
    h = jnp.maximum(h, 0.0)                                 # relu(fc2)

    # fused fc31|fc32 -> (TB, 2*z_dim)
    stats = jnp.dot(h.astype(bf16), w3_ref[...],
                    preferred_element_type=f32) + b3_ref[...]
    z_dim = eps_ref.shape[1]
    mu = stats[:, :z_dim]
    log_var = stats[:, z_dim:]

    # ---- sampling (reparameterization), all f32 on VPU/EUP ----
    std = jnp.exp(0.5 * log_var)
    z = eps_ref[...] * std + mu                             # (TB, z_dim) f32

    # ---- decoder ----
    # fc4 has a tiny contraction dim (K = z_dim = 2): VPU outer product instead
    # of an almost-pure-fill/drain MXU pass.
    if z_dim <= 16:
        w4 = w4_ref[...].astype(f32)                        # (z_dim, h_dim2)
        h = z[:, 0:1] * w4[0:1, :]
        for k in range(1, z_dim):
            h = h + z[:, k:k + 1] * w4[k:k + 1, :]
        h = h + b4_ref[...]
    else:
        h = jnp.dot(z.astype(bf16), w4_ref[...],
                    preferred_element_type=f32) + b4_ref[...]
    h = jnp.maximum(h, 0.0)                                 # relu(fc4)

    h = jnp.dot(h.astype(bf16), w5_ref[...],
                preferred_element_type=f32) + b5_ref[...]
    h = jnp.maximum(h, 0.0)                                 # relu(fc5)

    # fc6 is zero-padded to a lane-dense (TB, 896) output; padded columns are
    # sigmoid(0) = 0.5 and are sliced off in the wrapper.
    logits = jnp.dot(h.astype(bf16), w6_ref[...],
                     preferred_element_type=f32) + b6_ref[...]
    recon_ref[...] = jax.nn.sigmoid(logits)                 # sigmoid(fc6)

    stats_ref[...] = stats                                  # fused mu|log_var


def make_params(key, x_dim, h_dim1, h_dim2, z_dim):
    """Deterministic synthetic parameters (shapes match the PyTorch module).

    Weights are stored (in_features, out_features) so the kernel computes
    y = x @ W + b (transpose of PyTorch storage; identical semantics).
    """
    dims = [
        ("fc1", x_dim, h_dim1),
        ("fc2", h_dim1, h_dim2),
        ("fc31", h_dim2, z_dim),
        ("fc32", h_dim2, z_dim),
        ("fc4", z_dim, h_dim2),
        ("fc5", h_dim2, h_dim1),
        ("fc6", h_dim1, x_dim),
    ]
    params = {}
    for name, fan_in, fan_out in dims:
        key, kw, kb = jax.random.split(key, 3)
        bound = 1.0 / jnp.sqrt(fan_in)
        params[name + "_w"] = jax.random.uniform(
            kw, (fan_in, fan_out), jnp.float32, -bound, bound)
        params[name + "_b"] = jax.random.uniform(
            kb, (1, fan_out), jnp.float32, -bound, bound)
    return params


def _pick_batch_tile(B, target):
    """Largest multiple of 16 that divides B and is <= target (bf16 packing)."""
    assert B % 16 == 0, "batch must be a multiple of 16"
    tb = min(target, B)
    tb -= tb % 16
    while B % tb != 0:
        tb -= 16
    return tb


def vae_forward(x, eps, params, *, tb=256):
    """x: any shape that flattens to (-1, 784); eps: (B, z_dim) noise."""
    x_dim = params["fc1_w"].shape[0]
    h_dim1 = params["fc1_w"].shape[1]
    h_dim2 = params["fc2_w"].shape[1]
    z_dim = params["fc31_w"].shape[1]

    x2d = x.reshape(-1, x_dim)                               # matches x.view(-1, 784)
    B = x2d.shape[0]
    tb = _pick_batch_tile(B, tb)
    n_steps = B // tb

    bf16 = jnp.bfloat16
    f32 = jnp.float32

    # bf16 weights (halved HBM weight traffic) + bf16 input activations.
    x_bf = x2d.astype(bf16)
    eps_f = eps.astype(f32)
    w1 = params["fc1_w"].astype(bf16); b1 = params["fc1_b"]
    w2 = params["fc2_w"].astype(bf16); b2 = params["fc2_b"]
    w3 = jnp.concatenate([params["fc31_w"], params["fc32_w"]], axis=1).astype(bf16)
    b3 = jnp.concatenate([params["fc31_b"], params["fc32_b"]], axis=1)
    w4 = params["fc4_w"].astype(bf16); b4 = params["fc4_b"]
    w5 = params["fc5_w"].astype(bf16); b5 = params["fc5_b"]

    # Pad fc6's output dim to a multiple of 128 for an unmasked, lane-dense store.
    x_dim_pad = ((x_dim + 127) // 128) * 128
    w6 = jnp.zeros((h_dim1, x_dim_pad), bf16).at[:, :x_dim].set(
        params["fc6_w"].astype(bf16))
    b6 = jnp.zeros((1, x_dim_pad), f32).at[:, :x_dim].set(params["fc6_b"])

    args = (x_bf, eps_f, w1, b1, w2, b2, w3, b3, w4, b4, w5, b5, w6, b6)

    def batch_spec(n):
        # activation tiles stream over the batch grid
        return pl.BlockSpec((tb, n), lambda i: (i, 0))

    def const_spec(shape):
        # constant block index -> weights stay VMEM-resident across grid steps
        return pl.BlockSpec(shape, lambda i: (0, 0))

    in_specs = [batch_spec(x_dim), batch_spec(z_dim)]
    for w, b in ((w1, b1), (w2, b2), (w3, b3), (w4, b4), (w5, b5), (w6, b6)):
        in_specs.append(const_spec(w.shape))
        in_specs.append(const_spec(b.shape))

    out_shape = (
        jax.ShapeDtypeStruct((B, x_dim_pad), f32),           # padded reconstruction
        jax.ShapeDtypeStruct((B, 2 * z_dim), f32),           # fused mu|log_var
    )
    out_specs = (batch_spec(x_dim_pad), batch_spec(2 * z_dim))

    # Megacore batch sharding only pays when each core gets big, full tiles.
    parallel_ok = n_steps >= 2 and tb >= 128
    dim_sem = ("parallel",) if parallel_ok else ("arbitrary",)

    # VMEM limit sized from the actual (double-buffered) footprint.
    weight_bytes = sum(int(a.size) * a.dtype.itemsize
                       for a in (w1, b1, w2, b2, w3, b3, w4, b4, w5, b5, w6, b6))
    tile_in_bytes = tb * x_dim * 2 + tb * z_dim * 4
    tile_out_bytes = tb * x_dim_pad * 4 + tb * 2 * z_dim * 4
    dbl_buffered = 2 * (weight_bytes + tile_in_bytes + tile_out_bytes)
    transients = 4 * tb * (h_dim1 + h_dim2) * 4              # in-kernel f32 activations
    vmem_limit = min(max(dbl_buffered + transients + (8 << 20), 16 << 20), 48 << 20)

    # Advisory cost hint for the XLA scheduler.
    flops = 2 * B * (x_dim * h_dim1 + h_dim1 * h_dim2 + h_dim2 * (2 * z_dim)
                     + z_dim * h_dim2 + h_dim2 * h_dim1 + h_dim1 * x_dim_pad)
    transcendentals = B * (z_dim + x_dim_pad)                # exp + sigmoid
    act_bytes = (int(x_bf.size) * 2 + int(eps_f.size) * 4
                 + B * (x_dim_pad + 2 * z_dim) * 4)
    cost = pl.CostEstimate(flops=int(flops),
                           transcendentals=int(transcendentals),
                           bytes_accessed=int(weight_bytes + act_bytes))

    recon_pad, stats = pl.pallas_call(
        vae_kernel,
        out_shape=out_shape,
        grid=(n_steps,),
        in_specs=in_specs,
        out_specs=out_specs,
        compiler_params=pltpu.CompilerParams(
            dimension_semantics=dim_sem,
            vmem_limit_bytes=int(vmem_limit)),
        cost_estimate=cost,
    )(*args)

    recon = recon_pad[:, :x_dim]
    mu = stats[:, :z_dim]
    log_var = stats[:, z_dim:]
    return recon, mu, log_var


if __name__ == "__main__":
    # MNIST VAE sizes implied by the module: 784 -> 512 -> 256 -> 2
    x_dim, h_dim1, h_dim2, z_dim = 784, 512, 256, 2
    batch = 16            # small demo: one 16-row tile, grid=(1,)

    key = jax.random.PRNGKey(0)
    key, kx, keps, kp = jax.random.split(key, 4)

    # input in NCHW (like MNIST images), flattened inside the wrapper
    x = jax.random.uniform(kx, (batch, 1, 28, 28), jnp.float32)
    eps = jax.random.normal(keps, (batch, z_dim), jnp.float32)   # randn_like(std)
    params = make_params(kp, x_dim, h_dim1, h_dim2, z_dim)

    recon, mu, log_var = vae_forward(x, eps, params)
    jax.block_until_ready((recon, mu, log_var))

    # sanity check against a pure-JAX reference using the same bf16 precision choices
    def ref(x, eps, p):
        bf16 = jnp.bfloat16
        f32 = jnp.float32

        def lin(h, w, b):
            return jnp.dot(h.astype(bf16), w.astype(bf16),
                           preferred_element_type=f32) + b

        x2d = x.reshape(-1, 784)
        h = jax.nn.relu(lin(x2d, p["fc1_w"], p["fc1_b"]))
        h = jax.nn.relu(lin(h, p["fc2_w"], p["fc2_b"]))
        mu = lin(h, p["fc31_w"], p["fc31_b"])
        lv = lin(h, p["fc32_w"], p["fc32_b"])
        z = eps * jnp.exp(0.5 * lv) + mu
        # fc4 in the kernel: f32 z times (bf16->f32) weights
        h = jax.nn.relu(jnp.dot(z, p["fc4_w"].astype(bf16).astype(f32)) + p["fc4_b"])
        h = jax.nn.relu(lin(h, p["fc5_w"], p["fc5_b"]))
        return jax.nn.sigmoid(lin(h, p["fc6_w"], p["fc6_b"])), mu, lv

    r_ref, mu_ref_v, lv_ref = ref(x, eps, params)
    assert recon.shape == (batch, x_dim) and mu.shape == (batch, z_dim)
    assert jnp.allclose(recon, r_ref, atol=2e-2, rtol=2e-2), "recon mismatch"
    assert jnp.allclose(mu, mu_ref_v, atol=2e-2, rtol=2e-2), "mu mismatch"
    assert jnp.allclose(log_var, lv_ref, atol=2e-2, rtol=2e-2), "log_var mismatch"

    print("KERNEL_OK")
</pallas_src>

<mosaic_0001>
module attributes {stable_mosaic.version = 11 : i64} {
  func.func @vae_kernel(%arg0: i32, %arg1: memref<16x784xbf16, #tpu.memory_space<vmem>>, %arg2: memref<16x2xf32, #tpu.memory_space<vmem>>, %arg3: memref<784x512xbf16, #tpu.memory_space<vmem>>, %arg4: memref<1x512xf32, #tpu.memory_space<vmem>>, %arg5: memref<512x256xbf16, #tpu.memory_space<vmem>>, %arg6: memref<1x256xf32, #tpu.memory_space<vmem>>, %arg7: memref<256x4xbf16, #tpu.memory_space<vmem>>, %arg8: memref<1x4xf32, #tpu.memory_space<vmem>>, %arg9: memref<2x256xbf16, #tpu.memory_space<vmem>>, %arg10: memref<1x256xf32, #tpu.memory_space<vmem>>, %arg11: memref<256x512xbf16, #tpu.memory_space<vmem>>, %arg12: memref<1x512xf32, #tpu.memory_space<vmem>>, %arg13: memref<512x896xbf16, #tpu.memory_space<vmem>>, %arg14: memref<1x896xf32, #tpu.memory_space<vmem>>, %arg15: memref<16x896xf32, #tpu.memory_space<vmem>>, %arg16: memref<16x4xf32, #tpu.memory_space<vmem>>) attributes {dimension_semantics = [#tpu.dimension_semantics<arbitrary>], iteration_bounds = array<i64: 1>, scalar_prefetch = 0 : i64, scratch_operands = 0 : i64, tpu.core_type = #tpu.core_type<tc>, window_params = [{transform_indices = @transform_0, window_bounds = array<i64: 16, 784>}, {transform_indices = @transform_1, window_bounds = array<i64: 16, 2>}, {pipeline_mode = #tpu.pipeline_mode<synchronous>, transform_indices = @transform_2, window_bounds = array<i64: 784, 512>}, {pipeline_mode = #tpu.pipeline_mode<synchronous>, transform_indices = @transform_3, window_bounds = array<i64: 1, 512>}, {pipeline_mode = #tpu.pipeline_mode<synchronous>, transform_indices = @transform_4, window_bounds = array<i64: 512, 256>}, {pipeline_mode = #tpu.pipeline_mode<synchronous>, transform_indices = @transform_5, window_bounds = array<i64: 1, 256>}, {pipeline_mode = #tpu.pipeline_mode<synchronous>, transform_indices = @transform_6, window_bounds = array<i64: 256, 4>}, {pipeline_mode = #tpu.pipeline_mode<synchronous>, transform_indices = @transform_7, window_bounds = array<i64: 1, 4>}, {pipeline_mode = #tpu.pipeline_mode<synchronous>, transform_indices = @transform_8, window_bounds = array<i64: 2, 256>}, {pipeline_mode = #tpu.pipeline_mode<synchronous>, transform_indices = @transform_9, window_bounds = array<i64: 1, 256>}, {pipeline_mode = #tpu.pipeline_mode<synchronous>, transform_indices = @transform_10, window_bounds = array<i64: 256, 512>}, {pipeline_mode = #tpu.pipeline_mode<synchronous>, transform_indices = @transform_11, window_bounds = array<i64: 1, 512>}, {pipeline_mode = #tpu.pipeline_mode<synchronous>, transform_indices = @transform_12, window_bounds = array<i64: 512, 896>}, {pipeline_mode = #tpu.pipeline_mode<synchronous>, transform_indices = @transform_13, window_bounds = array<i64: 1, 896>}, {transform_indices = @transform_14, window_bounds = array<i64: 16, 896>}, {transform_indices = @transform_15, window_bounds = array<i64: 16, 4>}]} {
    %c0 = arith.constant 0 : index
    %c0_0 = arith.constant 0 : index
    %0 = vector.load %arg1[%c0, %c0_0] : memref<16x784xbf16, #tpu.memory_space<vmem>>, vector<16x784xbf16>
    %c0_1 = arith.constant 0 : index
    %c0_2 = arith.constant 0 : index
    %1 = vector.load %arg3[%c0_1, %c0_2] : memref<784x512xbf16, #tpu.memory_space<vmem>>, vector<784x512xbf16>
    %cst = arith.constant dense<0.000000e+00> : vector<16x512xf32>
    %2 = tpu.matmul %0, %1, %cst {dimension_numbers = #tpu.dot_dimension_numbers<[1], [0], [0], [1], [0, 0, 1, 1], [], []>} : vector<16x784xbf16>, vector<784x512xbf16>, vector<16x512xf32> -> vector<16x512xf32>
    %c0_3 = arith.constant 0 : index
    %c0_4 = arith.constant 0 : index
    %3 = vector.load %arg4[%c0_3, %c0_4] : memref<1x512xf32, #tpu.memory_space<vmem>>, vector<1x512xf32>
    %4 = vector.broadcast %3 : vector<1x512xf32> to vector<16x512xf32>
    %5 = arith.addf %2, %4 : vector<16x512xf32>
    %cst_5 = arith.constant 0.000000e+00 : f32
    %6 = vector.broadcast %cst_5 : f32 to vector<16x512xf32>
    %7 = arith.maximumf %5, %6 : vector<16x512xf32>
    %8 = arith.truncf %7 : vector<16x512xf32> to vector<16x512xbf16>
    %c0_6 = arith.constant 0 : index
    %c0_7 = arith.constant 0 : index
    %9 = vector.load %arg5[%c0_6, %c0_7] : memref<512x256xbf16, #tpu.memory_space<vmem>>, vector<512x256xbf16>
    %cst_8 = arith.constant dense<0.000000e+00> : vector<16x256xf32>
    %10 = tpu.matmul %8, %9, %cst_8 {dimension_numbers = #tpu.dot_dimension_numbers<[1], [0], [0], [1], [0, 0, 1, 1], [], []>} : vector<16x512xbf16>, vector<512x256xbf16>, vector<16x256xf32> -> vector<16x256xf32>
    %c0_9 = arith.constant 0 : index
    %c0_10 = arith.constant 0 : index
    %11 = vector.load %arg6[%c0_9, %c0_10] : memref<1x256xf32, #tpu.memory_space<vmem>>, vector<1x256xf32>
    %12 = vector.broadcast %11 : vector<1x256xf32> to vector<16x256xf32>
    %13 = arith.addf %10, %12 : vector<16x256xf32>
    %cst_11 = arith.constant 0.000000e+00 : f32
    %14 = vector.broadcast %cst_11 : f32 to vector<16x256xf32>
    %15 = arith.maximumf %13, %14 : vector<16x256xf32>
    %16 = arith.truncf %15 : vector<16x256xf32> to vector<16x256xbf16>
    %c0_12 = arith.constant 0 : index
    %c0_13 = arith.constant 0 : index
    %17 = vector.load %arg7[%c0_12, %c0_13] : memref<256x4xbf16, #tpu.memory_space<vmem>>, vector<256x4xbf16>
    %cst_14 = arith.constant dense<0.000000e+00> : vector<16x4xf32>
    %18 = tpu.matmul %16, %17, %cst_14 {dimension_numbers = #tpu.dot_dimension_numbers<[1], [0], [0], [1], [0, 0, 1, 1], [], []>} : vector<16x256xbf16>, vector<256x4xbf16>, vector<16x4xf32> -> vector<16x4xf32>
    %c0_15 = arith.constant 0 : index
    %c0_16 = arith.constant 0 : index
    %19 = vector.load %arg8[%c0_15, %c0_16] : memref<1x4xf32, #tpu.memory_space<vmem>>, vector<1x4xf32>
    %20 = vector.broadcast %19 : vector<1x4xf32> to vector<16x4xf32>
    %21 = arith.addf %18, %20 : vector<16x4xf32>
    %22 = vector.extract_strided_slice %21 {offsets = [0, 0], sizes = [16, 2], strides = [1, 1]} : vector<16x4xf32> to vector<16x2xf32>
    %23 = vector.extract_strided_slice %21 {offsets = [0, 2], sizes = [16, 2], strides = [1, 1]} : vector<16x4xf32> to vector<16x2xf32>
    %cst_17 = arith.constant 5.000000e-01 : f32
    %24 = vector.broadcast %cst_17 : f32 to vector<16x2xf32>
    %25 = arith.mulf %24, %23 : vector<16x2xf32>
    %26 = math.exp %25 : vector<16x2xf32>
    %c0_18 = arith.constant 0 : index
    %c0_19 = arith.constant 0 : index
    %27 = vector.load %arg2[%c0_18, %c0_19] : memref<16x2xf32, #tpu.memory_space<vmem>>, vector<16x2xf32>
    %28 = arith.mulf %27, %26 : vector<16x2xf32>
    %29 = arith.addf %28, %22 : vector<16x2xf32>
    %c0_20 = arith.constant 0 : index
    %c0_21 = arith.constant 0 : index
    %30 = vector.load %arg9[%c0_20, %c0_21] : memref<2x256xbf16, #tpu.memory_space<vmem>>, vector<2x256xbf16>
    %31 = arith.extf %30 : vector<2x256xbf16> to vector<2x256xf32>
    %32 = vector.extract_strided_slice %29 {offsets = [0, 0], sizes = [16, 1], strides = [1, 1]} : vector<16x2xf32> to vector<16x1xf32>
    %33 = vector.extract_strided_slice %31 {offsets = [0, 0], sizes = [1, 256], strides = [1, 1]} : vector<2x256xf32> to vector<1x256xf32>
    %34 = vector.broadcast %32 : vector<16x1xf32> to vector<16x256xf32>
    %35 = vector.broadcast %33 : vector<1x256xf32> to vector<16x256xf32>
    %36 = arith.mulf %34, %35 : vector<16x256xf32>
    %37 = vector.extract_strided_slice %29 {offsets = [0, 1], sizes = [16, 1], strides = [1, 1]} : vector<16x2xf32> to vector<16x1xf32>
    %38 = vector.extract_strided_slice %31 {offsets = [1, 0], sizes = [1, 256], strides = [1, 1]} : vector<2x256xf32> to vector<1x256xf32>
    %39 = vector.broadcast %37 : vector<16x1xf32> to vector<16x256xf32>
    %40 = vector.broadcast %38 : vector<1x256xf32> to vector<16x256xf32>
    %41 = arith.mulf %39, %40 : vector<16x256xf32>
    %42 = arith.addf %36, %41 : vector<16x256xf32>
    %c0_22 = arith.constant 0 : index
    %c0_23 = arith.constant 0 : index
    %43 = vector.load %arg10[%c0_22, %c0_23] : memref<1x256xf32, #tpu.memory_space<vmem>>, vector<1x256xf32>
    %44 = vector.broadcast %43 : vector<1x256xf32> to vector<16x256xf32>
    %45 = arith.addf %42, %44 : vector<16x256xf32>
    %cst_24 = arith.constant 0.000000e+00 : f32
    %46 = vector.broadcast %cst_24 : f32 to vector<16x256xf32>
    %47 = arith.maximumf %45, %46 : vector<16x256xf32>
    %48 = arith.truncf %47 : vector<16x256xf32> to vector<16x256xbf16>
    %c0_25 = arith.constant 0 : index
    %c0_26 = arith.constant 0 : index
    %49 = vector.load %arg11[%c0_25, %c0_26] : memref<256x512xbf16, #tpu.memory_space<vmem>>, vector<256x512xbf16>
    %cst_27 = arith.constant dense<0.000000e+00> : vector<16x512xf32>
    %50 = tpu.matmul %48, %49, %cst_27 {dimension_numbers = #tpu.dot_dimension_numbers<[1], [0], [0], [1], [0, 0, 1, 1], [], []>} : vector<16x256xbf16>, vector<256x512xbf16>, vector<16x512xf32> -> vector<16x512xf32>
    %c0_28 = arith.constant 0 : index
    %c0_29 = arith.constant 0 : index
    %51 = vector.load %arg12[%c0_28, %c0_29] : memref<1x512xf32, #tpu.memory_space<vmem>>, vector<1x512xf32>
    %52 = vector.broadcast %51 : vector<1x512xf32> to vector<16x512xf32>
    %53 = arith.addf %50, %52 : vector<16x512xf32>
    %cst_30 = arith.constant 0.000000e+00 : f32
    %54 = vector.broadcast %cst_30 : f32 to vector<16x512xf32>
    %55 = arith.maximumf %53, %54 : vector<16x512xf32>
    %56 = arith.truncf %55 : vector<16x512xf32> to vector<16x512xbf16>
    %c0_31 = arith.constant 0 : index
    %c0_32 = arith.constant 0 : index
    %57 = vector.load %arg13[%c0_31, %c0_32] : memref<512x896xbf16, #tpu.memory_space<vmem>>, vector<512x896xbf16>
    %cst_33 = arith.constant dense<0.000000e+00> : vector<16x896xf32>
    %58 = tpu.matmul %56, %57, %cst_33 {dimension_numbers = #tpu.dot_dimension_numbers<[1], [0], [0], [1], [0, 0, 1, 1], [], []>} : vector<16x512xbf16>, vector<512x896xbf16>, vector<16x896xf32> -> vector<16x896xf32>
    %c0_34 = arith.constant 0 : index
    %c0_35 = arith.constant 0 : index
    %59 = vector.load %arg14[%c0_34, %c0_35] : memref<1x896xf32, #tpu.memory_space<vmem>>, vector<1x896xf32>
    %60 = vector.broadcast %59 : vector<1x896xf32> to vector<16x896xf32>
    %61 = arith.addf %58, %60 : vector<16x896xf32>
    %62 = arith.negf %61 : vector<16x896xf32>
    %63 = math.exp %62 : vector<16x896xf32>
    %cst_36 = arith.constant 1.000000e+00 : f32
    %64 = vector.broadcast %cst_36 : f32 to vector<16x896xf32>
    %65 = arith.addf %64, %63 : vector<16x896xf32>
    %66 = arith.divf %64, %65 : vector<16x896xf32>
    %c0_37 = arith.constant 0 : index
    %c0_38 = arith.constant 0 : index
    %67 = vector.load %arg15[%c0_37, %c0_38] : memref<16x896xf32, #tpu.memory_space<vmem>>, vector<16x896xf32>
    tpu.vector_store %arg15[%c0_37, %c0_38], %66 {strides = array<i32>} : memref<16x896xf32, #tpu.memory_space<vmem>>, vector<16x896xf32>,
    %c0_39 = arith.constant 0 : index
    %c0_40 = arith.constant 0 : index
    %68 = vector.load %arg16[%c0_39, %c0_40] : memref<16x4xf32, #tpu.memory_space<vmem>>, vector<16x4xf32>
    tpu.vector_store %arg16[%c0_39, %c0_40], %21 {strides = array<i32>} : memref<16x4xf32, #tpu.memory_space<vmem>>, vector<16x4xf32>,
    return
  }
  func.func @transform_0(%arg0: i32) -> (i32, i32) {
    %c0_i32 = arith.constant 0 : i32
    %c0_i32_0 = arith.constant 0 : i32
    return %arg0, %c0_i32 : i32, i32
  }
  func.func @transform_1(%arg0: i32) -> (i32, i32) {
    %c0_i32 = arith.constant 0 : i32
    %c0_i32_0 = arith.constant 0 : i32
    return %arg0, %c0_i32 : i32, i32
  }
  func.func @transform_2(%arg0: i32) -> (i32, i32) {
    %c0_i32 = arith.constant 0 : i32
    %c0_i32_0 = arith.constant 0 : i32
    %c0_i32_1 = arith.constant 0 : i32
    return %c0_i32, %c0_i32_0 : i32, i32
  }
  func.func @transform_3(%arg0: i32) -> (i32, i32) {
    %c0_i32 = arith.constant 0 : i32
    %c0_i32_0 = arith.constant 0 : i32
    %c0_i32_1 = arith.constant 0 : i32
    return %c0_i32, %c0_i32_0 : i32, i32
  }
  func.func @transform_4(%arg0: i32) -> (i32, i32) {
    %c0_i32 = arith.constant 0 : i32
    %c0_i32_0 = arith.constant 0 : i32
    %c0_i32_1 = arith.constant 0 : i32
    return %c0_i32, %c0_i32_0 : i32, i32
  }
  func.func @transform_5(%arg0: i32) -> (i32, i32) {
    %c0_i32 = arith.constant 0 : i32
    %c0_i32_0 = arith.constant 0 : i32
    %c0_i32_1 = arith.constant 0 : i32
    return %c0_i32, %c0_i32_0 : i32, i32
  }
  func.func @transform_6(%arg0: i32) -> (i32, i32) {
    %c0_i32 = arith.constant 0 : i32
    %c0_i32_0 = arith.constant 0 : i32
    %c0_i32_1 = arith.constant 0 : i32
    return %c0_i32, %c0_i32_0 : i32, i32
  }
  func.func @transform_7(%arg0: i32) -> (i32, i32) {
    %c0_i32 = arith.constant 0 : i32
    %c0_i32_0 = arith.constant 0 : i32
    %c0_i32_1 = arith.constant 0 : i32
    return %c0_i32, %c0_i32_0 : i32, i32
  }
  func.func @transform_8(%arg0: i32) -> (i32, i32) {
    %c0_i32 = arith.constant 0 : i32
    %c0_i32_0 = arith.constant 0 : i32
    %c0_i32_1 = arith.constant 0 : i32
    return %c0_i32, %c0_i32_0 : i32, i32
  }
  func.func @transform_9(%arg0: i32) -> (i32, i32) {
    %c0_i32 = arith.constant 0 : i32
    %c0_i32_0 = arith.constant 0 : i32
    %c0_i32_1 = arith.constant 0 : i32
    return %c0_i32, %c0_i32_0 : i32, i32
  }
  func.func @transform_10(%arg0: i32) -> (i32, i32) {
    %c0_i32 = arith.constant 0 : i32
    %c0_i32_0 = arith.constant 0 : i32
    %c0_i32_1 = arith.constant 0 : i32
    return %c0_i32, %c0_i32_0 : i32, i32
  }
  func.func @transform_11(%arg0: i32) -> (i32, i32) {
    %c0_i32 = arith.constant 0 : i32
    %c0_i32_0 = arith.constant 0 : i32
    %c0_i32_1 = arith.constant 0 : i32
    return %c0_i32, %c0_i32_0 : i32, i32
  }
  func.func @transform_12(%arg0: i32) -> (i32, i32) {
    %c0_i32 = arith.constant 0 : i32
    %c0_i32_0 = arith.constant 0 : i32
    %c0_i32_1 = arith.constant 0 : i32
    return %c0_i32, %c0_i32_0 : i32, i32
  }
  func.func @transform_13(%arg0: i32) -> (i32, i32) {
    %c0_i32 = arith.constant 0 : i32
    %c0_i32_0 = arith.constant 0 : i32
    %c0_i32_1 = arith.constant 0 : i32
    return %c0_i32, %c0_i32_0 : i32, i32
  }
  func.func @transform_14(%arg0: i32) -> (i32, i32) {
    %c0_i32 = arith.constant 0 : i32
    %c0_i32_0 = arith.constant 0 : i32
    return %arg0, %c0_i32 : i32, i32
  }
  func.func @transform_15(%arg0: i32) -> (i32, i32) {
    %c0_i32 = arith.constant 0 : i32
    %c0_i32_0 = arith.constant 0 : i32
    return %arg0, %c0_i32 : i32, i32
  }
}

</mosaic_0001>

<bundles_post_ra>
// kernel: tpu_custom_call.1
= control target key start
LH: loop header
LB: loop body
LE: loop exit
PB: predicated region body
PF: predicated region fallthrough
CT: control target
= control target key end

     0   :  { %21 = vsyncpa [#allocation3], 0  ;;  %s6900_s0 = inlined_call_operand.vmem [shape: bf16[16,784], index: 0, kind: input, shape index: {}]   ;;  %s6901_s1 = inlined_call_operand.vmem [shape: f32[16,2], index: 1, kind: input, shape index: {}]   ;;  %s6902_s2 = inlined_call_operand.hbm [shape: bf16[784,512], index: 2, kind: input, shape index: {}]   ;;  %s6903_s3 = inlined_call_operand.vmem [shape: f32[1,512], index: 3, kind: input, shape index: {}]   ;;  %s6904_s4 = inlined_call_operand.hbm [shape: bf16[512,256], index: 4, kind: input, shape index: {}]   ;;  %s6905_s5 = inlined_call_operand.vmem [shape: f32[1,256], index: 5, kind: input, shape index: {}]   ;;  %s6906_s6 = inlined_call_operand.vmem [shape: bf16[256,4], index: 6, kind: input, shape index: {}]   ;;  %s6907_s7 = inlined_call_operand.vmem [shape: f32[1,4], index: 7, kind: input, shape index: {}]   ;;  %s6908_s8 = inlined_call_operand.vmem [shape: bf16[2,256], index: 8, kind: input, shape index: {}]   ;;  %s6909_s9 = inlined_call_operand.vmem [shape: f32[1,256], index: 9, kind: input, shape index: {}]   ;;  %s6910_s10 = inlined_call_operand.hbm [shape: bf16[256,512], index: 10, kind: input, shape index: {}]   ;;  %s6911_s11 = inlined_call_operand.vmem [shape: f32[1,512], index: 11, kind: input, shape index: {}]   ;;  %s6912_s12 = inlined_call_operand.hbm [shape: bf16[512,896], index: 12, kind: input, shape index: {}]   ;;  %s6913_s13 = inlined_call_operand.vmem [shape: f32[1,896], index: 13, kind: input, shape index: {}]   ;;  %s6914_s14 = inlined_call_operand.hbm [shape: f32[16,896], index: 14, kind: output, shape index: {0}]   ;;  %s6915_s15 = inlined_call_operand.vmem [shape: f32[16,4], index: 15, kind: output, shape index: {1}]  }
   0x1   :  { %22 = vsyncpa [#allocation6], 0 }
   0x2   :  { %23 = vsyncpa [#allocation9], 0 }
   0x3   :  { %24 = vsyncpa [#allocation4], 0  ;;  %s6570_s18 = smov [#allocation5]  }
   0x4   :  { %s48_s19 = sshll.u32 %s6570_s18, 4  ;;  %s49_s19 = int_to_ptr.vmem [resolvable:$true] %s48_s19 }
   0x5   :  { %s6470_s20 = scalar_lea.vmem %s49_s19, 8192  ;;  %p6475_p1 = scmp.lt.s32.totalorder %s49_s19, %s49_s19 }
   0x6   :  { %p6471_p0 = scmp.ne.s32.totalorder %s49_s19, %s6470_s20  ;;  %p6476_p2 = scmp.lt.s32.totalorder %s6470_s20, %s6470_s20 }
   0x8   :  { %p6477_p3 = por %p6476_p2, %p6475_p1 }
   0xa   :  { %p6478_p4 = pnand %p6477_p3, %p6471_p0 }
   0xc   :  { %6481 = shalt.err (!%p6478_p4)
}
   0xd   :  { %s6571_s21 = smov 128   ;;  %s6572_s22 = smov 8  }
   0xe   :  { %54 = dma.hbm_to_vmem [thread:$0]  %s6904_s4, 8192, %s49_s19, [#allocation6], %s6571_s21, %s6571_s21, %s6572_s22  }
   0xf   :  { %s6573_s25 = smov [#allocation2]  }
  0x10   :  { %s34_s26 = sshll.u32 %s6573_s25, 4  ;;  %s35_s26 = int_to_ptr.vmem [resolvable:$true] %s34_s26 }
  0x11   :  { %s6490_s27 = scalar_lea.vmem %s35_s26, 25088  ;;  %p6495_p6 = scmp.lt.s32.totalorder %s35_s26, %s35_s26 }
  0x12   :  { %p6491_p5 = scmp.ne.s32.totalorder %s35_s26, %s6490_s27  ;;  %p6496_p7 = scmp.lt.s32.totalorder %s6490_s27, %s6490_s27 }
  0x14   :  { %p6497_p8 = por %p6496_p7, %p6495_p6 }
  0x16   :  { %p6498_p9 = pnand %p6497_p8, %p6491_p5 }
  0x18   :  { %6501 = shalt.err (!%p6498_p9)
}
  0x19   :  { %s6574_s28 = smov 256   ;;  %s6575_s29 = smov 16  }
  0x1a   :  { %40 = dma.hbm_to_vmem [thread:$0]  %s6902_s2, 25088, %s35_s26, [#allocation3], %s6574_s28, %s6574_s28, %s6575_s29  }
  0x1b   :  { %s6576_s17 = smov [#allocation7]   ;;  %s6577_s20 = smov [#allocation8]  }
  0x1c   :  { %s70_s18 = sshll.u32 %s6576_s17, 4  ;;  %s84_s4 = sshll.u32 %s6577_s20, 4  ;;  %s71_s18 = int_to_ptr.vmem [resolvable:$true] %s70_s18  ;;  %s85_s4 = int_to_ptr.vmem [resolvable:$true] %s84_s4 }
  0x1d   :  { %s6510_s19 = scalar_lea.vmem %s71_s18, 8192  ;;  %p6515_p11 = scmp.lt.s32.totalorder %s71_s18, %s71_s18 }
  0x1e   :  { %p6511_p10 = scmp.ne.s32.totalorder %s71_s18, %s6510_s19  ;;  %p6516_p12 = scmp.lt.s32.totalorder %s6510_s19, %s6510_s19 }
  0x20   :  { %p6517_p13 = por %p6516_p12, %p6515_p11 }
  0x22   :  { %p6518_p0 = pnand %p6517_p13, %p6511_p10 }
  0x24   :  { %6521 = shalt.err (!%p6518_p0)
}
  0x25   :  { %76 = dma.hbm_to_vmem [thread:$0]  %s6910_s10, 8192, %s71_s18, [#allocation6], %s6574_s28, %s6574_s28, %s6575_s29  }
  0x26   :  { %s6530_s23 = scalar_lea.vmem %s85_s4, 28672  ;;  %p6535_p2 = scmp.lt.s32.totalorder %s85_s4, %s85_s4 }
  0x27   :  { %p6531_p1 = scmp.ne.s32.totalorder %s85_s4, %s6530_s23  ;;  %p6536_p3 = scmp.lt.s32.totalorder %s6530_s23, %s6530_s23 }
  0x29   :  { %p6537_p4 = por %p6536_p3, %p6535_p2 }
  0x2b   :  { %p6538_p5 = pnand %p6537_p4, %p6531_p1 }
  0x2d   :  { %6541 = shalt.err (!%p6538_p5)
}
  0x2e   :  { %s6578_s2 = smov 448   ;;  %s6579_s24 = smov 28  }
  0x2f   :  { %90 = dma.hbm_to_vmem [thread:$0]  %s6912_s12, 28672, %s85_s4, [#allocation9], %s6578_s2, %s6578_s2, %s6579_s24  }
  0x30   :  { %6562 = dma.done.wait [#allocation3], 25088  }
  0x31   :  { %6563 = vsyncadd [#allocation3], 4294942208 }
  0x32   :  { %6564 = dma.done.wait [#allocation6], 16384  }
  0x33   :  { %6565 = vsyncadd [#allocation6], 4294950912 }
  0x34   :  { %6566 = dma.done.wait [#allocation9], 28672  }
  0x35   :  { %6567 = vsyncadd [#allocation9], 4294938624  ;;  %v6580_v0 = vmov 0   ;;  %v5568_v1 = vld [vmem:[#allocation2 + $0xe4] ss:$16 sps:$4 sm:$0xff]   ;;  %vm1347_vm0 = vcmask 130048  }
  0x36   :  { %5565 = vset.pattern.permute.xlu1 %v6580_v0  ;;  %v5570_v2 = vld [vmem:[#allocation2 + $0x2e4] ss:$16 sps:$4 sm:$0xff]   ;;  %1351 = vmatprep.subr.bf16.mxu0 %v5568_v1  ;;  %v5572_v3 = vld [vmem:[#allocation2 + $0xe0] ss:$16 sps:$4 sm:$0xff]   ;;  %v6687_v52 = vld [vmem:[%s6900_s0 + $0xc] ss:$28 sps:$4 sm:$0xff]  }
  0x37   :  { %v5573_v4 = vld [vmem:[#allocation2 + $0x2e0] ss:$16 sps:$4 sm:$0xff]   ;;  %1394 = vmatprep.subr.bf16.mxu1 %v5570_v2  ;;  %v5574_v5 = vld [vmem:[#allocation2 + $0xc4] ss:$16 sps:$4 sm:$0xff]   ;;  %1352 = vmatpush1.bf16.msra.mxu0 %v5572_v3  ;;  %vm4869_vm1 = vcmask 31744   ;;  %s6582_s2 = smov 126  }
  0x38   :  { %1395 = vmatpush1.bf16.msra.mxu1 %v5573_v4  ;;  %v5576_v6 = vld [vmem:[#allocation2 + $0x2c4] ss:$16 sps:$4 sm:$0xff]   ;;  %v5578_v7 = vld [vmem:[#allocation2 + $0xc0] ss:$16 sps:$4 sm:$0xff]   ;;  %1353 = vmatprep.subr.bf16.mxu0 %v5574_v5 }
  0x39   :  { %v5579_v8 = vld [vmem:[#allocation2 + $0x2c0] ss:$16 sps:$4 sm:$0xff]   ;;  %1396 = vmatprep.subr.bf16.mxu1 %v5576_v6  ;;  %v5580_v9 = vld [vmem:[#allocation2 + $0xa4] ss:$16 sps:$4 sm:$0xff]   ;;  %1426 = vmatprep.mubr.bf16.mxu1 %v6687_v52 }
  0x3a   :  { %v5582_v10 = vld [vmem:[#allocation2 + $0x2a4] ss:$16 sps:$4 sm:$0xff]   ;;  %v5584_v11 = vld [vmem:[#allocation2 + $0xa0] ss:$16 sps:$4 sm:$0xff]  }
  0x3b   :  { %v5585_v12 = vld [vmem:[#allocation2 + $0x2a0] ss:$16 sps:$4 sm:$0xff]   ;;  %1354 = vmatpush1.bf16.msra.mxu0 %v5578_v7  ;;  %v5586_v13 = vld [vmem:[#allocation2 + $0x84] ss:$16 sps:$4 sm:$0xff]  }
  0x3c   :  { %1397 = vmatpush1.bf16.msra.mxu1 %v5579_v8  ;;  %1355 = vmatprep.subr.bf16.mxu0 %v5580_v9  ;;  %v5588_v14 = vld [vmem:[#allocation2 + $0x284] ss:$16 sps:$4 sm:$0xff]   ;;  %v5590_v15 = vld [vmem:[#allocation2 + $0x80] ss:$16 sps:$4 sm:$0xff]  }
  0x3d   :  { %1398 = vmatprep.subr.bf16.mxu1 %v5582_v10  ;;  %v5591_v16 = vld [vmem:[#allocation2 + $0x280] ss:$16 sps:$4 sm:$0xff]   ;;  %v5592_v17 = vld [vmem:[#allocation2 + $0x64] ss:$16 sps:$4 sm:$0xff]  }
  0x3e   :  { %v5594_v18 = vld [vmem:[#allocation2 + $0x264] ss:$16 sps:$4 sm:$0xff]   ;;  %v5596_v19 = vld [vmem:[#allocation2 + $0x60] ss:$16 sps:$4 sm:$0xff]  }
  0x3f   :  { %1356 = vmatpush1.bf16.msra.mxu0 %v5584_v11  ;;  %v5597_v20 = vld [vmem:[#allocation2 + $0x260] ss:$16 sps:$4 sm:$0xff]   ;;  %v5598_v21 = vld [vmem:[#allocation2 + $0x44] ss:$16 sps:$4 sm:$0xff]   ;;  %v5681_v11 = vld [vmem:[#allocation2 + $0xec] ss:$16 sps:$4 sm:$0xff]  }
  0x40   :  { %1399 = vmatpush1.bf16.msra.mxu1 %v5585_v12  ;;  %1357 = vmatprep.subr.bf16.mxu0 %v5586_v13  ;;  %v5600_v22 = vld [vmem:[#allocation2 + $0x244] ss:$16 sps:$4 sm:$0xff]   ;;  %v5602_v23 = vld [vmem:[#allocation2 + $0x40] ss:$16 sps:$4 sm:$0xff]  }
  0x41   :  { %1400 = vmatprep.subr.bf16.mxu1 %v5588_v14  ;;  %v5603_v24 = vld [vmem:[#allocation2 + $0x240] ss:$16 sps:$4 sm:$0xff]   ;;  %v5604_v25 = vld [vmem:[#allocation2 + $0x24] ss:$16 sps:$4 sm:$0xff]   ;;  %v5679_v14 = vld [vmem:[#allocation2 + $0xe8] ss:$16 sps:$4 sm:$0xff]  }
  0x42   :  { %v5606_v26 = vld [vmem:[#allocation2 + $0x224] ss:$16 sps:$4 sm:$0xff]   ;;  %v5608_v27 = vld [vmem:[#allocation2 + $0x20] ss:$16 sps:$4 sm:$0xff]  }
  0x43   :  { %1358 = vmatpush1.bf16.msra.mxu0 %v5590_v15  ;;  %v5609_v28 = vld [vmem:[#allocation2 + $0x220] ss:$16 sps:$4 sm:$0xff]   ;;  %v5610_v29 = vld [vmem:[#allocation2 + $0x4] ss:$16 sps:$4 sm:$0xff]  }
  0x44   :  { %1401 = vmatpush1.bf16.msra.mxu1 %v5591_v16  ;;  %1359 = vmatprep.subr.bf16.mxu0 %v5592_v17  ;;  %v5612_v30 = vld [vmem:[#allocation2 + $0x204] ss:$16 sps:$4 sm:$0xff]   ;;  %v5614_v31 = vld [vmem:[#allocation2] ss:$16 sps:$4 sm:$0xff]   ;;  %v5688_v17 = vld [vmem:[#allocation2 + $0xcc] ss:$16 sps:$4 sm:$0xff]  }
  0x45   :  { %1402 = vmatprep.subr.bf16.mxu1 %v5594_v18  ;;  %v5615_v32 = vld [vmem:[#allocation2 + $0x200] ss:$16 sps:$4 sm:$0xff]   ;;  %v5616_v33 = vld [vmem:[#allocation2 + $0x1e4] ss:$16 sps:$4 sm:$0xff]  }
  0x46   :  { %v5618_v34 = vld [vmem:[#allocation2 + $0x3e4] ss:$16 sps:$4 sm:$0xff]   ;;  %v5620_v35 = vld [vmem:[#allocation2 + $0x1e0] ss:$16 sps:$4 sm:$0xff]  }
  0x47   :  { %1360 = vmatpush1.bf16.msra.mxu0 %v5596_v19  ;;  %v5621_v36 = vld [vmem:[#allocation2 + $0x3e0] ss:$16 sps:$4 sm:$0xff]   ;;  %v5622_v37 = vld [vmem:[#allocation2 + $0x1c4] ss:$16 sps:$4 sm:$0xff]   ;;  %v5686_v19 = vld [vmem:[#allocation2 + $0xc8] ss:$16 sps:$4 sm:$0xff]  }
  0x48   :  { %1403 = vmatpush1.bf16.msra.mxu1 %v5597_v20  ;;  %1361 = vmatprep.subr.bf16.mxu0 %v5598_v21  ;;  %v5624_v38 = vld [vmem:[#allocation2 + $0x3c4] ss:$16 sps:$4 sm:$0xff]   ;;  %v5626_v39 = vld [vmem:[#allocation2 + $0x1c0] ss:$16 sps:$4 sm:$0xff]   ;;  %v5694_v21 = vld [vmem:[#allocation2 + $0xac] ss:$16 sps:$4 sm:$0xff]  }
  0x49   :  { %1404 = vmatprep.subr.bf16.mxu1 %v5600_v22  ;;  %v5627_v40 = vld [vmem:[#allocation2 + $0x3c0] ss:$16 sps:$4 sm:$0xff]   ;;  %v5628_v41 = vld [vmem:[#allocation2 + $0x1a4] ss:$16 sps:$4 sm:$0xff]  }
  0x4a   :  { %v5630_v42 = vld [vmem:[#allocation2 + $0x3a4] ss:$16 sps:$4 sm:$0xff]   ;;  %v5632_v43 = vld [vmem:[#allocation2 + $0x1a0] ss:$16 sps:$4 sm:$0xff]  }
  0x4b   :  { %1362 = vmatpush1.bf16.msra.mxu0 %v5602_v23  ;;  %v5633_v44 = vld [vmem:[#allocation2 + $0x3a0] ss:$16 sps:$4 sm:$0xff]   ;;  %v5634_v45 = vld [vmem:[#allocation2 + $0x184] ss:$16 sps:$4 sm:$0xff]   ;;  %v5692_v23 = vld [vmem:[#allocation2 + $0xa8] ss:$16 sps:$4 sm:$0xff]  }
  0x4c   :  { %1405 = vmatpush1.bf16.msra.mxu1 %v5603_v24  ;;  %1363 = vmatprep.subr.bf16.mxu0 %v5604_v25  ;;  %v5636_v46 = vld [vmem:[#allocation2 + $0x384] ss:$16 sps:$4 sm:$0xff]   ;;  %v5638_v47 = vld [vmem:[#allocation2 + $0x180] ss:$16 sps:$4 sm:$0xff]   ;;  %v5700_v25 = vld [vmem:[#allocation2 + $0x8c] ss:$16 sps:$4 sm:$0xff]  }
  0x4d   :  { %1406 = vmatprep.subr.bf16.mxu1 %v5606_v26  ;;  %v5639_v48 = vld [vmem:[#allocation2 + $0x380] ss:$16 sps:$4 sm:$0xff]   ;;  %v5640_v49 = vld [vmem:[#allocation2 + $0x164] ss:$16 sps:$4 sm:$0xff]  }
  0x4e   :  { %v6682_v50 = vld [vmem:[%s6900_s0 + $0x4] ss:$28 sps:$4 sm:$0xff]   ;;  %v5685_v15 = vld [vmem:[%s6900_s0 + $0x18] ss:$28 sps:$4 sm:$0xff]  }
  0x4f   :  { %1364 = vmatpush1.bf16.msra.mxu0 %v5608_v27  ;;  %v5642_v51 = vld [vmem:[#allocation2 + $0x364] ss:$16 sps:$4 sm:$0xff]   ;;  %1383 = vmatprep.mubr.bf16.mxu0 %v6682_v50  ;;  %v5644_v53 = vld [vmem:[#allocation2 + $0x160] ss:$16 sps:$4 sm:$0xff]   ;;  %v5698_v27 = vld [vmem:[#allocation2 + $0x88] ss:$16 sps:$4 sm:$0xff]  }
  0x50   :  { %1407 = vmatpush1.bf16.msra.mxu1 %v5609_v28  ;;  %1365 = vmatprep.subr.bf16.mxu0 %v5610_v29  ;;  %v5645_v54 = vld [vmem:[#allocation2 + $0x360] ss:$16 sps:$4 sm:$0xff]   ;;  %v5646_v55 = vld [vmem:[#allocation2 + $0x144] ss:$16 sps:$4 sm:$0xff]   ;;  %v5706_v29 = vld [vmem:[#allocation2 + $0x6c] ss:$16 sps:$4 sm:$0xff]  }
  0x51   :  { %1408 = vmatprep.subr.bf16.mxu1 %v5612_v30  ;;  %v5648_v56 = vld [vmem:[#allocation2 + $0x344] ss:$16 sps:$4 sm:$0xff]   ;;  %v5650_v57 = vld [vmem:[#allocation2 + $0x140] ss:$16 sps:$4 sm:$0xff]  }
  0x52   :  { %v5651_v58 = vld [vmem:[#allocation2 + $0x340] ss:$16 sps:$4 sm:$0xff]   ;;  %v5652_v59 = vld [vmem:[#allocation2 + $0x124] ss:$16 sps:$4 sm:$0xff]  }
  0x53   :  { %1366 = vmatpush1.bf16.msra.mxu0 %v5614_v31  ;;  %v5654_v60 = vld [vmem:[#allocation2 + $0x324] ss:$16 sps:$4 sm:$0xff]   ;;  %v5656_v61 = vld [vmem:[#allocation2 + $0x120] ss:$16 sps:$4 sm:$0xff]   ;;  %v5704_v31 = vld [vmem:[#allocation2 + $0x68] ss:$16 sps:$4 sm:$0xff]  }
  0x54   :  { %1409 = vmatpush1.bf16.msra.mxu1 %v5615_v32  ;;  %1367 = vmatprep.subr.bf16.mxu0 %v5616_v33  ;;  %v5657_v62 = vld [vmem:[#allocation2 + $0x320] ss:$16 sps:$4 sm:$0xff]   ;;  %v5658_v63 = vld [vmem:[#allocation2 + $0x104] ss:$16 sps:$4 sm:$0xff]   ;;  %v5712_v33 = vld [vmem:[#allocation2 + $0x4c] ss:$16 sps:$4 sm:$0xff]  }
  0x55   :  { %1410 = vmatprep.subr.bf16.mxu1 %v5618_v34  ;;  %v5660_v1 = vld [vmem:[#allocation2 + $0x304] ss:$16 sps:$4 sm:$0xff]   ;;  %v5662_v2 = vld [vmem:[#allocation2 + $0x100] ss:$16 sps:$4 sm:$0xff]  }
  0x56   :  { %v5663_v3 = vld [vmem:[#allocation2 + $0x300] ss:$16 sps:$4 sm:$0xff]   ;;  %v5672_v4 = vld [vmem:[#allocation2 + $0x4e4] ss:$16 sps:$4 sm:$0xff]  }
  0x57   :  { %1368 = vmatpush2.bf16.msra.mxu0 %v5620_v35  ;;  %v5675_v5 = vld [vmem:[#allocation2 + $0x604] ss:$16 sps:$4 sm:$0xff]   ;;  %v6694_v6 = vld [vmem:[%s6900_s0] ss:$28 sps:$4 sm:$0xff]  }
  0x58   :  { %1411 = vmatpush2.bf16.msra.mxu1 %v5621_v36  ;;  %1369 = vmatprep.subr.bf16.mxu0 %v5622_v37  ;;  %v5667_v7 = vld [vmem:[%s6900_s0 + $0x8] ss:$28 sps:$4 sm:$0xff]   ;;  %v5670_v8 = vld [vmem:[#allocation2 + $0x4e0] ss:$16 sps:$4 sm:$0xff]  }
  0x59   :  { %1412 = vmatprep.subr.bf16.mxu1 %v5624_v38  ;;  %v5673_v9 = vld [vmem:[#allocation2 + $0x600] ss:$16 sps:$4 sm:$0xff]   ;;  %v5678_v10 = vld [vmem:[#allocation2 + $0x4c4] ss:$16 sps:$4 sm:$0xff]   ;;  %v5710_v36 = vld [vmem:[#allocation2 + $0x48] ss:$16 sps:$4 sm:$0xff]  }
  0x5a   :  { %v5676_v12 = vld [vmem:[#allocation2 + $0x4c0] ss:$16 sps:$4 sm:$0xff]   ;;  %v5684_v13 = vld [vmem:[#allocation2 + $0x4a4] ss:$16 sps:$4 sm:$0xff]   ;;  %v5718_v38 = vld [vmem:[#allocation2 + $0x2c] ss:$16 sps:$4 sm:$0xff]  }
  0x5b   :  { %1370 = vmatpush2.bf16.msra.mxu0 %v5626_v39  ;;  %v5682_v16 = vld [vmem:[#allocation2 + $0x4a0] ss:$16 sps:$4 sm:$0xff]   ;;  %v5691_v18 = vld [vmem:[#allocation2 + $0x484] ss:$16 sps:$4 sm:$0xff]  }
  0x5c   :  { %1413 = vmatpush2.bf16.msra.mxu1 %v5627_v40  ;;  %1371 = vmatprep.subr.bf16.mxu0 %v5628_v41  ;;  %v5689_v20 = vld [vmem:[#allocation2 + $0x480] ss:$16 sps:$4 sm:$0xff]   ;;  %v5697_v22 = vld [vmem:[#allocation2 + $0x464] ss:$16 sps:$4 sm:$0xff]   ;;  %v5716_v40 = vld [vmem:[#allocation2 + $0x28] ss:$16 sps:$4 sm:$0xff]  }
  0x5d   :  { %1414 = vmatprep.subr.bf16.mxu1 %v5630_v42  ;;  %v5695_v24 = vld [vmem:[#allocation2 + $0x460] ss:$16 sps:$4 sm:$0xff]   ;;  %v5703_v26 = vld [vmem:[#allocation2 + $0x444] ss:$16 sps:$4 sm:$0xff]   ;;  %v5724_v42 = vld [vmem:[#allocation2 + $0xc] ss:$16 sps:$4 sm:$0xff]  }
  0x5e   :  { %v5701_v28 = vld [vmem:[#allocation2 + $0x440] ss:$16 sps:$4 sm:$0xff]   ;;  %v5709_v30 = vld [vmem:[#allocation2 + $0x424] ss:$16 sps:$4 sm:$0xff]  }
  0x5f   :  { %1372 = vmatpush2.bf16.msra.mxu0 %v5632_v43  ;;  %v5707_v32 = vld [vmem:[#allocation2 + $0x420] ss:$16 sps:$4 sm:$0xff]   ;;  %v5715_v35 = vld [vmem:[#allocation2 + $0x404] ss:$16 sps:$4 sm:$0xff]  }
  0x60   :  { %1415 = vmatpush2.bf16.msra.mxu1 %v5633_v44  ;;  %1373 = vmatprep.subr.bf16.mxu0 %v5634_v45  ;;  %v6709_v34 = vld [vmem:[%s6900_s0 + $0x14] ss:$28 sps:$4 sm:$0xff]   ;;  %v5722_v44 = vld [vmem:[#allocation2 + $0x8] ss:$16 sps:$4 sm:$0xff]  }
  0x61   :  { %1416 = vmatprep.subr.bf16.mxu1 %v5636_v46  ;;  %v5713_v37 = vld [vmem:[#allocation2 + $0x400] ss:$16 sps:$4 sm:$0xff]   ;;  %v5721_v39 = vld [vmem:[#allocation2 + $0x5e4] ss:$16 sps:$4 sm:$0xff]   ;;  %v5730_v46 = vld [vmem:[#allocation2 + $0x1ec] ss:$16 sps:$4 sm:$0xff]  }
  0x62   :  { %v5719_v41 = vld [vmem:[#allocation2 + $0x5e0] ss:$16 sps:$4 sm:$0xff]   ;;  %v5727_v43 = vld [vmem:[#allocation2 + $0x5c4] ss:$16 sps:$4 sm:$0xff]  }
  0x63   :  { %1374 = vmatpush2.bf16.msra.mxu0 %v5638_v47  ;;  %v5725_v45 = vld [vmem:[#allocation2 + $0x5c0] ss:$16 sps:$4 sm:$0xff]   ;;  %v5733_v47 = vld [vmem:[#allocation2 + $0x5a4] ss:$16 sps:$4 sm:$0xff]  }
  0x64   :  { %1417 = vmatpush2.bf16.msra.mxu1 %v5639_v48  ;;  %1375 = vmatprep.subr.bf16.mxu0 %v5640_v49  ;;  %v5728_v48 = vld [vmem:[#allocation2 + $0x1e8] ss:$16 sps:$4 sm:$0xff]   ;;  %v5731_v49 = vld [vmem:[#allocation2 + $0x5a0] ss:$16 sps:$4 sm:$0xff]  }
  0x65   :  { %1418 = vmatprep.subr.bf16.mxu1 %v5642_v51  ;;  %v5739_v51 = vld [vmem:[#allocation2 + $0x584] ss:$16 sps:$4 sm:$0xff]  }
  0x67   :  { %1376 = vmatpush2.bf16.msra.mxu0 %v5644_v53  ;;  %v5734_v53 = vld [vmem:[#allocation2 + $0x1c8] ss:$16 sps:$4 sm:$0xff]  }
  0x68   :  { %1419 = vmatpush2.bf16.msra.mxu1 %v5645_v54  ;;  %1377 = vmatprep.subr.bf16.mxu0 %v5646_v55  ;;  %v5737_v54 = vld [vmem:[#allocation2 + $0x580] ss:$16 sps:$4 sm:$0xff]   ;;  %v5742_v55 = vld [vmem:[#allocation2 + $0x1ac] ss:$16 sps:$4 sm:$0xff]  }
  0x69   :  { %1420 = vmatprep.subr.bf16.mxu1 %v5648_v56  ;;  %v5745_v56 = vld [vmem:[#allocation2 + $0x564] ss:$16 sps:$4 sm:$0xff]  }
  0x6b   :  { %1378 = vmatpush2.bf16.msra.mxu0 %v5650_v57  ;;  %v5740_v57 = vld [vmem:[#allocation2 + $0x1a8] ss:$16 sps:$4 sm:$0xff]  }
  0x6c   :  { %1421 = vmatpush2.bf16.msra.mxu1 %v5651_v58  ;;  %1379 = vmatprep.subr.bf16.mxu0 %v5652_v59  ;;  %v5743_v58 = vld [vmem:[#allocation2 + $0x560] ss:$16 sps:$4 sm:$0xff]   ;;  %v5748_v59 = vld [vmem:[#allocation2 + $0x18c] ss:$16 sps:$4 sm:$0xff]  }
  0x6d   :  { %1422 = vmatprep.subr.bf16.mxu1 %v5654_v60  ;;  %v5751_v60 = vld [vmem:[#allocation2 + $0x544] ss:$16 sps:$4 sm:$0xff]  }
  0x6f   :  { %1380 = vmatpush2.bf16.msra.mxu0 %v5656_v61  ;;  %v5746_v61 = vld [vmem:[#allocation2 + $0x188] ss:$16 sps:$4 sm:$0xff]  }
  0x70   :  { %1423 = vmatpush2.bf16.msra.mxu1 %v5657_v62  ;;  %1381 = vmatprep.subr.bf16.mxu0 %v5658_v63  ;;  %v5749_v62 = vld [vmem:[#allocation2 + $0x540] ss:$16 sps:$4 sm:$0xff]   ;;  %v5754_v63 = vld [vmem:[#allocation2 + $0x16c] ss:$16 sps:$4 sm:$0xff]  }
  0x71   :  { %1424 = vmatprep.subr.bf16.mxu1 %v5660_v1  ;;  %v5757_v1 = vld [vmem:[#allocation2 + $0x524] ss:$16 sps:$4 sm:$0xff]  }
  0x73   :  { %1382 = vmatpush2.bf16.msra.mxu0 %v5662_v2  ;;  %v5752_v2 = vld [vmem:[#allocation2 + $0x168] ss:$16 sps:$4 sm:$0xff]  }
  0x74   :  { %1425 = vmatpush2.bf16.msra.mxu1 %v5663_v3  ;;  %1437 = vmatprep.subr.bf16.mxu0 %v5672_v4  ;;  %v5755_v3 = vld [vmem:[#allocation2 + $0x520] ss:$16 sps:$4 sm:$0xff]   ;;  %v5760_v4 = vld [vmem:[#allocation2 + $0x14c] ss:$16 sps:$4 sm:$0xff]  }
  0x75   :  { %1494 = vmatprep.subr.bf16.mxu1 %v5675_v5  ;;  %v5763_v5 = vld [vmem:[#allocation2 + $0x504] ss:$16 sps:$4 sm:$0xff]  }
  0x76   :  { %1384 = vmatmul.mubr.bf16.vlgmr.msra.gmra.mxu0 %v6694_v6 }
  0x77   :  { %1427 = vmatmul.mubr.bf16.vlgmr.msra.gmra.mxu1 %v5667_v7  ;;  %1438 = vmatpush1.bf16.msra.mxu0 %v5670_v8  ;;  %v5758_v7 = vld [vmem:[#allocation2 + $0x148] ss:$16 sps:$4 sm:$0xff]   ;;  %v5761_v8 = vld [vmem:[#allocation2 + $0x500] ss:$16 sps:$4 sm:$0xff]  }
  0x78   :  { %1495 = vmatpush1.bf16.msra.mxu1 %v5673_v9  ;;  %1439 = vmatprep.subr.bf16.mxu0 %v5678_v10  ;;  %v5769_v9 = vld [vmem:[#allocation2 + $0x12c] ss:$16 sps:$4 sm:$0xff]  }
  0x79   :  { %1512 = vmatprep.mubr.bf16.mxu1 %v6580_v0  ;;  %1523 = vmatprep.subr.bf16.mxu1 %v5681_v11  ;;  %v5772_v10 = vld [vmem:[#allocation2 + $0x2ec] ss:$16 sps:$4 sm:$0xff]  }
  0x7a   :  { %1469 = vmatprep.mubr.bf16.mxu0 %v6709_v34  ;;  %v6715_v11 = vld [vmem:[%s6900_s0 + $0x10] ss:$28 sps:$4 sm:$0xff]  }
  0x7b   :  { %1440 = vmatpush1.bf16.msra.mxu0 %v5676_v12  ;;  %v5767_v12 = vld [vmem:[#allocation2 + $0x128] ss:$16 sps:$4 sm:$0xff]  }
  0x7c   :  { %1441 = vmatprep.subr.bf16.mxu0 %v5684_v13  ;;  %v5770_v13 = vld [vmem:[#allocation2 + $0x2e8] ss:$16 sps:$4 sm:$0xff]  }
  0x7f   :  { %5098 = vmatmul.mubr.msk.bf16.vlgmr.msra.gmra.mxu1 %vm1347_vm0, %v5685_v15  ;;  %1442 = vmatpush1.bf16.msra.mxu0 %v5682_v16  ;;  %v5778_v15 = vld [vmem:[#allocation2 + $0x2cc] ss:$16 sps:$4 sm:$0xff]   ;;  %v5773_v16 = vld [vmem:[#allocation2 + $0x108] ss:$16 sps:$4 sm:$0xff]  }
  0x80   :  { %1524 = vmatpush1.bf16.msra.mxu1 %v5679_v14  ;;  %1443 = vmatprep.subr.bf16.mxu0 %v5691_v18  ;;  %v5775_v14 = vld [vmem:[#allocation2 + $0x10c] ss:$16 sps:$4 sm:$0xff]  }
  0x81   :  { %1525 = vmatprep.subr.bf16.mxu1 %v5688_v17  ;;  %1555 = vmatprep.mubr.bf16.mxu1 %v6682_v50  ;;  %v5736_v50 = vld [vmem:[#allocation2 + $0x1cc] ss:$16 sps:$4 sm:$0xff]   ;;  %v5776_v17 = vld [vmem:[#allocation2 + $0x2c8] ss:$16 sps:$4 sm:$0xff]  }
  0x82   :  { %v5781_v18 = vld [vmem:[#allocation2 + $0x4ec] ss:$16 sps:$4 sm:$0xff]  }
  0x83   :  { %1444 = vmatpush1.bf16.msra.mxu0 %v5689_v20  ;;  %v5779_v20 = vld [vmem:[#allocation2 + $0x4e8] ss:$16 sps:$4 sm:$0xff]  }
  0x84   :  { %1526 = vmatpush1.bf16.msra.mxu1 %v5686_v19  ;;  %1445 = vmatprep.subr.bf16.mxu0 %v5697_v22  ;;  %v5784_v19 = vld [vmem:[#allocation2 + $0x2ac] ss:$16 sps:$4 sm:$0xff]  }
  0x85   :  { %1527 = vmatprep.subr.bf16.mxu1 %v5694_v21  ;;  %v5782_v21 = vld [vmem:[#allocation2 + $0x2a8] ss:$16 sps:$4 sm:$0xff]   ;;  %v5787_v22 = vld [vmem:[#allocation2 + $0x4cc] ss:$16 sps:$4 sm:$0xff]  }
  0x87   :  { %1446 = vmatpush1.bf16.msra.mxu0 %v5695_v24  ;;  %v5785_v24 = vld [vmem:[#allocation2 + $0x4c8] ss:$16 sps:$4 sm:$0xff]  }
  0x88   :  { %1528 = vmatpush1.bf16.msra.mxu1 %v5692_v23  ;;  %1447 = vmatprep.subr.bf16.mxu0 %v5703_v26  ;;  %v5790_v23 = vld [vmem:[#allocation2 + $0x28c] ss:$16 sps:$4 sm:$0xff]  }
  0x89   :  { %1529 = vmatprep.subr.bf16.mxu1 %v5700_v25  ;;  %v5788_v25 = vld [vmem:[#allocation2 + $0x288] ss:$16 sps:$4 sm:$0xff]   ;;  %v5793_v26 = vld [vmem:[#allocation2 + $0x4ac] ss:$16 sps:$4 sm:$0xff]  }
  0x8b   :  { %1448 = vmatpush1.bf16.msra.mxu0 %v5701_v28  ;;  %v5791_v28 = vld [vmem:[#allocation2 + $0x4a8] ss:$16 sps:$4 sm:$0xff]  }
  0x8c   :  { %1530 = vmatpush1.bf16.msra.mxu1 %v5698_v27  ;;  %1449 = vmatprep.subr.bf16.mxu0 %v5709_v30  ;;  %v5796_v27 = vld [vmem:[#allocation2 + $0x26c] ss:$16 sps:$4 sm:$0xff]  }
  0x8d   :  { %1531 = vmatprep.subr.bf16.mxu1 %v5706_v29  ;;  %v5794_v29 = vld [vmem:[#allocation2 + $0x268] ss:$16 sps:$4 sm:$0xff]   ;;  %v5802_v30 = vld [vmem:[#allocation2 + $0x24c] ss:$16 sps:$4 sm:$0xff]  }
  0x8f   :  { %1450 = vmatpush1.bf16.msra.mxu0 %v5707_v32  ;;  %v5805_v32 = vld [vmem:[#allocation2 + $0x46c] ss:$16 sps:$4 sm:$0xff]  }
  0x90   :  { %1532 = vmatpush1.bf16.msra.mxu1 %v5704_v31  ;;  %1451 = vmatprep.subr.bf16.mxu0 %v5715_v35  ;;  %v5797_v31 = vld [vmem:[#allocation2 + $0x488] ss:$16 sps:$4 sm:$0xff]  }
  0x91   :  { %1533 = vmatprep.subr.bf16.mxu1 %v5712_v33  ;;  %v5808_v33 = vld [vmem:[#allocation2 + $0x22c] ss:$16 sps:$4 sm:$0xff]   ;;  %v5803_v35 = vld [vmem:[#allocation2 + $0x468] ss:$16 sps:$4 sm:$0xff]  }
  0x93   :  { %1452 = vmatpush1.bf16.msra.mxu0 %v5713_v37  ;;  %v5811_v37 = vld [vmem:[#allocation2 + $0x44c] ss:$16 sps:$4 sm:$0xff]  }
  0x94   :  { %1534 = vmatpush1.bf16.msra.mxu1 %v5710_v36  ;;  %1453 = vmatprep.subr.bf16.mxu0 %v5721_v39  ;;  %v5806_v36 = vld [vmem:[#allocation2 + $0x228] ss:$16 sps:$4 sm:$0xff]  }
  0x95   :  { %1535 = vmatprep.subr.bf16.mxu1 %v5718_v38  ;;  %v5809_v38 = vld [vmem:[#allocation2 + $0x448] ss:$16 sps:$4 sm:$0xff]  }
  0x96   :  { %v5812_v39 = vld [vmem:[#allocation2 + $0x208] ss:$16 sps:$4 sm:$0xff]  }
  0x97   :  { %1454 = vmatpush2.bf16.msra.mxu0 %v5719_v41  ;;  %v5820_v41 = vld [vmem:[#allocation2 + $0x3ec] ss:$16 sps:$4 sm:$0xff]  }
  0x98   :  { %1536 = vmatpush1.bf16.msra.mxu1 %v5716_v40  ;;  %1455 = vmatprep.subr.bf16.mxu0 %v5727_v43  ;;  %v5817_v40 = vld [vmem:[#allocation2 + $0x42c] ss:$16 sps:$4 sm:$0xff]   ;;  %v5818_v43 = vld [vmem:[#allocation2 + $0x3e8] ss:$16 sps:$4 sm:$0xff]  }
  0x99   :  { %1537 = vmatprep.subr.bf16.mxu1 %v5724_v42  ;;  %v5815_v42 = vld [vmem:[#allocation2 + $0x428] ss:$16 sps:$4 sm:$0xff]  }
  0x9b   :  { %1456 = vmatpush2.bf16.msra.mxu0 %v5725_v45  ;;  %v5826_v45 = vld [vmem:[#allocation2 + $0x3cc] ss:$16 sps:$4 sm:$0xff]  }
  0x9c   :  { %1538 = vmatpush1.bf16.msra.mxu1 %v5722_v44  ;;  %1457 = vmatprep.subr.bf16.mxu0 %v5733_v47  ;;  %v5823_v44 = vld [vmem:[#allocation2 + $0x40c] ss:$16 sps:$4 sm:$0xff]   ;;  %v5824_v47 = vld [vmem:[#allocation2 + $0x3c8] ss:$16 sps:$4 sm:$0xff]  }
  0x9d   :  { %1539 = vmatprep.subr.bf16.mxu1 %v5730_v46  ;;  %v5821_v46 = vld [vmem:[#allocation2 + $0x408] ss:$16 sps:$4 sm:$0xff]  }
  0x9f   :  { %1458 = vmatpush2.bf16.msra.mxu0 %v5731_v49  ;;  %v5832_v49 = vld [vmem:[#allocation2 + $0x3ac] ss:$16 sps:$4 sm:$0xff]  }
  0xa0   :  { %1540 = vmatpush2.bf16.msra.mxu1 %v5728_v48  ;;  %1459 = vmatprep.subr.bf16.mxu0 %v5739_v51  ;;  %v5829_v48 = vld [vmem:[#allocation2 + $0x5ec] ss:$16 sps:$4 sm:$0xff]   ;;  %v5830_v51 = vld [vmem:[#allocation2 + $0x3a8] ss:$16 sps:$4 sm:$0xff]  }
  0xa1   :  { %1541 = vmatprep.subr.bf16.mxu1 %v5736_v50  ;;  %v5827_v50 = vld [vmem:[#allocation2 + $0x5e8] ss:$16 sps:$4 sm:$0xff]  }
  0xa3   :  { %1460 = vmatpush2.bf16.msra.mxu0 %v5737_v54  ;;  %v5838_v54 = vld [vmem:[#allocation2 + $0x38c] ss:$16 sps:$4 sm:$0xff]  }
  0xa4   :  { %1542 = vmatpush2.bf16.msra.mxu1 %v5734_v53  ;;  %1461 = vmatprep.subr.bf16.mxu0 %v5745_v56  ;;  %v5835_v53 = vld [vmem:[#allocation2 + $0x5cc] ss:$16 sps:$4 sm:$0xff]   ;;  %v5836_v56 = vld [vmem:[#allocation2 + $0x388] ss:$16 sps:$4 sm:$0xff]  }
  0xa5   :  { %1543 = vmatprep.subr.bf16.mxu1 %v5742_v55  ;;  %v5833_v55 = vld [vmem:[#allocation2 + $0x5c8] ss:$16 sps:$4 sm:$0xff]  }
  0xa7   :  { %1462 = vmatpush2.bf16.msra.mxu0 %v5743_v58  ;;  %v5844_v58 = vld [vmem:[#allocation2 + $0x36c] ss:$16 sps:$4 sm:$0xff]  }
  0xa8   :  { %1544 = vmatpush2.bf16.msra.mxu1 %v5740_v57  ;;  %1463 = vmatprep.subr.bf16.mxu0 %v5751_v60  ;;  %v5841_v57 = vld [vmem:[#allocation2 + $0x5ac] ss:$16 sps:$4 sm:$0xff]   ;;  %v5842_v60 = vld [vmem:[#allocation2 + $0x368] ss:$16 sps:$4 sm:$0xff]  }
  0xa9   :  { %1545 = vmatprep.subr.bf16.mxu1 %v5748_v59  ;;  %v5839_v59 = vld [vmem:[#allocation2 + $0x5a8] ss:$16 sps:$4 sm:$0xff]  }
  0xab   :  { %1464 = vmatpush2.bf16.msra.mxu0 %v5749_v62  ;;  %v5850_v62 = vld [vmem:[#allocation2 + $0x34c] ss:$16 sps:$4 sm:$0xff]  }
  0xac   :  { %1546 = vmatpush2.bf16.msra.mxu1 %v5746_v61  ;;  %1465 = vmatprep.subr.bf16.mxu0 %v5757_v1  ;;  %v5847_v61 = vld [vmem:[#allocation2 + $0x58c] ss:$16 sps:$4 sm:$0xff]   ;;  %v5848_v1 = vld [vmem:[#allocation2 + $0x348] ss:$16 sps:$4 sm:$0xff]  }
  0xad   :  { %1547 = vmatprep.subr.bf16.mxu1 %v5754_v63  ;;  %v5845_v63 = vld [vmem:[#allocation2 + $0x588] ss:$16 sps:$4 sm:$0xff]  }
  0xaf   :  { %1466 = vmatpush2.bf16.msra.mxu0 %v5755_v3  ;;  %v5856_v3 = vld [vmem:[#allocation2 + $0x32c] ss:$16 sps:$4 sm:$0xff]  }
  0xb0   :  { %1548 = vmatpush2.bf16.msra.mxu1 %v5752_v2  ;;  %1467 = vmatprep.subr.bf16.mxu0 %v5763_v5  ;;  %v5853_v2 = vld [vmem:[#allocation2 + $0x56c] ss:$16 sps:$4 sm:$0xff]   ;;  %v5854_v5 = vld [vmem:[#allocation2 + $0x328] ss:$16 sps:$4 sm:$0xff]  }
  0xb1   :  { %1549 = vmatprep.subr.bf16.mxu1 %v5760_v4  ;;  %v5851_v4 = vld [vmem:[#allocation2 + $0x568] ss:$16 sps:$4 sm:$0xff]  }
  0xb3   :  { %1468 = vmatpush2.bf16.msra.mxu0 %v5761_v8  ;;  %v5862_v8 = vld [vmem:[#allocation2 + $0x30c] ss:$16 sps:$4 sm:$0xff]  }
  0xb4   :  { %1550 = vmatpush2.bf16.msra.mxu1 %v5758_v7  ;;  %1566 = vmatprep.subr.bf16.mxu0 %v5772_v10  ;;  %v5859_v7 = vld [vmem:[#allocation2 + $0x54c] ss:$16 sps:$4 sm:$0xff]   ;;  %v5860_v10 = vld [vmem:[#allocation2 + $0x308] ss:$16 sps:$4 sm:$0xff]  }
  0xb5   :  { %1551 = vmatprep.subr.bf16.mxu1 %v5769_v9  ;;  %v5857_v9 = vld [vmem:[#allocation2 + $0x548] ss:$16 sps:$4 sm:$0xff]  }
  0xb6   :  { %1470 = vmatmul.mubr.bf16.vlgmr.msra.gmra.mxu0 %v6715_v11 }
  0xb7   :  { %1567 = vmatpush1.bf16.msra.mxu0 %v5770_v13  ;;  %1598 = vmatprep.mubr.bf16.mxu0 %v6687_v52  ;;  %v5799_v52 = vld [vmem:[#allocation2 + $0x48c] ss:$16 sps:$4 sm:$0xff]  }
  0xb8   :  { %1552 = vmatpush2.bf16.msra.mxu1 %v5767_v12  ;;  %1568 = vmatprep.subr.bf16.mxu0 %v5778_v15  ;;  %v5865_v12 = vld [vmem:[#allocation2 + $0x52c] ss:$16 sps:$4 sm:$0xff]   ;;  %v5872_v15 = vld [vmem:[#allocation5 + $0x70] ss:$8 sps:$4 sm:$0xff]  }
  0xb9   :  { %1553 = vmatprep.subr.bf16.mxu1 %v5775_v14  ;;  %v5874_v13 = vld [vmem:[#allocation5 + $0x74] ss:$8 sps:$4 sm:$0xff]   ;;  %v5863_v14 = vld [vmem:[#allocation2 + $0x528] ss:$16 sps:$4 sm:$0xff]  }
  0xbb   :  { %1569 = vmatpush1.bf16.msra.mxu0 %v5776_v17  ;;  %v5877_v17 = vld [vmem:[#allocation5 + $0x64] ss:$8 sps:$4 sm:$0xff]  }
  0xbc   :  { %1554 = vmatpush2.bf16.msra.mxu1 %v5773_v16  ;;  %1570 = vmatprep.subr.bf16.mxu0 %v5784_v19  ;;  %v5868_v16 = vld [vmem:[#allocation2 + $0x50c] ss:$16 sps:$4 sm:$0xff]   ;;  %v5875_v19 = vld [vmem:[#allocation5 + $0x60] ss:$8 sps:$4 sm:$0xff]  }
  0xbd   :  { %1609 = vmatprep.subr.bf16.mxu1 %v5781_v18  ;;  %v5866_v18 = vld [vmem:[#allocation2 + $0x508] ss:$16 sps:$4 sm:$0xff]  }
  0xbf   :  { %1556 = vmatmul.mubr.bf16.vlgmr.msra.gmra.mxu1 %v6694_v6  ;;  %1571 = vmatpush1.bf16.msra.mxu0 %v5782_v21  ;;  %v5800_v6 = vld [vmem:[#allocation2 + $0x248] ss:$16 sps:$4 sm:$0xff]   ;;  %v5871_v21 = vld [vmem:[#allocation2 + $0x60c] ss:$16 sps:$4 sm:$0xff]  }
  0xc0   :  { %1610 = vmatpush1.bf16.msra.mxu1 %v5779_v20  ;;  %1572 = vmatprep.subr.bf16.mxu0 %v5790_v23  ;;  %v6460_v20 = vld [vmem:[%s6900_s0 + $0x8] ss:$28 sps:$4 sm:$0xff]  }
  0xc1   :  { %1611 = vmatprep.subr.bf16.mxu1 %v5787_v22  ;;  %1641 = vmatprep.mubr.bf16.mxu1 %v6709_v34  ;;  %v5814_v34 = vld [vmem:[#allocation2 + $0x20c] ss:$16 sps:$4 sm:$0xff]   ;;  %v5869_v23 = vld [vmem:[#allocation2 + $0x608] ss:$16 sps:$4 sm:$0xff]  }
  0xc2   :  { %v5880_v22 = vld [vmem:[#allocation5 + $0x54] ss:$8 sps:$4 sm:$0xff]  }
  0xc3   :  { %1573 = vmatpush1.bf16.msra.mxu0 %v5788_v25  ;;  %v5883_v25 = vld [vmem:[#allocation5 + $0x44] ss:$8 sps:$4 sm:$0xff]  }
  0xc4   :  { %1612 = vmatpush1.bf16.msra.mxu1 %v5785_v24  ;;  %1574 = vmatprep.subr.bf16.mxu0 %v5796_v27  ;;  %v5878_v24 = vld [vmem:[#allocation5 + $0x50] ss:$8 sps:$4 sm:$0xff]   ;;  %v5886_v27 = vld [vmem:[#allocation5 + $0x34] ss:$8 sps:$4 sm:$0xff]  }
  0xc5   :  { %1613 = vmatprep.subr.bf16.mxu1 %v5793_v26  ;;  %v5881_v26 = vld [vmem:[#allocation5 + $0x40] ss:$8 sps:$4 sm:$0xff]  }
  0xc7   :  { %1575 = vmatpush1.bf16.msra.mxu0 %v5794_v29  ;;  %v5889_v29 = vld [vmem:[#allocation5 + $0x24] ss:$8 sps:$4 sm:$0xff]  }
  0xc8   :  { %1614 = vmatpush1.bf16.msra.mxu1 %v5791_v28  ;;  %1576 = vmatprep.subr.bf16.mxu0 %v5802_v30  ;;  %v5884_v28 = vld [vmem:[#allocation5 + $0x30] ss:$8 sps:$4 sm:$0xff]  }
  0xc9   :  { %1615 = vmatprep.subr.bf16.mxu1 %v5799_v52  ;;  %v6461_v52 = vld [vmem:[%s6900_s0 + $0x18] ss:$28 sps:$4 sm:$0xff]  }
  0xca   :  { %v5920_v30 = vld [vmem:[#allocation5 + $0x170] ss:$8 sps:$4 sm:$0xff]  }
  0xcb   :  { %1577 = vmatpush1.bf16.msra.mxu0 %v5800_v6  ;;  %v5887_v6 = vld [vmem:[#allocation5 + $0x20] ss:$8 sps:$4 sm:$0xff]  }
  0xcc   :  { %1616 = vmatpush1.bf16.msra.mxu1 %v5797_v31  ;;  %1578 = vmatprep.subr.bf16.mxu0 %v5808_v33  ;;  %v5922_v31 = vld [vmem:[#allocation5 + $0x174] ss:$8 sps:$4 sm:$0xff]  }
  0xcd   :  { %1617 = vmatprep.subr.bf16.mxu1 %v5805_v32  ;;  %v5923_v32 = vld [vmem:[#allocation5 + $0x160] ss:$8 sps:$4 sm:$0xff]   ;;  %v5928_v33 = vld [vmem:[#allocation5 + $0x154] ss:$8 sps:$4 sm:$0xff]  }
  0xcf   :  { %1579 = vmatpush1.bf16.msra.mxu0 %v5806_v36  ;;  %v5895_v36 = vld [vmem:[#allocation5 + $0x4] ss:$8 sps:$4 sm:$0xff]  }
  0xd0   :  { %1618 = vmatpush1.bf16.msra.mxu1 %v5803_v35  ;;  %1580 = vmatprep.subr.bf16.mxu0 %v5814_v34  ;;  %v5890_v35 = vld [vmem:[#allocation5 + $0x10] ss:$8 sps:$4 sm:$0xff]   ;;  %v5931_v34 = vld [vmem:[#allocation5 + $0x144] ss:$8 sps:$4 sm:$0xff]  }
  0xd1   :  { %1619 = vmatprep.subr.bf16.mxu1 %v5811_v37  ;;  %v5926_v37 = vld [vmem:[#allocation5 + $0x150] ss:$8 sps:$4 sm:$0xff]  }
  0xd3   :  { %1581 = vmatpush1.bf16.msra.mxu0 %v5812_v39  ;;  %v5898_v39 = vld [vmem:[#allocation5 + $0xf4] ss:$8 sps:$4 sm:$0xff]  }
  0xd4   :  { %1620 = vmatpush1.bf16.msra.mxu1 %v5809_v38  ;;  %1582 = vmatprep.subr.bf16.mxu0 %v5820_v41  ;;  %v5893_v38 = vld [vmem:[#allocation5] ss:$8 sps:$4 sm:$0xff]   ;;  %v5934_v41 = vld [vmem:[#allocation5 + $0x134] ss:$8 sps:$4 sm:$0xff]  }
  0xd5   :  { %1621 = vmatprep.subr.bf16.mxu1 %v5817_v40  ;;  %v5929_v40 = vld [vmem:[#allocation5 + $0x140] ss:$8 sps:$4 sm:$0xff]  }
  0xd7   :  { %1583 = vmatpush2.bf16.msra.mxu0 %v5818_v43  ;;  %v5901_v43 = vld [vmem:[#allocation5 + $0xe4] ss:$8 sps:$4 sm:$0xff]  }
  0xd8   :  { %1622 = vmatpush1.bf16.msra.mxu1 %v5815_v42  ;;  %1584 = vmatprep.subr.bf16.mxu0 %v5826_v45  ;;  %v5896_v42 = vld [vmem:[#allocation5 + $0xf0] ss:$8 sps:$4 sm:$0xff]   ;;  %v5937_v45 = vld [vmem:[#allocation5 + $0x124] ss:$8 sps:$4 sm:$0xff]  }
  0xd9   :  { %1623 = vmatprep.subr.bf16.mxu1 %v5823_v44  ;;  %v5932_v44 = vld [vmem:[#allocation5 + $0x130] ss:$8 sps:$4 sm:$0xff]  }
  0xdb   :  { %1585 = vmatpush2.bf16.msra.mxu0 %v5824_v47  ;;  %v5904_v47 = vld [vmem:[#allocation5 + $0xd4] ss:$8 sps:$4 sm:$0xff]  }
  0xdc   :  { %1624 = vmatpush1.bf16.msra.mxu1 %v5821_v46  ;;  %1586 = vmatprep.subr.bf16.mxu0 %v5832_v49  ;;  %v5899_v46 = vld [vmem:[#allocation5 + $0xe0] ss:$8 sps:$4 sm:$0xff]   ;;  %v5940_v49 = vld [vmem:[#allocation5 + $0x114] ss:$8 sps:$4 sm:$0xff]  }
  0xdd   :  { %1625 = vmatprep.subr.bf16.mxu1 %v5829_v48  ;;  %v5935_v48 = vld [vmem:[#allocation5 + $0x120] ss:$8 sps:$4 sm:$0xff]  }
  0xdf   :  { %1587 = vmatpush2.bf16.msra.mxu0 %v5830_v51  ;;  %v5907_v51 = vld [vmem:[#allocation5 + $0xc4] ss:$8 sps:$4 sm:$0xff]  }
  0xe0   :  { %1626 = vmatpush2.bf16.msra.mxu1 %v5827_v50  ;;  %1588 = vmatprep.subr.bf16.mxu0 %v5838_v54  ;;  %v5902_v50 = vld [vmem:[#allocation5 + $0xd0] ss:$8 sps:$4 sm:$0xff]   ;;  %v5943_v54 = vld [vmem:[#allocation5 + $0x104] ss:$8 sps:$4 sm:$0xff]  }
  0xe1   :  { %1627 = vmatprep.subr.bf16.mxu1 %v5835_v53  ;;  %v5938_v53 = vld [vmem:[#allocation5 + $0x110] ss:$8 sps:$4 sm:$0xff]  }
  0xe3   :  { %1589 = vmatpush2.bf16.msra.mxu0 %v5836_v56  ;;  %v5910_v56 = vld [vmem:[#allocation5 + $0xb4] ss:$8 sps:$4 sm:$0xff]  }
  0xe4   :  { %1628 = vmatpush2.bf16.msra.mxu1 %v5833_v55  ;;  %1590 = vmatprep.subr.bf16.mxu0 %v5844_v58  ;;  %v5905_v55 = vld [vmem:[#allocation5 + $0xc0] ss:$8 sps:$4 sm:$0xff]   ;;  %v5946_v58 = vld [vmem:[#allocation5 + $0x1f4] ss:$8 sps:$4 sm:$0xff]  }
  0xe5   :  { %1629 = vmatprep.subr.bf16.mxu1 %v5841_v57  ;;  %v5941_v57 = vld [vmem:[#allocation5 + $0x100] ss:$8 sps:$4 sm:$0xff]  }
  0xe7   :  { %1591 = vmatpush2.bf16.msra.mxu0 %v5842_v60  ;;  %v5913_v60 = vld [vmem:[#allocation5 + $0xa4] ss:$8 sps:$4 sm:$0xff]  }
  0xe8   :  { %1630 = vmatpush2.bf16.msra.mxu1 %v5839_v59  ;;  %1592 = vmatprep.subr.bf16.mxu0 %v5850_v62  ;;  %v5908_v59 = vld [vmem:[#allocation5 + $0xb0] ss:$8 sps:$4 sm:$0xff]   ;;  %v5911_v62 = vld [vmem:[#allocation5 + $0xa0] ss:$8 sps:$4 sm:$0xff]  }
  0xe9   :  { %1631 = vmatprep.subr.bf16.mxu1 %v5847_v61  ;;  %v5944_v61 = vld [vmem:[#allocation5 + $0x1f0] ss:$8 sps:$4 sm:$0xff]  }
  0xeb   :  { %1593 = vmatpush2.bf16.msra.mxu0 %v5848_v1  ;;  %v5914_v1 = vld [vmem:[#allocation5 + $0x90] ss:$8 sps:$4 sm:$0xff]  }
  0xec   :  { %1632 = vmatpush2.bf16.msra.mxu1 %v5845_v63  ;;  %1594 = vmatprep.subr.bf16.mxu0 %v5856_v3  ;;  %v5916_v63 = vld [vmem:[#allocation5 + $0x94] ss:$8 sps:$4 sm:$0xff]   ;;  %v5917_v3 = vld [vmem:[#allocation5 + $0x80] ss:$8 sps:$4 sm:$0xff]  }
  0xed   :  { %1633 = vmatprep.subr.bf16.mxu1 %v5853_v2  ;;  %v5919_v2 = vld [vmem:[#allocation5 + $0x84] ss:$8 sps:$4 sm:$0xff]  }
  0xef   :  { %1595 = vmatpush2.bf16.msra.mxu0 %v5854_v5  ;;  %v5947_v5 = vld [vmem:[#allocation5 + $0x1e0] ss:$8 sps:$4 sm:$0xff]  }
  0xf0   :  { %1634 = vmatpush2.bf16.msra.mxu1 %v5851_v4  ;;  %1596 = vmatprep.subr.bf16.mxu0 %v5862_v8  ;;  %v5949_v4 = vld [vmem:[#allocation5 + $0x1e4] ss:$8 sps:$4 sm:$0xff]   ;;  %v5950_v8 = vld [vmem:[#allocation5 + $0x1d0] ss:$8 sps:$4 sm:$0xff]  }
  0xf1   :  { %1635 = vmatprep.subr.bf16.mxu1 %v5859_v7  ;;  %v5952_v7 = vld [vmem:[#allocation5 + $0x1d4] ss:$8 sps:$4 sm:$0xff]  }
  0xf3   :  { %1597 = vmatpush2.bf16.msra.mxu0 %v5860_v10  ;;  %v5953_v10 = vld [vmem:[#allocation5 + $0x1c0] ss:$8 sps:$4 sm:$0xff]  }
  0xf4   :  { %1636 = vmatpush2.bf16.msra.mxu1 %v5857_v9  ;;  %2103 = vmatprep.subr.bf16.mxu0 %v5874_v13  ;;  %v5955_v9 = vld [vmem:[#allocation5 + $0x1c4] ss:$8 sps:$4 sm:$0xff]   ;;  %v5956_v13 = vld [vmem:[#allocation5 + $0x1b0] ss:$8 sps:$4 sm:$0xff]  }
  0xf5   :  { %1637 = vmatprep.subr.bf16.mxu1 %v5865_v12  ;;  %v5958_v12 = vld [vmem:[#allocation5 + $0x1b4] ss:$8 sps:$4 sm:$0xff]  }
  0xf6   :  { %1599 = vmatmul.mubr.bf16.vlgmr.msra.gmra.mxu0 %v6460_v20 }
  0xf7   :  { %2104 = vmatpush1.bf16.msra.mxu0 %v5872_v15  ;;  %v5959_v15 = vld [vmem:[#allocation5 + $0x1a0] ss:$8 sps:$4 sm:$0xff]  }
  0xf8   :  { %1638 = vmatpush2.bf16.msra.mxu1 %v5863_v14  ;;  %2105 = vmatprep.subr.bf16.mxu0 %v5877_v17  ;;  %v5961_v14 = vld [vmem:[#allocation5 + $0x1a4] ss:$8 sps:$4 sm:$0xff]   ;;  %v5962_v17 = vld [vmem:[#allocation5 + $0x190] ss:$8 sps:$4 sm:$0xff]  }
  0xf9   :  { %1639 = vmatprep.subr.bf16.mxu1 %v5868_v16  ;;  %v5964_v16 = vld [vmem:[#allocation5 + $0x194] ss:$8 sps:$4 sm:$0xff]  }
  0xfb   :  { %2106 = vmatpush1.bf16.msra.mxu0 %v5875_v19  ;;  %v5965_v19 = vld [vmem:[#allocation5 + $0x180] ss:$8 sps:$4 sm:$0xff]  }
  0xfc   :  { %1640 = vmatpush2.bf16.msra.mxu1 %v5866_v18  ;;  %2107 = vmatprep.subr.bf16.mxu0 %v5880_v22  ;;  %v5967_v18 = vld [vmem:[#allocation5 + $0x184] ss:$8 sps:$4 sm:$0xff]  }
  0xfd   :  { %1666 = vmatprep.subr.bf16.mxu1 %v5871_v21  ;;  %v312_v21 = vlaneseq }
  0xff   :  { %1642 = vmatmul.mubr.bf16.vlgmr.msra.gmra.mxu1 %v6715_v11  ;;  %2108 = vmatpush1.bf16.msra.mxu0 %v5878_v24  ;;  %v5925_v11 = vld [vmem:[#allocation5 + $0x164] ss:$8 sps:$4 sm:$0xff]  }
 0x100   :  { %1667 = vmatpush1.bf16.msra.mxu1 %v5869_v23  ;;  %1684 = vmatprep.mubr.bf16.mxu1 %v6580_v0  ;;  %v5892_v0 = vld [vmem:[#allocation5 + $0x14] ss:$8 sps:$4 sm:$0xff]   ;;  %v6730_v23 = vshrl.u32 %v312_v21, 7 }
 0x101   :  { %2109 = vmatprep.subr.bf16.mxu0 %v5883_v25  ;;  %2146 = vmatprep.subr.bf16.mxu1 %v5922_v31 }
 0x103   :  { %2110 = vmatpush1.bf16.msra.mxu0 %v5881_v26  ;;  %v6733_v26 = vsub.s32 1, %v6730_v23 }
 0x104   :  { %2111 = vmatprep.subr.bf16.mxu0 %v5886_v27  ;;  %v6736_v27 = vsub.s32 0, %v6730_v23 }
 0x107   :  { %5099 = vmatmul.mubr.msk.bf16.vlgmr.msra.gmra.mxu1 %vm1347_vm0, %v6461_v52  ;;  %2112 = vmatpush1.bf16.msra.mxu0 %v5884_v28 }
 0x108   :  { %2113 = vmatprep.subr.bf16.mxu0 %v5889_v29  ;;  %2147 = vmatpush1.bf16.msra.mxu1 %v5920_v30  ;;  %v310_v29 = vld [vmem:[%s6903_s3] sm:$0xf] }
 0x109   :  { %2148 = vmatprep.subr.bf16.mxu1 %v5925_v11  ;;  %v319_v30 = vrot.slane %v310_v29, %v6733_v26  ;;  %v315_v31 = vrot.slane %v310_v29, %v6736_v27 }
 0x10b   :  { %2114 = vmatpush1.bf16.msra.mxu0 %v5887_v6 }
 0x10c   :  { %2115 = vmatprep.subr.bf16.mxu0 %v5892_v0  ;;  %2149 = vmatpush1.bf16.msra.mxu1 %v5923_v32 }
 0x10d   :  { %2150 = vmatprep.subr.bf16.mxu1 %v5928_v33 }
 0x10f   :  { %2116 = vmatpush1.bf16.msra.mxu0 %v5890_v35 }
 0x110   :  { %2117 = vmatprep.subr.bf16.mxu0 %v5895_v36  ;;  %2151 = vmatpush1.bf16.msra.mxu1 %v5926_v37 }
 0x111   :  { %2152 = vmatprep.subr.bf16.mxu1 %v5931_v34 }
 0x113   :  { %2118 = vmatpush1.bf16.msra.mxu0 %v5893_v38 }
 0x114   :  { %2119 = vmatprep.subr.bf16.mxu0 %v5898_v39  ;;  %2153 = vmatpush1.bf16.msra.mxu1 %v5929_v40 }
 0x115   :  { %2154 = vmatprep.subr.bf16.mxu1 %v5934_v41 }
 0x117   :  { %2120 = vmatpush2.bf16.msra.mxu0 %v5896_v42 }
 0x118   :  { %2121 = vmatprep.subr.bf16.mxu0 %v5901_v43  ;;  %2155 = vmatpush1.bf16.msra.mxu1 %v5932_v44 }
 0x119   :  { %2156 = vmatprep.subr.bf16.mxu1 %v5937_v45 }
 0x11b   :  { %2122 = vmatpush2.bf16.msra.mxu0 %v5899_v46 }
 0x11c   :  { %2123 = vmatprep.subr.bf16.mxu0 %v5904_v47  ;;  %2157 = vmatpush1.bf16.msra.mxu1 %v5935_v48 }
 0x11d   :  { %2158 = vmatprep.subr.bf16.mxu1 %v5940_v49 }
 0x11f   :  { %2124 = vmatpush2.bf16.msra.mxu0 %v5902_v50 }
 0x120   :  { %2125 = vmatprep.subr.bf16.mxu0 %v5907_v51  ;;  %2159 = vmatpush1.bf16.msra.mxu1 %v5938_v53 }
 0x121   :  { %2160 = vmatprep.subr.bf16.mxu1 %v5943_v54 }
 0x123   :  { %2126 = vmatpush2.bf16.msra.mxu0 %v5905_v55 }
 0x124   :  { %2127 = vmatprep.subr.bf16.mxu0 %v5910_v56  ;;  %2161 = vmatpush1.bf16.msra.mxu1 %v5941_v57 }
 0x125   :  { %2162 = vmatprep.subr.bf16.mxu1 %v5946_v58 }
 0x127   :  { %2128 = vmatpush2.bf16.msra.mxu0 %v5908_v59 }
 0x128   :  { %2129 = vmatprep.subr.bf16.mxu0 %v5913_v60  ;;  %2163 = vmatpush2.bf16.msra.mxu1 %v5944_v61 }
 0x129   :  { %2164 = vmatprep.subr.bf16.mxu1 %v5949_v4  ;;  %v6744_v4 = vsub.s32 3, %v6730_v23 }
 0x12b   :  { %2130 = vmatpush2.bf16.msra.mxu0 %v5911_v62 }
 0x12c   :  { %2131 = vmatprep.subr.bf16.mxu0 %v5916_v63  ;;  %2165 = vmatpush2.bf16.msra.mxu1 %v5947_v5  ;;  %v6747_v5 = vsub.s32 2, %v6730_v23 }
 0x12d   :  { %2166 = vmatprep.subr.bf16.mxu1 %v5952_v7 }
 0x12f   :  { %2132 = vmatpush2.bf16.msra.mxu0 %v5914_v1 }
 0x130   :  { %2133 = vmatprep.subr.bf16.mxu0 %v5919_v2  ;;  %2167 = vmatpush2.bf16.msra.mxu1 %v5950_v8 }
 0x131   :  { %2168 = vmatprep.subr.bf16.mxu1 %v5955_v9 }
 0x133   :  { %2134 = vmatpush2.bf16.msra.mxu0 %v5917_v3 }
 0x134   :  { %2169 = vmatpush2.bf16.msra.mxu1 %v5953_v10  ;;  %v327_v10 = vrot.slane %v310_v29, %v6744_v4 }
 0x135   :  { %2170 = vmatprep.subr.bf16.mxu1 %v5958_v12  ;;  %v323_v12 = vrot.slane %v310_v29, %v6747_v5 }
 0x136   :  { %v1385_v24 = vpop.f32.mrf.mxu0 }
 0x137   :  { %v1428_v20 = vpop.f32.mrf.mxu1  ;;  %v1386_v32 = vadd.f32 %v1385_v24, %v315_v31 }
 0x138   :  { %2171 = vmatpush2.bf16.msra.mxu1 %v5956_v13  ;;  %v1387_v28 = vpop.f32.mrf.mxu0 }
 0x139   :  { %2172 = vmatprep.subr.bf16.mxu1 %v5961_v14  ;;  %v1430_v22 = vpop.f32.mrf.mxu1  ;;  %v1388_v0 = vadd.f32 %v1387_v28, %v319_v30  ;;  %v1429_v39 = vadd.f32 %v1428_v20, %v1386_v32 }
 0x13a   :  { %v1389_v11 = vpop.f32.mrf.mxu0 }
 0x13b   :  { %v1432_v25 = vpop.f32.mrf.mxu1  ;;  %v1390_v35 = vadd.f32 %v1389_v11, %v315_v31  ;;  %v1431_v34 = vadd.f32 %v1430_v22, %v1388_v0 }
 0x13c   :  { %2173 = vmatpush2.bf16.msra.mxu1 %v5959_v15  ;;  %v1391_v33 = vpop.f32.mrf.mxu0 }
 0x13d   :  { %2174 = vmatprep.subr.bf16.mxu1 %v5964_v16  ;;  %v1434_v52 = vpop.f32.mrf.mxu1  ;;  %v1392_v38 = vadd.f32 %v1391_v33, %v319_v30  ;;  %v1433_v41 = vadd.f32 %v1432_v25, %v1390_v35 }
 0x13f   :  { %v1514_v6 = vpop.f32.mrf.mxu1  ;;  %v1435_v46 = vadd.f32 %v1434_v52, %v1392_v38  ;;  %v5970_v38 = vld [vmem:[%s6906_s6 + $0x70] sm:$0xff]  }
 0x140   :  { %2175 = vmatpush2.bf16.msra.mxu1 %v5962_v17 }
 0x141   :  { %2176 = vmatprep.subr.bf16.mxu1 %v5967_v18  ;;  %v1516_v36 = vpop.f32.mrf.mxu1 }
 0x143   :  { %v1518_v43 = vpop.f32.mrf.mxu1 }
 0x144   :  { %2177 = vmatpush2.bf16.msra.mxu1 %v5965_v19 }
 0x145   :  { %v1520_v53 = vpop.f32.mrf.mxu1 }
 0x176   :  { %v1471_v37 = vpop.f32.mrf.mxu0 }
 0x177   :  { %v1472_v44 = vadd.f32 %v1471_v37, %v1429_v39  ;;  %v5968_v37 = vld [vmem:[%s6906_s6 + $0x78] sm:$0xff]  }
 0x178   :  { %v1473_v40 = vpop.f32.mrf.mxu0  ;;  %5483 = vmatprep.subr.bf16.mxu0 %v5968_v37 }
 0x179   :  { %v1474_v42 = vadd.f32 %v1473_v40, %v1431_v34  ;;  %v1515_v54 = vadd.f32 %v1514_v6, %v1472_v44  ;;  %v5969_v34 = vld [vmem:[%s6906_s6 + $0x38] sm:$0xff]  }
 0x17a   :  { %v1475_v45 = vpop.f32.mrf.mxu0 }
 0x17b   :  { %v1476_v47 = vadd.f32 %v1475_v45, %v1433_v41  ;;  %v1517_v49 = vadd.f32 %v1516_v36, %v1474_v42  ;;  %v1695_v59 = vmax.f32 %v1515_v54, 0.0  ;;  %v5972_v45 = vld [vmem:[%s6906_s6 + $0x68] sm:$0xff]   ;;  %v5979_v54 = vld [vmem:[%s6906_s6 + $0x10] sm:$0xff]  }
 0x17c   :  { %v1477_v48 = vpop.f32.mrf.mxu0 }
 0x17d   :  { %v1519_v50 = vadd.f32 %v1518_v43, %v1476_v47  ;;  %v1478_v51 = vadd.f32 %v1477_v48, %v1435_v46  ;;  %v1696_v57 = vmax.f32 %v1517_v49, 0.0  ;;  %v5971_v43 = vld [vmem:[%s6906_s6 + $0x30] sm:$0xff]   ;;  %v5973_v47 = vld [vmem:[%s6906_s6 + $0x28] sm:$0xff]   ;;  %v5974_v48 = vld [vmem:[%s6906_s6 + $0x60] sm:$0xff]  }
 0x17e   :  { %v5975_v49 = vld [vmem:[%s6906_s6 + $0x20] sm:$0xff]  }
 0x17f   :  { %v1521_v55 = vadd.f32 %v1520_v53, %v1478_v51  ;;  %v1699_v56 = vmax.f32 %v1519_v50, 0.0  ;;  %v1557_v62 = vpop.f32.mrf.mxu1  ;;  %v5976_v50 = vld [vmem:[%s6906_s6 + $0x58] sm:$0xff]   ;;  %v5978_v53 = vld [vmem:[%s6906_s6 + $0x50] sm:$0xff]  }
 0x180   :  { %v1558_v18 = vadd.f32 %v1557_v62, %v323_v12  ;;  %v5977_v51 = vld [vmem:[%s6906_s6 + $0x18] sm:$0xff]  }
 0x181   :  { %v1700_v58 = vmax.f32 %v1521_v55, 0.0  ;;  %v1703_v61 = vpack.c.bf16 %v1699_v56, %v1695_v59  ;;  %v1559_v63 = vpop.f32.mrf.mxu1  ;;  %v5980_v55 = vld [vmem:[%s6906_s6 + $0x48] sm:$0xff]  }
 0x182   :  { %v1560_v16 = vadd.f32 %v1559_v63, %v327_v10  ;;  %v5981_v56 = vld [vmem:[%s6906_s6 + $0x8] sm:$0xff]  }
 0x183   :  { %v1704_v60 = vpack.c.bf16 %v1700_v58, %v1696_v57  ;;  %v1561_v1 = vpop.f32.mrf.mxu1  ;;  %v5982_v57 = vld [vmem:[%s6906_s6 + $0x40] sm:$0xff]  }
 0x184   :  { %v1562_v17 = vadd.f32 %v1561_v1, %v323_v12  ;;  %v5983_v58 = vld [vmem:[%s6906_s6] sm:$0xff]  }
 0x185   :  { %2135 = vmatprep.mubr.bf16.mxu0 %v1704_v60  ;;  %v1563_v3 = vpop.f32.mrf.mxu1 }
 0x186   :  { %2136 = vmatmul.mubr.bf16.vlgmr.msra.gmra.mxu0 %v1703_v61  ;;  %v1564_v21 = vadd.f32 %v1563_v3, %v327_v10  ;;  %v1771_v61 = vld [vmem:[%s6905_s5] sm:$0x3] }
 0x187   :  { %5484 = vmatpush3.bf16.msra.mxu0 %v5969_v34  ;;  %v1780_v63 = vrot.slane %v1771_v61, %v6733_v26  ;;  %v1776_v1 = vrot.slane %v1771_v61, %v6736_v27  ;;  %v6581_v34 = vmov 1   ;;  %v6016_v61 = vld [vmem:[#allocation7 + $0x44] ss:$16 sps:$4 sm:$0xff]  }
 0x188   :  { %5485 = vmatprep.subr.bf16.mxu0 %v5970_v38  ;;  %5566 = vset.pattern.permute.xlu0 %v6581_v34 }
 0x18b   :  { %5486 = vmatpush3.bf16.msra.mxu0 %v5971_v43  ;;  %v5992_v43 = vld [vmem:[#allocation7 + $0xc4] ss:$16 sps:$4 sm:$0xff]  }
 0x18c   :  { %5487 = vmatprep.subr.bf16.mxu0 %v5972_v45 }
 0x18f   :  { %5488 = vmatpush3.bf16.msra.mxu0 %v5973_v47  ;;  %v5993_v47 = vld [vmem:[#allocation7 + $0xc8] ss:$16 sps:$4 sm:$0xff]  }
 0x190   :  { %5489 = vmatprep.subr.bf16.mxu0 %v5974_v48  ;;  %v5998_v48 = vld [vmem:[#allocation7 + $0xa4] ss:$16 sps:$4 sm:$0xff]  }
 0x193   :  { %5490 = vmatpush3.bf16.msra.mxu0 %v5975_v49  ;;  %v6001_v49 = vld [vmem:[#allocation7 + $0xac] ss:$16 sps:$4 sm:$0xff]  }
 0x194   :  { %5491 = vmatprep.subr.bf16.mxu0 %v5976_v50  ;;  %v5996_v50 = vld [vmem:[#allocation7 + $0xa0] ss:$16 sps:$4 sm:$0xff]  }
 0x197   :  { %5492 = vmatpush3.bf16.msra.mxu0 %v5977_v51  ;;  %v5999_v51 = vld [vmem:[#allocation7 + $0xa8] ss:$16 sps:$4 sm:$0xff]  }
 0x198   :  { %5493 = vmatprep.subr.bf16.mxu0 %v5978_v53  ;;  %v6004_v53 = vld [vmem:[#allocation7 + $0x84] ss:$16 sps:$4 sm:$0xff]  }
 0x19b   :  { %5494 = vmatpush3.bf16.msra.mxu0 %v5979_v54  ;;  %v6007_v54 = vld [vmem:[#allocation7 + $0x8c] ss:$16 sps:$4 sm:$0xff]  }
 0x19c   :  { %5495 = vmatprep.subr.bf16.mxu0 %v5980_v55  ;;  %v6002_v55 = vld [vmem:[#allocation7 + $0x80] ss:$16 sps:$4 sm:$0xff]  }
 0x19f   :  { %5496 = vmatpush3.bf16.msra.mxu0 %v5981_v56  ;;  %v6005_v56 = vld [vmem:[#allocation7 + $0x88] ss:$16 sps:$4 sm:$0xff]  }
 0x1a0   :  { %5497 = vmatprep.subr.bf16.mxu0 %v5982_v57  ;;  %v6010_v57 = vld [vmem:[#allocation7 + $0x64] ss:$16 sps:$4 sm:$0xff]  }
 0x1a3   :  { %5498 = vmatpush3.bf16.msra.mxu0 %v5983_v58  ;;  %v6013_v58 = vld [vmem:[#allocation7 + $0x6c] ss:$16 sps:$4 sm:$0xff]  }
 0x1b6   :  { %v1600_v2 = vpop.f32.mrf.mxu0 }
 0x1b7   :  { %v1601_v25 = vadd.f32 %v1600_v2, %v1558_v18 }
 0x1b8   :  { %v1602_v7 = vpop.f32.mrf.mxu0 }
 0x1b9   :  { %v1603_v22 = vadd.f32 %v1602_v7, %v1560_v16 }
 0x1ba   :  { %v1604_v13 = vpop.f32.mrf.mxu0 }
 0x1bb   :  { %v1605_v24 = vadd.f32 %v1604_v13, %v1562_v17 }
 0x1bc   :  { %v1606_v19 = vpop.f32.mrf.mxu0 }
 0x1bd   :  { %v1607_v52 = vadd.f32 %v1606_v19, %v1564_v21 }
 0x1bf   :  { %v1643_v8 = vpop.f32.mrf.mxu1 }
 0x1c0   :  { %v1644_v11 = vadd.f32 %v1643_v8, %v1601_v25 }
 0x1c1   :  { %v1645_v9 = vpop.f32.mrf.mxu1 }
 0x1c2   :  { %v1646_v30 = vadd.f32 %v1645_v9, %v1603_v22 }
 0x1c3   :  { %v1647_v14 = vpop.f32.mrf.mxu1 }
 0x1c4   :  { %v1648_v31 = vadd.f32 %v1647_v14, %v1605_v24 }
 0x1c5   :  { %v1649_v15 = vpop.f32.mrf.mxu1 }
 0x1c6   :  { %v1650_v0 = vadd.f32 %v1649_v15, %v1607_v52  ;;  %v5164_v52 = vld [vmem:[%s6907_s7] ss:$0 sm:$0xff] }
 0x1c7   :  { %v1686_v20 = vpop.f32.mrf.mxu1 }
 0x1c8   :  { %v1687_v33 = vadd.f32 %v1686_v20, %v1644_v11 }
 0x1c9   :  { %v1688_v28 = vpop.f32.mrf.mxu1 }
 0x1ca   :  { %v1689_v29 = vadd.f32 %v1688_v28, %v1646_v30  ;;  %v1697_v42 = vmax.f32 %v1687_v33, 0.0 }
 0x1cb   :  { %v1690_v6 = vpop.f32.mrf.mxu1 }
 0x1cc   :  { %v1691_v32 = vadd.f32 %v1690_v6, %v1648_v31  ;;  %v1698_v40 = vmax.f32 %v1689_v29, 0.0 }
 0x1cd   :  { %v1692_v35 = vpop.f32.mrf.mxu1 }
 0x1ce   :  { %v1693_v36 = vadd.f32 %v1692_v35, %v1650_v0  ;;  %v1701_v39 = vmax.f32 %v1691_v32, 0.0 }
 0x1d0   :  { %v1702_v41 = vmax.f32 %v1693_v36, 0.0  ;;  %v1705_v46 = vpack.c.bf16 %v1701_v39, %v1697_v42  ;;  %v5984_v39 = vld [vmem:[#allocation7 + $0xe0] ss:$16 sps:$4 sm:$0xff]   ;;  %v5989_v42 = vld [vmem:[#allocation7 + $0xec] ss:$16 sps:$4 sm:$0xff]  }
 0x1d1   :  { %2931 = vmatprep.subr.bf16.mxu0 %v5989_v42 }
 0x1d2   :  { %v1706_v44 = vpack.c.bf16 %v1702_v41, %v1698_v40  ;;  %v5986_v40 = vld [vmem:[#allocation7 + $0xe4] ss:$16 sps:$4 sm:$0xff]   ;;  %v5987_v41 = vld [vmem:[#allocation7 + $0xe8] ss:$16 sps:$4 sm:$0xff]  }
 0x1d3   :  { %2888 = vmatprep.subr.bf16.mxu1 %v5986_v40  ;;  %v6056_v40 = vld [vmem:[#allocation7 + $0x160] ss:$16 sps:$4 sm:$0xff]  }
 0x1d4   :  { %2178 = vmatprep.mubr.bf16.mxu1 %v1706_v44  ;;  %v5995_v44 = vld [vmem:[#allocation7 + $0xcc] ss:$16 sps:$4 sm:$0xff]  }
 0x1d5   :  { %2179 = vmatmul.mubr.bf16.vlgmr.msra.gmra.mxu1 %v1705_v46  ;;  %v5990_v46 = vld [vmem:[#allocation7 + $0xc0] ss:$16 sps:$4 sm:$0xff]  }
 0x1d6   :  { %2889 = vmatpush1.bf16.msra.mxu1 %v5984_v39 }
 0x1d7   :  { %2890 = vmatprep.subr.bf16.mxu1 %v5992_v43 }
 0x1da   :  { %2891 = vmatpush1.bf16.msra.mxu1 %v5990_v46  ;;  %v6065_v46 = vld [vmem:[#allocation7 + $0x148] ss:$16 sps:$4 sm:$0xff]  }
 0x1db   :  { %2892 = vmatprep.subr.bf16.mxu1 %v5998_v48  ;;  %v6073_v48 = vld [vmem:[#allocation7 + $0x12c] ss:$16 sps:$4 sm:$0xff]  }
 0x1de   :  { %2893 = vmatpush1.bf16.msra.mxu1 %v5996_v50  ;;  %v6071_v50 = vld [vmem:[#allocation7 + $0x128] ss:$16 sps:$4 sm:$0xff]  }
 0x1df   :  { %2894 = vmatprep.subr.bf16.mxu1 %v6004_v53  ;;  %v6074_v53 = vld [vmem:[#allocation7 + $0x100] ss:$16 sps:$4 sm:$0xff]  }
 0x1e2   :  { %2895 = vmatpush1.bf16.msra.mxu1 %v6002_v55  ;;  %v6082_v55 = vld [vmem:[#allocation8 + $0x18c] ss:$28 sps:$4 sm:$0xff]  }
 0x1e3   :  { %2896 = vmatprep.subr.bf16.mxu1 %v6010_v57 }
 0x246   :  { %v2137_v59 = vpop.f32.mrf.mxu0 }
 0x247   :  { %v2138_v10 = vadd.f32 %v2137_v59, %v1776_v1  ;;  %v6008_v59 = vld [vmem:[#allocation7 + $0x60] ss:$16 sps:$4 sm:$0xff]  }
 0x248   :  { %v2139_v60 = vpop.f32.mrf.mxu0  ;;  %2897 = vmatpush1.bf16.msra.mxu1 %v6008_v59 }
 0x249   :  { %v2140_v8 = vadd.f32 %v2139_v60, %v1780_v63  ;;  %v6011_v60 = vld [vmem:[#allocation7 + $0x68] ss:$16 sps:$4 sm:$0xff]   ;;  %2898 = vmatprep.subr.bf16.mxu1 %v6016_v61 }
 0x24a   :  { %v2141_v62 = vpop.f32.mrf.mxu0 }
 0x24b   :  { %v2142_v9 = vadd.f32 %v2141_v62, %v1776_v1  ;;  %v6019_v62 = vld [vmem:[#allocation7 + $0x4c] ss:$16 sps:$4 sm:$0xff]   ;;  %v6017_v1 = vld [vmem:[#allocation7 + $0x48] ss:$16 sps:$4 sm:$0xff]  }
 0x24c   :  { %v2143_v3 = vpop.f32.mrf.mxu0 }
 0x24d   :  { %v2144_v13 = vadd.f32 %v2143_v3, %v1780_v63  ;;  %v6014_v63 = vld [vmem:[#allocation7 + $0x40] ss:$16 sps:$4 sm:$0xff]   ;;  %v6025_v3 = vld [vmem:[#allocation7 + $0x2c] ss:$16 sps:$4 sm:$0xff]  }
 0x24e   :  { %2899 = vmatpush1.bf16.msra.mxu1 %v6014_v63 }
 0x295   :  { %v2180_v2 = vpop.f32.mrf.mxu1 }
 0x296   :  { %v2181_v16 = vadd.f32 %v2180_v2, %v2138_v10  ;;  %v6022_v2 = vld [vmem:[#allocation7 + $0x24] ss:$16 sps:$4 sm:$0xff]   ;;  %v6031_v10 = vld [vmem:[#allocation7 + $0xc] ss:$16 sps:$4 sm:$0xff]  }
 0x297   :  { %v2182_v7 = vpop.f32.mrf.mxu1  ;;  %2900 = vmatprep.subr.bf16.mxu1 %v6022_v2 }
 0x298   :  { %v2183_v14 = vadd.f32 %v2182_v7, %v2140_v8  ;;  %v2189_v22 = vmax.f32 %v2181_v16, 0.0  ;;  %v6020_v7 = vld [vmem:[#allocation7 + $0x20] ss:$16 sps:$4 sm:$0xff]   ;;  %v6023_v8 = vld [vmem:[#allocation7 + $0x28] ss:$16 sps:$4 sm:$0xff]  }
 0x299   :  { %v2184_v12 = vpop.f32.mrf.mxu1  ;;  %2901 = vmatpush1.bf16.msra.mxu1 %v6020_v7  ;;  %v6032_v16 = vld [vmem:[#allocation7 + $0x1e0] ss:$16 sps:$4 sm:$0xff]  }
 0x29a   :  { %v2185_v15 = vadd.f32 %v2184_v12, %v2142_v9  ;;  %v2190_v20 = vmax.f32 %v2183_v14, 0.0  ;;  %v6028_v9 = vld [vmem:[#allocation7 + $0x4] ss:$16 sps:$4 sm:$0xff]   ;;  %v6026_v12 = vld [vmem:[#allocation7] ss:$16 sps:$4 sm:$0xff]  }
 0x29b   :  { %v2186_v17 = vpop.f32.mrf.mxu1  ;;  %2902 = vmatprep.subr.bf16.mxu1 %v6028_v9  ;;  %v6034_v14 = vld [vmem:[#allocation7 + $0x1e4] ss:$16 sps:$4 sm:$0xff]  }
 0x29c   :  { %v2187_v18 = vadd.f32 %v2186_v17, %v2144_v13  ;;  %v2191_v19 = vmax.f32 %v2185_v15, 0.0  ;;  %v6029_v13 = vld [vmem:[#allocation7 + $0x8] ss:$16 sps:$4 sm:$0xff]   ;;  %v6037_v15 = vld [vmem:[#allocation7 + $0x1ec] ss:$16 sps:$4 sm:$0xff]  }
 0x29d   :  { %2903 = vmatpush1.bf16.msra.mxu1 %v6026_v12  ;;  %v6035_v17 = vld [vmem:[#allocation7 + $0x1e8] ss:$16 sps:$4 sm:$0xff]  }
 0x29e   :  { %v2192_v21 = vmax.f32 %v2187_v18, 0.0  ;;  %v2193_v25 = vpack.c.bf16 %v2191_v19, %v2189_v22  ;;  %2904 = vmatprep.subr.bf16.mxu1 %v6034_v14  ;;  %v6040_v18 = vld [vmem:[#allocation7 + $0x1c4] ss:$16 sps:$4 sm:$0xff]   ;;  %v6043_v19 = vld [vmem:[#allocation7 + $0x1cc] ss:$16 sps:$4 sm:$0xff]  }
 0x29f   :  { %v6046_v22 = vld [vmem:[#allocation7 + $0x1a4] ss:$16 sps:$4 sm:$0xff]   ;;  %v2460_v14 = vld [vmem:[%s6909_s9] sm:$0x3] }
 0x2a0   :  { %v2194_v24 = vpack.c.bf16 %v2192_v21, %v2190_v20  ;;  %v6038_v20 = vld [vmem:[#allocation7 + $0x1c0] ss:$16 sps:$4 sm:$0xff]   ;;  %v6041_v21 = vld [vmem:[#allocation7 + $0x1c8] ss:$16 sps:$4 sm:$0xff]  }
 0x2a1   :  { %2905 = vmatpush2.bf16.msra.mxu1 %v6032_v16  ;;  %v2469_v16 = vrot.slane %v2460_v14, %v6733_v26 }
 0x2a2   :  { %2362 = vmatprep.mubr.bf16.mxu0 %v2194_v24  ;;  %2906 = vmatprep.subr.bf16.mxu1 %v6040_v18  ;;  %v6049_v24 = vld [vmem:[#allocation7 + $0x1ac] ss:$16 sps:$4 sm:$0xff]  }
 0x2a3   :  { %2363 = vmatmul.mubr.bf16.vlgmr.msra.gmra.mxu0 %v2193_v25  ;;  %v6044_v25 = vld [vmem:[#allocation7 + $0x1a0] ss:$16 sps:$4 sm:$0xff]  }
 0x2a4   :  { %2932 = vmatpush1.bf16.msra.mxu0 %v5987_v41  ;;  %v6059_v41 = vld [vmem:[#allocation7 + $0x168] ss:$16 sps:$4 sm:$0xff]  }
 0x2a5   :  { %2933 = vmatprep.subr.bf16.mxu0 %v5995_v44  ;;  %2907 = vmatpush2.bf16.msra.mxu1 %v6038_v20  ;;  %v6062_v44 = vld [vmem:[#allocation7 + $0x140] ss:$16 sps:$4 sm:$0xff]  }
 0x2a6   :  { %2908 = vmatprep.subr.bf16.mxu1 %v6046_v22 }
 0x2a8   :  { %2934 = vmatpush1.bf16.msra.mxu0 %v5993_v47  ;;  %v6067_v47 = vld [vmem:[#allocation7 + $0x14c] ss:$16 sps:$4 sm:$0xff]  }
 0x2a9   :  { %2935 = vmatprep.subr.bf16.mxu0 %v6001_v49  ;;  %2909 = vmatpush2.bf16.msra.mxu1 %v6044_v25  ;;  %v6068_v49 = vld [vmem:[#allocation7 + $0x120] ss:$16 sps:$4 sm:$0xff]  }
 0x2ac   :  { %2936 = vmatpush1.bf16.msra.mxu0 %v5999_v51  ;;  %v6079_v51 = vld [vmem:[#allocation7 + $0x10c] ss:$16 sps:$4 sm:$0xff]  }
 0x2ad   :  { %2937 = vmatprep.subr.bf16.mxu0 %v6007_v54  ;;  %v6077_v54 = vld [vmem:[#allocation7 + $0x108] ss:$16 sps:$4 sm:$0xff]  }
 0x2b0   :  { %2938 = vmatpush1.bf16.msra.mxu0 %v6005_v56  ;;  %v6085_v56 = vld [vmem:[#allocation8 + $0x50c] ss:$28 sps:$4 sm:$0xff]  }
 0x2b1   :  { %2939 = vmatprep.subr.bf16.mxu0 %v6013_v58 }
 0x2b4   :  { %2940 = vmatpush1.bf16.msra.mxu0 %v6011_v60 }
 0x2b5   :  { %2941 = vmatprep.subr.bf16.mxu0 %v6019_v62 }
 0x2b8   :  { %2942 = vmatpush1.bf16.msra.mxu0 %v6017_v1 }
 0x2b9   :  { %2943 = vmatprep.subr.bf16.mxu0 %v6025_v3 }
 0x2bc   :  { %2944 = vmatpush1.bf16.msra.mxu0 %v6023_v8 }
 0x2bd   :  { %2945 = vmatprep.subr.bf16.mxu0 %v6031_v10 }
 0x2c0   :  { %2946 = vmatpush1.bf16.msra.mxu0 %v6029_v13 }
 0x2c1   :  { %2947 = vmatprep.subr.bf16.mxu0 %v6037_v15  ;;  %v2465_v15 = vrot.slane %v2460_v14, %v6736_v27  ;;  %v6137_v14 = vld [vmem:[#allocation8 + $0x690] ss:$28 sps:$4 sm:$0xff]  }
 0x2c4   :  { %2948 = vmatpush2.bf16.msra.mxu0 %v6035_v17 }
 0x2c5   :  { %2949 = vmatprep.subr.bf16.mxu0 %v6043_v19 }
 0x2c8   :  { %2950 = vmatpush2.bf16.msra.mxu0 %v6041_v21 }
 0x2c9   :  { %2951 = vmatprep.subr.bf16.mxu0 %v6049_v24 }
 0x363   :  { %v5499_v28 = vpop.f32.mrf.mxu0 }
 0x365   :  { %v5500_v30 = vpop.f32.mrf.mxu0 }
 0x366   :  { %v5501_v31 = vadd.f32 %v5500_v30, %v5499_v28  ;;  %v6047_v28 = vld [vmem:[#allocation7 + $0x1a8] ss:$16 sps:$4 sm:$0xff]   ;;  %v6052_v30 = vld [vmem:[#allocation7 + $0x184] ss:$16 sps:$4 sm:$0xff]  }
 0x367   :  { %v5502_v11 = vpop.f32.mrf.mxu0  ;;  %2952 = vmatpush2.bf16.msra.mxu0 %v6047_v28  ;;  %2910 = vmatprep.subr.bf16.mxu1 %v6052_v30 }
 0x368   :  { %v6807_v6 = vadd.f32 %v5501_v31, %v5164_v52  ;;  %v6055_v31 = vld [vmem:[#allocation7 + $0x18c] ss:$16 sps:$4 sm:$0xff]  }
 0x369   :  { %v5503_v0 = vpop.f32.mrf.mxu0  ;;  %2953 = vmatprep.subr.bf16.mxu0 %v6055_v31 }
 0x36a   :  { %v2371_v29 = vmul.f32 0.5, %v6807_v6  ;;  %4870 = vst.msk [vmem:[%s6915_s15] sm:$0xff] %vm4869_vm1, %v6807_v6  ;;  %v5504_v32 = vadd.f32 %v5503_v0, %v5502_v11  ;;  %v6050_v0 = vld [vmem:[#allocation7 + $0x180] ss:$16 sps:$4 sm:$0xff]  }
 0x36b   :  { %2911 = vmatpush2.bf16.msra.mxu1 %v6050_v0 }
 0x36c   :  { %v2373_v33 = vmul.f32 1.442695, %v2371_v29  ;;  %v6814_v35 = vadd.f32 %v5504_v32, %v5164_v52  ;;  %v2377_v52 = vld [vmem:[%s6901_s1] sm:$0xff]  ;;  %v6053_v29 = vld [vmem:[#allocation7 + $0x188] ss:$16 sps:$4 sm:$0xff]  }
 0x36d   :  { %2954 = vmatpush2.bf16.msra.mxu0 %v6053_v29 }
 0x36e   :  { %6400 = vpow2.f32 %v2373_v33  ;;  %v2372_v36 = vmul.f32 0.5, %v6814_v35  ;;  %4871 = vst.msk [vmem:[%s6915_s15 + $0x8] sm:$0xff] %vm4869_vm1, %v6814_v35  ;;  %v2378_v33 = vld [vmem:[%s6901_s1 + $0x8] sm:$0xff] }
 0x370   :  { %v2375_v37 = vmul.f32 1.442695, %v2372_v36 }
 0x372   :  { %6402 = vpow2.f32 %v2375_v37  ;;  %v6058_v37 = vld [vmem:[#allocation7 + $0x164] ss:$16 sps:$4 sm:$0xff]  }
 0x373   :  { %2912 = vmatprep.subr.bf16.mxu1 %v6058_v37 }
 0x374   :  { %2913 = vmatpush2.bf16.msra.mxu1 %v6056_v40  ;;  %v6088_v40 = vld [vmem:[#allocation8 + $0x154] ss:$28 sps:$4 sm:$0xff]  }
 0x37b   :  { %v6401_v38 = vpop.eup %6400 }
 0x37c   :  { %2381 = vrot.lane.b32.xlu0 %v6401_v38, %s6582_s2  ;;  %v6061_v38 = vld [vmem:[#allocation7 + $0x16c] ss:$16 sps:$4 sm:$0xff]  }
 0x37d   :  { %2955 = vmatprep.subr.bf16.mxu0 %v6061_v38  ;;  %v6080_v38 = vld [vmem:[#allocation8 + $0x188] ss:$28 sps:$4 sm:$0xff]  }
 0x37e   :  { %2956 = vmatpush2.bf16.msra.mxu0 %v6059_v41  ;;  %v6091_v41 = vld [vmem:[#allocation8 + $0x4d4] ss:$28 sps:$4 sm:$0xff]  }
 0x37f   :  { %v6403_v45 = vpop.eup %6402  ;;  %2957 = vmatprep.subr.bf16.mxu0 %v6067_v47  ;;  %v6095_v47 = vld [vmem:[#allocation8 + $0x498] ss:$28 sps:$4 sm:$0xff]  }
 0x380   :  { %2383 = vrot.lane.b32.xlu0 %v6403_v45, %s6582_s2  ;;  %v6064_v45 = vld [vmem:[#allocation7 + $0x144] ss:$16 sps:$4 sm:$0xff]  }
 0x381   :  { %2914 = vmatprep.subr.bf16.mxu1 %v6064_v45  ;;  %v6097_v45 = vld [vmem:[#allocation8 + $0x49c] ss:$28 sps:$4 sm:$0xff]  }
 0x382   :  { %2915 = vmatpush2.bf16.msra.mxu1 %v6062_v44  ;;  %2958 = vmatpush2.bf16.msra.mxu0 %v6065_v46  ;;  %v6094_v44 = vld [vmem:[#allocation8 + $0x11c] ss:$28 sps:$4 sm:$0xff]  }
 0x383   :  { %2959 = vmatprep.subr.bf16.mxu0 %v6073_v48  ;;  %v6092_v46 = vld [vmem:[#allocation8 + $0x118] ss:$28 sps:$4 sm:$0xff]   ;;  %v6103_v48 = vld [vmem:[#allocation8 + $0x464] ss:$28 sps:$4 sm:$0xff]  }
 0x386   :  { %2960 = vmatpush2.bf16.msra.mxu0 %v6071_v50  ;;  %v6101_v50 = vld [vmem:[#allocation8 + $0x460] ss:$28 sps:$4 sm:$0xff]  }
 0x387   :  { %2961 = vmatprep.subr.bf16.mxu0 %v6079_v51  ;;  %v6109_v51 = vld [vmem:[#allocation8 + $0x42c] ss:$28 sps:$4 sm:$0xff]  }
 0x38a   :  { %2962 = vmatpush2.bf16.msra.mxu0 %v6077_v54  ;;  %v6107_v54 = vld [vmem:[#allocation8 + $0x428] ss:$28 sps:$4 sm:$0xff]  }
 0x38b   :  { %4474 = vmatprep.subr.bf16.mxu0 %v6085_v56  ;;  %v6115_v56 = vld [vmem:[#allocation8 + $0x3f4] ss:$28 sps:$4 sm:$0xff]  }
 0x3ee   :  { %v2382_v11 = vpop.permute.xlu0 %2381 }
 0x3ef   :  { %v2387_v32 = vmul.f32 %v2382_v11, %v2377_v52 }
 0x3f1   :  { %v2389_v36 = vadd.f32 %v2387_v32, %v6807_v6  ;;  %v6070_v6 = vld [vmem:[#allocation7 + $0x124] ss:$16 sps:$4 sm:$0xff]  }
 0x3f2   :  { %v2384_v39 = vpop.permute.xlu0 %2383  ;;  %2916 = vmatprep.subr.bf16.mxu1 %v6070_v6  ;;  %v6100_v6 = vld [vmem:[#allocation8 + $0xe4] ss:$28 sps:$4 sm:$0xff]  }
 0x3f3   :  { %v2388_v42 = vmul.f32 %v2384_v39, %v2378_v33  ;;  %2427 = vperm.xlu0 %5566, %v2389_v36   ;;  %2395 = vperm.xlu1 %5565, %v2389_v36   ;;  %v6083_v39 = vld [vmem:[#allocation8 + $0x508] ss:$28 sps:$4 sm:$0xff]  }
 0x3f4   :  { %2917 = vmatpush2.bf16.msra.mxu1 %v6068_v49  ;;  %v6098_v49 = vld [vmem:[#allocation8 + $0xe0] ss:$28 sps:$4 sm:$0xff]  }
 0x3f5   :  { %v2390_v43 = vadd.f32 %v2388_v42, %v6814_v35  ;;  %v6076_v35 = vld [vmem:[#allocation7 + $0x104] ss:$16 sps:$4 sm:$0xff]   ;;  %v6086_v42 = vld [vmem:[#allocation8 + $0x150] ss:$28 sps:$4 sm:$0xff]  }
 0x3f6   :  { %2918 = vmatprep.subr.bf16.mxu1 %v6076_v35  ;;  %v6106_v35 = vld [vmem:[#allocation8 + $0xac] ss:$28 sps:$4 sm:$0xff]  }
 0x3f7   :  { %2400 = vperm.xlu1 %5565, %v2390_v43  }
 0x3f8   :  { %2919 = vmatpush2.bf16.msra.mxu1 %v6074_v53  ;;  %v6104_v53 = vld [vmem:[#allocation8 + $0xa8] ss:$28 sps:$4 sm:$0xff]  }
 0x3f9   :  { %4431 = vmatprep.subr.bf16.mxu1 %v6082_v55  ;;  %v6112_v55 = vld [vmem:[#allocation8 + $0x74] ss:$28 sps:$4 sm:$0xff]  }
 0x3fb   :  { %5567 = vset.pattern.permute.xlu1 %v6581_v34  ;;  %v2391_v34 = vld [vmem:[%s6908_s8] sm:$0x3] }
 0x3fc   :  { %2431 = vperm.xlu1 %5567, %v2390_v43   ;;  %v2392_v57 = vunpack.c.l.bf16 %v2391_v34  ;;  %v6089_v43 = vld [vmem:[#allocation8 + $0x4d0] ss:$28 sps:$4 sm:$0xff]  }
 0x3fd   :  { %v6110_v34 = vld [vmem:[#allocation8 + $0x70] ss:$28 sps:$4 sm:$0xff]  }
 0x3fe   :  { %v2407_v58 = vrot.slane %v2392_v57, %v6736_v27  ;;  %v2411_v59 = vrot.slane %v2392_v57, %v6747_v5  ;;  %v2437_v60 = vrot.slane %v2392_v57, %v6733_v26  ;;  %v2441_v61 = vrot.slane %v2392_v57, %v6744_v4  ;;  %v6113_v57 = vld [vmem:[#allocation8 + $0x3f0] ss:$28 sps:$4 sm:$0xff]  }
 0x400   :  { %v2417_v62 = vrot.slane %v2407_v58, %v6736_v27  ;;  %v2421_v63 = vrot.slane %v2411_v59, %v6736_v27  ;;  %v2447_v2 = vrot.slane %v2437_v60, %v6733_v26  ;;  %v2451_v3 = vrot.slane %v2441_v61, %v6733_v26  ;;  %v6118_v58 = vld [vmem:[#allocation8 + $0x3c] ss:$28 sps:$4 sm:$0xff]  }
 0x401   :  { %v6121_v59 = vld [vmem:[#allocation8 + $0x3bc] ss:$28 sps:$4 sm:$0xff]  }
 0x402   :  { %v6116_v60 = vld [vmem:[#allocation8 + $0x38] ss:$28 sps:$4 sm:$0xff]  }
 0x403   :  { %v6119_v61 = vld [vmem:[#allocation8 + $0x3b8] ss:$28 sps:$4 sm:$0xff]  }
 0x46e   :  { %v2396_v1 = vpop.permute.xlu1 %2395  ;;  %v2428_v7 = vpop.permute.xlu0 %2427 }
 0x46f   :  { %v2422_v8 = vmul.f32 %v2417_v62, %v2396_v1  ;;  %v2423_v9 = vmul.f32 %v2421_v63, %v2396_v1  ;;  %v2452_v10 = vmul.f32 %v2447_v2, %v2428_v7  ;;  %v2453_v12 = vmul.f32 %v2451_v3, %v2428_v7  ;;  %v6122_v1 = vld [vmem:[#allocation8] ss:$28 sps:$4 sm:$0xff]   ;;  %v6133_v7 = vld [vmem:[#allocation8 + $0x6cc] ss:$28 sps:$4 sm:$0xff]  }
 0x471   :  { %v2456_v17 = vadd.f32 %v2452_v10, %v2422_v8  ;;  %v2457_v18 = vadd.f32 %v2453_v12, %v2423_v9  ;;  %v6128_v8 = vld [vmem:[#allocation8 + $0x348] ss:$28 sps:$4 sm:$0xff]   ;;  %v6136_v10 = vld [vmem:[#allocation8 + $0x314] ss:$28 sps:$4 sm:$0xff]  }
 0x472   :  { %v2401_v13 = vpop.permute.xlu1 %2400  ;;  %v6131_v9 = vld [vmem:[#allocation8 + $0x6c8] ss:$28 sps:$4 sm:$0xff]   ;;  %v6139_v12 = vld [vmem:[#allocation8 + $0x694] ss:$28 sps:$4 sm:$0xff]  }
 0x473   :  { %v2424_v20 = vmul.f32 %v2417_v62, %v2401_v13  ;;  %v2425_v21 = vmul.f32 %v2421_v63, %v2401_v13  ;;  %v2472_v25 = vadd.f32 %v2465_v15, %v2456_v17  ;;  %v2473_v28 = vadd.f32 %v2469_v16, %v2457_v18  ;;  %v6124_v62 = vld [vmem:[#allocation8 + $0x4] ss:$28 sps:$4 sm:$0xff]   ;;  %v6134_v13 = vld [vmem:[#allocation8 + $0x310] ss:$28 sps:$4 sm:$0xff]   ;;  %v6140_v17 = vld [vmem:[#allocation8 + $0x2d8] ss:$28 sps:$4 sm:$0xff]  }
 0x474   :  { %v6127_v63 = vld [vmem:[#allocation8 + $0x384] ss:$28 sps:$4 sm:$0xff]   ;;  %v6143_v18 = vld [vmem:[#allocation8 + $0x658] ss:$28 sps:$4 sm:$0xff]  }
 0x475   :  { %v2476_v0 = vmax.f32 %v2472_v25, 0.0  ;;  %v2477_v29 = vmax.f32 %v2473_v28, 0.0  ;;  %v6157_v25 = vld [vmem:[#allocation8 + $0x5ec] ss:$28 sps:$4 sm:$0xff]  }
 0x476   :  { %v6152_v28 = vld [vmem:[#allocation8 + $0x268] ss:$28 sps:$4 sm:$0xff]  }
 0x477   :  { %v2432_v19 = vpop.permute.xlu1 %2431 }
 0x478   :  { %v2454_v22 = vmul.f32 %v2447_v2, %v2432_v19  ;;  %v2455_v24 = vmul.f32 %v2451_v3, %v2432_v19  ;;  %v6125_v2 = vld [vmem:[#allocation8 + $0x380] ss:$28 sps:$4 sm:$0xff]   ;;  %v6130_v3 = vld [vmem:[#allocation8 + $0x34c] ss:$28 sps:$4 sm:$0xff]  }
 0x479   :  { %v6148_v19 = vld [vmem:[#allocation8 + $0x2a4] ss:$28 sps:$4 sm:$0xff]  }
 0x47a   :  { %v2458_v52 = vadd.f32 %v2454_v22, %v2424_v20  ;;  %v2459_v30 = vadd.f32 %v2455_v24, %v2425_v21  ;;  %v6151_v20 = vld [vmem:[#allocation8 + $0x624] ss:$28 sps:$4 sm:$0xff]   ;;  %v6154_v24 = vld [vmem:[#allocation8 + $0x26c] ss:$28 sps:$4 sm:$0xff]  }
 0x47b   :  { %v6146_v21 = vld [vmem:[#allocation8 + $0x2a0] ss:$28 sps:$4 sm:$0xff]  }
 0x47c   :  { %v2474_v31 = vadd.f32 %v2465_v15, %v2458_v52  ;;  %v2475_v11 = vadd.f32 %v2469_v16, %v2459_v30  ;;  %v6142_v15 = vld [vmem:[#allocation8 + $0x2dc] ss:$28 sps:$4 sm:$0xff]   ;;  %v6155_v52 = vld [vmem:[#allocation8 + $0x5e8] ss:$28 sps:$4 sm:$0xff]   ;;  %v6160_v30 = vld [vmem:[#allocation8 + $0x234] ss:$28 sps:$4 sm:$0xff]  }
 0x47d   :  { %v6145_v16 = vld [vmem:[#allocation8 + $0x65c] ss:$28 sps:$4 sm:$0xff]  }
 0x47e   :  { %v2478_v32 = vmax.f32 %v2474_v31, 0.0  ;;  %v2479_v33 = vmax.f32 %v2475_v11, 0.0  ;;  %v6149_v22 = vld [vmem:[#allocation8 + $0x620] ss:$28 sps:$4 sm:$0xff]   ;;  %v6163_v31 = vld [vmem:[#allocation8 + $0x5b4] ss:$28 sps:$4 sm:$0xff]  }
 0x47f   :  { %v6158_v11 = vld [vmem:[#allocation8 + $0x230] ss:$28 sps:$4 sm:$0xff]  }
 0x480   :  { %v2480_v36 = vpack.c.bf16 %v2478_v32, %v2476_v0  ;;  %v2481_v37 = vpack.c.bf16 %v2479_v33, %v2477_v29  ;;  %v6161_v0 = vld [vmem:[#allocation8 + $0x5b0] ss:$28 sps:$4 sm:$0xff]   ;;  %v6166_v29 = vld [vmem:[#allocation8 + $0x1fc] ss:$28 sps:$4 sm:$0xff]  }
 0x481   :  { %v6169_v32 = vld [vmem:[#allocation8 + $0x57c] ss:$28 sps:$4 sm:$0xff]  }
 0x482   :  { %2920 = vmatprep.mubr.bf16.mxu1 %v2481_v37  ;;  %2963 = vmatprep.mubr.bf16.mxu0 %v2481_v37  ;;  %v6164_v33 = vld [vmem:[#allocation8 + $0x1f8] ss:$28 sps:$4 sm:$0xff]   ;;  %v6172_v37 = vld [vmem:[#allocation8 + $0x1c4] ss:$28 sps:$4 sm:$0xff]  }
 0x483   :  { %2921 = vmatmul.mubr.bf16.vlgmr.msra.gmra.mxu1 %v2480_v36  ;;  %2964 = vmatmul.mubr.bf16.vlgmr.msra.gmra.mxu0 %v2480_v36  ;;  %v6167_v36 = vld [vmem:[#allocation8 + $0x578] ss:$28 sps:$4 sm:$0xff]  }
 0x484   :  { %4432 = vmatpush1.bf16.msra.mxu1 %v6080_v38  ;;  %4475 = vmatpush1.bf16.msra.mxu0 %v6083_v39  ;;  %v6175_v38 = vld [vmem:[#allocation8 + $0x544] ss:$28 sps:$4 sm:$0xff]  }
 0x485   :  { %4433 = vmatprep.subr.bf16.mxu1 %v6088_v40  ;;  %4476 = vmatprep.subr.bf16.mxu0 %v6091_v41  ;;  %v6170_v39 = vld [vmem:[#allocation8 + $0x1c0] ss:$28 sps:$4 sm:$0xff]   ;;  %v6178_v41 = vld [vmem:[#allocation8 + $0x194] ss:$28 sps:$4 sm:$0xff]  }
 0x486   :  { %v6173_v40 = vld [vmem:[#allocation8 + $0x540] ss:$28 sps:$4 sm:$0xff]  }
 0x488   :  { %4434 = vmatpush1.bf16.msra.mxu1 %v6086_v42  ;;  %4477 = vmatpush1.bf16.msra.mxu0 %v6089_v43  ;;  %v6181_v42 = vld [vmem:[#allocation8 + $0x514] ss:$28 sps:$4 sm:$0xff]   ;;  %v2546_v43 = vld [vmem:[%s6911_s11] sm:$0xf] }
 0x489   :  { %4435 = vmatprep.subr.bf16.mxu1 %v6094_v44  ;;  %4478 = vmatprep.subr.bf16.mxu0 %v6097_v45 }
 0x48c   :  { %4436 = vmatpush1.bf16.msra.mxu1 %v6092_v46  ;;  %4479 = vmatpush1.bf16.msra.mxu0 %v6095_v47  ;;  %v2555_v46 = vrot.slane %v2546_v43, %v6733_v26  ;;  %v2563_v47 = vrot.slane %v2546_v43, %v6744_v4 }
 0x48d   :  { %4437 = vmatprep.subr.bf16.mxu1 %v6100_v6  ;;  %4480 = vmatprep.subr.bf16.mxu0 %v6103_v48  ;;  %v2551_v6 = vrot.slane %v2546_v43, %v6736_v27  ;;  %v2559_v48 = vrot.slane %v2546_v43, %v6747_v5  ;;  %v6220_v43 = vld [vmem:[#allocation8 + $0xc] ss:$28 sps:$4 sm:$0xff]  }
 0x490   :  { %4438 = vmatpush1.bf16.msra.mxu1 %v6098_v49  ;;  %4481 = vmatpush1.bf16.msra.mxu0 %v6101_v50 }
 0x491   :  { %4439 = vmatprep.subr.bf16.mxu1 %v6106_v35  ;;  %4482 = vmatprep.subr.bf16.mxu0 %v6109_v51 }
 0x494   :  { %4440 = vmatpush1.bf16.msra.mxu1 %v6104_v53  ;;  %4483 = vmatpush1.bf16.msra.mxu0 %v6107_v54 }
 0x495   :  { %4441 = vmatprep.subr.bf16.mxu1 %v6112_v55  ;;  %4484 = vmatprep.subr.bf16.mxu0 %v6115_v56 }
 0x498   :  { %4442 = vmatpush1.bf16.msra.mxu1 %v6110_v34  ;;  %4485 = vmatpush1.bf16.msra.mxu0 %v6113_v57 }
 0x499   :  { %4443 = vmatprep.subr.bf16.mxu1 %v6118_v58  ;;  %4486 = vmatprep.subr.bf16.mxu0 %v6121_v59 }
 0x49c   :  { %4444 = vmatpush1.bf16.msra.mxu1 %v6116_v60  ;;  %4487 = vmatpush1.bf16.msra.mxu0 %v6119_v61 }
 0x49d   :  { %4445 = vmatprep.subr.bf16.mxu1 %v6124_v62  ;;  %4488 = vmatprep.subr.bf16.mxu0 %v6127_v63 }
 0x4a0   :  { %4446 = vmatpush1.bf16.msra.mxu1 %v6122_v1  ;;  %4489 = vmatpush1.bf16.msra.mxu0 %v6125_v2 }
 0x4a1   :  { %4447 = vmatprep.subr.bf16.mxu1 %v6130_v3  ;;  %4490 = vmatprep.subr.bf16.mxu0 %v6133_v7 }
 0x4a4   :  { %4448 = vmatpush2.bf16.msra.mxu1 %v6128_v8  ;;  %4491 = vmatpush2.bf16.msra.mxu0 %v6131_v9 }
 0x4a5   :  { %4449 = vmatprep.subr.bf16.mxu1 %v6136_v10  ;;  %4492 = vmatprep.subr.bf16.mxu0 %v6139_v12 }
 0x4a8   :  { %4450 = vmatpush2.bf16.msra.mxu1 %v6134_v13  ;;  %4493 = vmatpush2.bf16.msra.mxu0 %v6137_v14  ;;  %v6176_v13 = vld [vmem:[#allocation8 + $0x190] ss:$28 sps:$4 sm:$0xff]  }
 0x4a9   :  { %4451 = vmatprep.subr.bf16.mxu1 %v6142_v15  ;;  %4494 = vmatprep.subr.bf16.mxu0 %v6145_v16  ;;  %v6179_v14 = vld [vmem:[#allocation8 + $0x510] ss:$28 sps:$4 sm:$0xff]  }
 0x4ac   :  { %4452 = vmatpush2.bf16.msra.mxu1 %v6140_v17  ;;  %4495 = vmatpush2.bf16.msra.mxu0 %v6143_v18  ;;  %v6184_v17 = vld [vmem:[#allocation8 + $0x15c] ss:$28 sps:$4 sm:$0xff]  }
 0x4ad   :  { %4453 = vmatprep.subr.bf16.mxu1 %v6148_v19  ;;  %4496 = vmatprep.subr.bf16.mxu0 %v6151_v20  ;;  %v6187_v18 = vld [vmem:[#allocation8 + $0x4dc] ss:$28 sps:$4 sm:$0xff]  }
 0x4ae   :  { %v6182_v19 = vld [vmem:[#allocation8 + $0x158] ss:$28 sps:$4 sm:$0xff]  }
 0x4af   :  { %v6185_v20 = vld [vmem:[#allocation8 + $0x4d8] ss:$28 sps:$4 sm:$0xff]  }
 0x4b0   :  { %4454 = vmatpush2.bf16.msra.mxu1 %v6146_v21  ;;  %4497 = vmatpush2.bf16.msra.mxu0 %v6149_v22  ;;  %v6190_v21 = vld [vmem:[#allocation8 + $0x124] ss:$28 sps:$4 sm:$0xff]  }
 0x4b1   :  { %4455 = vmatprep.subr.bf16.mxu1 %v6154_v24  ;;  %4498 = vmatprep.subr.bf16.mxu0 %v6157_v25  ;;  %v6193_v22 = vld [vmem:[#allocation8 + $0x4a4] ss:$28 sps:$4 sm:$0xff]  }
 0x4b2   :  { %v6188_v24 = vld [vmem:[#allocation8 + $0x120] ss:$28 sps:$4 sm:$0xff]  }
 0x4b3   :  { %v6191_v25 = vld [vmem:[#allocation8 + $0x4a0] ss:$28 sps:$4 sm:$0xff]  }
 0x4b4   :  { %4456 = vmatpush2.bf16.msra.mxu1 %v6152_v28  ;;  %4499 = vmatpush2.bf16.msra.mxu0 %v6155_v52  ;;  %v6196_v28 = vld [vmem:[#allocation8 + $0xec] ss:$28 sps:$4 sm:$0xff]  }
 0x4b5   :  { %4457 = vmatprep.subr.bf16.mxu1 %v6160_v30  ;;  %4500 = vmatprep.subr.bf16.mxu0 %v6163_v31  ;;  %v6199_v52 = vld [vmem:[#allocation8 + $0x46c] ss:$28 sps:$4 sm:$0xff]  }
 0x4b6   :  { %v6194_v30 = vld [vmem:[#allocation8 + $0xe8] ss:$28 sps:$4 sm:$0xff]  }
 0x4b7   :  { %v6197_v31 = vld [vmem:[#allocation8 + $0x468] ss:$28 sps:$4 sm:$0xff]  }
 0x4b8   :  { %4458 = vmatpush2.bf16.msra.mxu1 %v6158_v11  ;;  %4501 = vmatpush2.bf16.msra.mxu0 %v6161_v0  ;;  %v6202_v11 = vld [vmem:[#allocation8 + $0xb4] ss:$28 sps:$4 sm:$0xff]  }
 0x4b9   :  { %4459 = vmatprep.subr.bf16.mxu1 %v6166_v29  ;;  %4502 = vmatprep.subr.bf16.mxu0 %v6169_v32  ;;  %v6205_v0 = vld [vmem:[#allocation8 + $0x434] ss:$28 sps:$4 sm:$0xff]  }
 0x4ba   :  { %v6200_v29 = vld [vmem:[#allocation8 + $0xb0] ss:$28 sps:$4 sm:$0xff]  }
 0x4bb   :  { %v6203_v32 = vld [vmem:[#allocation8 + $0x430] ss:$28 sps:$4 sm:$0xff]  }
 0x4bc   :  { %4460 = vmatpush2.bf16.msra.mxu1 %v6164_v33  ;;  %4503 = vmatpush2.bf16.msra.mxu0 %v6167_v36  ;;  %v6208_v33 = vld [vmem:[#allocation8 + $0x7c] ss:$28 sps:$4 sm:$0xff]  }
 0x4bd   :  { %4461 = vmatprep.subr.bf16.mxu1 %v6172_v37  ;;  %4504 = vmatprep.subr.bf16.mxu0 %v6175_v38  ;;  %v6211_v36 = vld [vmem:[#allocation8 + $0x3fc] ss:$28 sps:$4 sm:$0xff]  }
 0x4be   :  { %v6206_v37 = vld [vmem:[#allocation8 + $0x78] ss:$28 sps:$4 sm:$0xff]  }
 0x4bf   :  { %v6209_v38 = vld [vmem:[#allocation8 + $0x3f8] ss:$28 sps:$4 sm:$0xff]  }
 0x4c0   :  { %4462 = vmatpush2.bf16.msra.mxu1 %v6170_v39  ;;  %4505 = vmatpush2.bf16.msra.mxu0 %v6173_v40  ;;  %v6214_v39 = vld [vmem:[#allocation8 + $0x44] ss:$28 sps:$4 sm:$0xff]  }
 0x4c1   :  { %4517 = vmatprep.subr.bf16.mxu1 %v6178_v41  ;;  %4560 = vmatprep.subr.bf16.mxu0 %v6181_v42  ;;  %v6217_v40 = vld [vmem:[#allocation8 + $0x3c4] ss:$28 sps:$4 sm:$0xff]  }
 0x4c2   :  { %v6212_v41 = vld [vmem:[#allocation8 + $0x40] ss:$28 sps:$4 sm:$0xff]  }
 0x4c3   :  { %v6215_v42 = vld [vmem:[#allocation8 + $0x3c0] ss:$28 sps:$4 sm:$0xff]  }
 0x543   :  { %v2922_v44 = vpop.f32.mrf.mxu1  ;;  %v2965_v45 = vpop.f32.mrf.mxu0 }
 0x544   :  { %v2923_v34 = vadd.f32 %v2922_v44, %v2551_v6  ;;  %v2966_v57 = vadd.f32 %v2965_v45, %v2559_v48  ;;  %v6223_v44 = vld [vmem:[#allocation8 + $0x38c] ss:$28 sps:$4 sm:$0xff]  }
 0x545   :  { %v2924_v49 = vpop.f32.mrf.mxu1  ;;  %v2967_v50 = vpop.f32.mrf.mxu0  ;;  %v6218_v45 = vld [vmem:[#allocation8 + $0x8] ss:$28 sps:$4 sm:$0xff]  }
 0x546   :  { %v2925_v53 = vadd.f32 %v2924_v49, %v2555_v46  ;;  %v2968_v54 = vadd.f32 %v2967_v50, %v2563_v47  ;;  %v2974_v8 = vmax.f32 %v2923_v34, 0.0  ;;  %v2976_v9 = vmax.f32 %v2966_v57, 0.0  ;;  %v6227_v49 = vld [vmem:[#allocation8 + $0x6d0] ss:$28 sps:$4 sm:$0xff]   ;;  %v6232_v50 = vld [vmem:[#allocation8 + $0x31c] ss:$28 sps:$4 sm:$0xff]  }
 0x547   :  { %v2926_v35 = vpop.f32.mrf.mxu1  ;;  %v2969_v51 = vpop.f32.mrf.mxu0  ;;  %v6239_v34 = vld [vmem:[#allocation8 + $0x660] ss:$28 sps:$4 sm:$0xff]   ;;  %v6244_v57 = vld [vmem:[#allocation8 + $0x2ac] ss:$28 sps:$4 sm:$0xff]  }
 0x548   :  { %v2927_v55 = vadd.f32 %v2926_v35, %v2551_v6  ;;  %v2970_v56 = vadd.f32 %v2969_v51, %v2559_v48  ;;  %v2975_v1 = vmax.f32 %v2925_v53, 0.0  ;;  %v2977_v2 = vmax.f32 %v2968_v54, 0.0  ;;  %v6229_v6 = vld [vmem:[#allocation8 + $0x6d4] ss:$28 sps:$4 sm:$0xff]   ;;  %v6235_v35 = vld [vmem:[#allocation8 + $0x69c] ss:$28 sps:$4 sm:$0xff]  }
 0x549   :  { %v2928_v58 = vpop.f32.mrf.mxu1  ;;  %v2971_v59 = vpop.f32.mrf.mxu0  ;;  %v6224_v48 = vld [vmem:[#allocation8 + $0x350] ss:$28 sps:$4 sm:$0xff]   ;;  %v6230_v51 = vld [vmem:[#allocation8 + $0x318] ss:$28 sps:$4 sm:$0xff]   ;;  %v6238_v54 = vld [vmem:[#allocation8 + $0x2e4] ss:$28 sps:$4 sm:$0xff]  }
 0x54a   :  { %v2929_v60 = vadd.f32 %v2928_v58, %v2555_v46  ;;  %v2972_v61 = vadd.f32 %v2971_v59, %v2563_v47  ;;  %v2978_v62 = vmax.f32 %v2927_v55, 0.0  ;;  %v2980_v63 = vmax.f32 %v2970_v56, 0.0  ;;  %v6221_v46 = vld [vmem:[#allocation8 + $0x388] ss:$28 sps:$4 sm:$0xff]   ;;  %v6226_v47 = vld [vmem:[#allocation8 + $0x354] ss:$28 sps:$4 sm:$0xff]  }
 0x54b   :  { %v6233_v53 = vld [vmem:[#allocation8 + $0x698] ss:$28 sps:$4 sm:$0xff]   ;;  %v6241_v55 = vld [vmem:[#allocation8 + $0x664] ss:$28 sps:$4 sm:$0xff]   ;;  %v6247_v58 = vld [vmem:[#allocation8 + $0x62c] ss:$28 sps:$4 sm:$0xff]  }
 0x54c   :  { %v2979_v3 = vmax.f32 %v2929_v60, 0.0  ;;  %v2981_v7 = vmax.f32 %v2972_v61, 0.0  ;;  %v6858_v15 = vpack.c.bf16 %v2978_v62, %v2974_v8  ;;  %v6860_v16 = vpack.c.bf16 %v2980_v63, %v2976_v9  ;;  %v6236_v56 = vld [vmem:[#allocation8 + $0x2e0] ss:$28 sps:$4 sm:$0xff]   ;;  %v6242_v59 = vld [vmem:[#allocation8 + $0x2a8] ss:$28 sps:$4 sm:$0xff]  }
 0x54d   :  { %v6245_v60 = vld [vmem:[#allocation8 + $0x628] ss:$28 sps:$4 sm:$0xff]   ;;  %v6250_v61 = vld [vmem:[#allocation8 + $0x274] ss:$28 sps:$4 sm:$0xff]  }
 0x54e   :  { %v6854_v10 = vpack.c.bf16 %v2979_v3, %v2975_v1  ;;  %v6856_v12 = vpack.c.bf16 %v2981_v7, %v2977_v2  ;;  %v6253_v62 = vld [vmem:[#allocation8 + $0x5f4] ss:$28 sps:$4 sm:$0xff]   ;;  %v6256_v2 = vld [vmem:[#allocation8 + $0x23c] ss:$28 sps:$4 sm:$0xff]   ;;  %v6262_v9 = vld [vmem:[#allocation8 + $0x204] ss:$28 sps:$4 sm:$0xff]  }
 0x54f   :  { %v6248_v63 = vld [vmem:[#allocation8 + $0x270] ss:$28 sps:$4 sm:$0xff]   ;;  %v6259_v3 = vld [vmem:[#allocation8 + $0x5bc] ss:$28 sps:$4 sm:$0xff]  }
 0x550   :  { %4463 = vmatprep.mubr.bf16.mxu1 %v6854_v10  ;;  %4506 = vmatprep.mubr.bf16.mxu0 %v6856_v12  ;;  %v6251_v1 = vld [vmem:[#allocation8 + $0x5f0] ss:$28 sps:$4 sm:$0xff]   ;;  %v6254_v7 = vld [vmem:[#allocation8 + $0x238] ss:$28 sps:$4 sm:$0xff]  }
 0x551   :  { %4464 = vmatmul.mubr.bf16.vlgmr.msra.gmra.mxu1 %v6858_v15  ;;  %4507 = vmatmul.mubr.bf16.vlgmr.msra.gmra.mxu0 %v6860_v16  ;;  %v6257_v8 = vld [vmem:[#allocation8 + $0x5b8] ss:$28 sps:$4 sm:$0xff]  }
 0x552   :  { %4518 = vmatpush1.bf16.msra.mxu1 %v6176_v13  ;;  %4561 = vmatpush1.bf16.msra.mxu0 %v6179_v14  ;;  %v6265_v13 = vld [vmem:[#allocation8 + $0x584] ss:$28 sps:$4 sm:$0xff]  }
 0x553   :  { %4549 = vmatprep.mubr.bf16.mxu1 %v6854_v10  ;;  %4592 = vmatprep.mubr.bf16.mxu0 %v6856_v12  ;;  %v6260_v14 = vld [vmem:[#allocation8 + $0x200] ss:$28 sps:$4 sm:$0xff]  }
 0x554   :  { %4519 = vmatprep.subr.bf16.mxu1 %v6184_v17  ;;  %4562 = vmatprep.subr.bf16.mxu0 %v6187_v18  ;;  %v6263_v17 = vld [vmem:[#allocation8 + $0x580] ss:$28 sps:$4 sm:$0xff]   ;;  %v6268_v18 = vld [vmem:[#allocation8 + $0x1cc] ss:$28 sps:$4 sm:$0xff]  }
 0x556   :  { %4520 = vmatpush1.bf16.msra.mxu1 %v6182_v19  ;;  %4563 = vmatpush1.bf16.msra.mxu0 %v6185_v20  ;;  %v6271_v19 = vld [vmem:[#allocation8 + $0x54c] ss:$28 sps:$4 sm:$0xff]  }
 0x557   :  { %4521 = vmatprep.subr.bf16.mxu1 %v6190_v21  ;;  %4564 = vmatprep.subr.bf16.mxu0 %v6193_v22  ;;  %v6266_v20 = vld [vmem:[#allocation8 + $0x1c8] ss:$28 sps:$4 sm:$0xff]   ;;  %v6274_v22 = vld [vmem:[#allocation8 + $0x19c] ss:$28 sps:$4 sm:$0xff]  }
 0x558   :  { %v6269_v21 = vld [vmem:[#allocation8 + $0x548] ss:$28 sps:$4 sm:$0xff]  }
 0x55a   :  { %4522 = vmatpush1.bf16.msra.mxu1 %v6188_v24  ;;  %4565 = vmatpush1.bf16.msra.mxu0 %v6191_v25  ;;  %v6277_v24 = vld [vmem:[#allocation8 + $0x51c] ss:$28 sps:$4 sm:$0xff]  }
 0x55b   :  { %4523 = vmatprep.subr.bf16.mxu1 %v6196_v28  ;;  %4566 = vmatprep.subr.bf16.mxu0 %v6199_v52  ;;  %v6272_v25 = vld [vmem:[#allocation8 + $0x198] ss:$28 sps:$4 sm:$0xff]   ;;  %v6280_v52 = vld [vmem:[#allocation8 + $0x164] ss:$28 sps:$4 sm:$0xff]  }
 0x55c   :  { %v6275_v28 = vld [vmem:[#allocation8 + $0x518] ss:$28 sps:$4 sm:$0xff]  }
 0x55e   :  { %4524 = vmatpush1.bf16.msra.mxu1 %v6194_v30  ;;  %4567 = vmatpush1.bf16.msra.mxu0 %v6197_v31  ;;  %v6283_v30 = vld [vmem:[#allocation8 + $0x4e4] ss:$28 sps:$4 sm:$0xff]  }
 0x55f   :  { %4525 = vmatprep.subr.bf16.mxu1 %v6202_v11  ;;  %4568 = vmatprep.subr.bf16.mxu0 %v6205_v0  ;;  %v6278_v31 = vld [vmem:[#allocation8 + $0x160] ss:$28 sps:$4 sm:$0xff]   ;;  %v6286_v0 = vld [vmem:[#allocation8 + $0x12c] ss:$28 sps:$4 sm:$0xff]  }
 0x560   :  { %v6281_v11 = vld [vmem:[#allocation8 + $0x4e0] ss:$28 sps:$4 sm:$0xff]  }
 0x562   :  { %4526 = vmatpush1.bf16.msra.mxu1 %v6200_v29  ;;  %4569 = vmatpush1.bf16.msra.mxu0 %v6203_v32  ;;  %v6289_v29 = vld [vmem:[#allocation8 + $0x4ac] ss:$28 sps:$4 sm:$0xff]  }
 0x563   :  { %4527 = vmatprep.subr.bf16.mxu1 %v6208_v33  ;;  %4570 = vmatprep.subr.bf16.mxu0 %v6211_v36  ;;  %v6284_v32 = vld [vmem:[#allocation8 + $0x128] ss:$28 sps:$4 sm:$0xff]   ;;  %v6292_v36 = vld [vmem:[#allocation8 + $0xf4] ss:$28 sps:$4 sm:$0xff]  }
 0x564   :  { %v6287_v33 = vld [vmem:[#allocation8 + $0x4a8] ss:$28 sps:$4 sm:$0xff]  }
 0x566   :  { %4528 = vmatpush1.bf16.msra.mxu1 %v6206_v37  ;;  %4571 = vmatpush1.bf16.msra.mxu0 %v6209_v38  ;;  %v6295_v37 = vld [vmem:[#allocation8 + $0x474] ss:$28 sps:$4 sm:$0xff]  }
 0x567   :  { %4529 = vmatprep.subr.bf16.mxu1 %v6214_v39  ;;  %4572 = vmatprep.subr.bf16.mxu0 %v6217_v40  ;;  %v6290_v38 = vld [vmem:[#allocation8 + $0xf0] ss:$28 sps:$4 sm:$0xff]   ;;  %v6298_v40 = vld [vmem:[#allocation8 + $0xbc] ss:$28 sps:$4 sm:$0xff]  }
 0x568   :  { %v6293_v39 = vld [vmem:[#allocation8 + $0x470] ss:$28 sps:$4 sm:$0xff]  }
 0x56a   :  { %4530 = vmatpush1.bf16.msra.mxu1 %v6212_v41  ;;  %4573 = vmatpush1.bf16.msra.mxu0 %v6215_v42  ;;  %v6301_v41 = vld [vmem:[#allocation8 + $0x43c] ss:$28 sps:$4 sm:$0xff]  }
 0x56b   :  { %4531 = vmatprep.subr.bf16.mxu1 %v6220_v43  ;;  %4574 = vmatprep.subr.bf16.mxu0 %v6223_v44  ;;  %v6296_v42 = vld [vmem:[#allocation8 + $0xb8] ss:$28 sps:$4 sm:$0xff]   ;;  %v6304_v44 = vld [vmem:[#allocation8 + $0x84] ss:$28 sps:$4 sm:$0xff]  }
 0x56c   :  { %v6299_v43 = vld [vmem:[#allocation8 + $0x438] ss:$28 sps:$4 sm:$0xff]  }
 0x56e   :  { %4532 = vmatpush1.bf16.msra.mxu1 %v6218_v45  ;;  %4575 = vmatpush1.bf16.msra.mxu0 %v6221_v46  ;;  %v6307_v45 = vld [vmem:[#allocation8 + $0x404] ss:$28 sps:$4 sm:$0xff]  }
 0x56f   :  { %4533 = vmatprep.subr.bf16.mxu1 %v6226_v47  ;;  %4576 = vmatprep.subr.bf16.mxu0 %v6229_v6  ;;  %v6302_v46 = vld [vmem:[#allocation8 + $0x80] ss:$28 sps:$4 sm:$0xff]   ;;  %v6310_v6 = vld [vmem:[#allocation8 + $0x4c] ss:$28 sps:$4 sm:$0xff]  }
 0x570   :  { %v6305_v47 = vld [vmem:[#allocation8 + $0x400] ss:$28 sps:$4 sm:$0xff]  }
 0x572   :  { %4534 = vmatpush2.bf16.msra.mxu1 %v6224_v48  ;;  %4577 = vmatpush2.bf16.msra.mxu0 %v6227_v49  ;;  %v6313_v48 = vld [vmem:[#allocation8 + $0x3cc] ss:$28 sps:$4 sm:$0xff]  }
 0x573   :  { %4535 = vmatprep.subr.bf16.mxu1 %v6232_v50  ;;  %4578 = vmatprep.subr.bf16.mxu0 %v6235_v35  ;;  %v6308_v49 = vld [vmem:[#allocation8 + $0x48] ss:$28 sps:$4 sm:$0xff]   ;;  %v6316_v35 = vld [vmem:[#allocation8 + $0x14] ss:$28 sps:$4 sm:$0xff]  }
 0x574   :  { %v6311_v50 = vld [vmem:[#allocation8 + $0x3c8] ss:$28 sps:$4 sm:$0xff]  }
 0x576   :  { %4536 = vmatpush2.bf16.msra.mxu1 %v6230_v51  ;;  %4579 = vmatpush2.bf16.msra.mxu0 %v6233_v53  ;;  %v6319_v51 = vld [vmem:[#allocation8 + $0x394] ss:$28 sps:$4 sm:$0xff]  }
 0x577   :  { %4537 = vmatprep.subr.bf16.mxu1 %v6238_v54  ;;  %4580 = vmatprep.subr.bf16.mxu0 %v6241_v55  ;;  %v6314_v53 = vld [vmem:[#allocation8 + $0x10] ss:$28 sps:$4 sm:$0xff]   ;;  %v6322_v55 = vld [vmem:[#allocation8 + $0x35c] ss:$28 sps:$4 sm:$0xff]  }
 0x578   :  { %v6317_v54 = vld [vmem:[#allocation8 + $0x390] ss:$28 sps:$4 sm:$0xff]  }
 0x57a   :  { %4538 = vmatpush2.bf16.msra.mxu1 %v6236_v56  ;;  %4581 = vmatpush2.bf16.msra.mxu0 %v6239_v34  ;;  %v6325_v56 = vld [vmem:[#allocation8 + $0x6dc] ss:$28 sps:$4 sm:$0xff]  }
 0x57b   :  { %4539 = vmatprep.subr.bf16.mxu1 %v6244_v57  ;;  %4582 = vmatprep.subr.bf16.mxu0 %v6247_v58  ;;  %v6320_v34 = vld [vmem:[#allocation8 + $0x358] ss:$28 sps:$4 sm:$0xff]   ;;  %v6328_v58 = vld [vmem:[#allocation8 + $0x324] ss:$28 sps:$4 sm:$0xff]  }
 0x57c   :  { %v6323_v57 = vld [vmem:[#allocation8 + $0x6d8] ss:$28 sps:$4 sm:$0xff]  }
 0x57e   :  { %4540 = vmatpush2.bf16.msra.mxu1 %v6242_v59  ;;  %4583 = vmatpush2.bf16.msra.mxu0 %v6245_v60  ;;  %v6331_v59 = vld [vmem:[#allocation8 + $0x6a4] ss:$28 sps:$4 sm:$0xff]  }
 0x57f   :  { %4541 = vmatprep.subr.bf16.mxu1 %v6250_v61  ;;  %4584 = vmatprep.subr.bf16.mxu0 %v6253_v62  ;;  %v6326_v60 = vld [vmem:[#allocation8 + $0x320] ss:$28 sps:$4 sm:$0xff]   ;;  %v6334_v62 = vld [vmem:[#allocation8 + $0x2ec] ss:$28 sps:$4 sm:$0xff]  }
 0x580   :  { %v6329_v61 = vld [vmem:[#allocation8 + $0x6a0] ss:$28 sps:$4 sm:$0xff]  }
 0x582   :  { %4542 = vmatpush2.bf16.msra.mxu1 %v6248_v63  ;;  %4585 = vmatpush2.bf16.msra.mxu0 %v6251_v1  ;;  %v6337_v63 = vld [vmem:[#allocation8 + $0x66c] ss:$28 sps:$4 sm:$0xff]  }
 0x583   :  { %4543 = vmatprep.subr.bf16.mxu1 %v6256_v2  ;;  %4586 = vmatprep.subr.bf16.mxu0 %v6259_v3  ;;  %v6332_v1 = vld [vmem:[#allocation8 + $0x2e8] ss:$28 sps:$4 sm:$0xff]   ;;  %v6340_v3 = vld [vmem:[#allocation8 + $0x2b4] ss:$28 sps:$4 sm:$0xff]  }
 0x584   :  { %v6335_v2 = vld [vmem:[#allocation8 + $0x668] ss:$28 sps:$4 sm:$0xff]  }
 0x586   :  { %4544 = vmatpush2.bf16.msra.mxu1 %v6254_v7  ;;  %4587 = vmatpush2.bf16.msra.mxu0 %v6257_v8  ;;  %v6343_v7 = vld [vmem:[#allocation8 + $0x634] ss:$28 sps:$4 sm:$0xff]  }
 0x587   :  { %4545 = vmatprep.subr.bf16.mxu1 %v6262_v9  ;;  %4588 = vmatprep.subr.bf16.mxu0 %v6265_v13  ;;  %v6338_v8 = vld [vmem:[#allocation8 + $0x2b0] ss:$28 sps:$4 sm:$0xff]   ;;  %v6346_v13 = vld [vmem:[#allocation8 + $0x27c] ss:$28 sps:$4 sm:$0xff]  }
 0x588   :  { %v6341_v9 = vld [vmem:[#allocation8 + $0x630] ss:$28 sps:$4 sm:$0xff]  }
 0x58a   :  { %4546 = vmatpush2.bf16.msra.mxu1 %v6260_v14  ;;  %4589 = vmatpush2.bf16.msra.mxu0 %v6263_v17  ;;  %v6349_v14 = vld [vmem:[#allocation8 + $0x5fc] ss:$28 sps:$4 sm:$0xff]  }
 0x58b   :  { %4547 = vmatprep.subr.bf16.mxu1 %v6268_v18  ;;  %4590 = vmatprep.subr.bf16.mxu0 %v6271_v19  ;;  %v6344_v17 = vld [vmem:[#allocation8 + $0x278] ss:$28 sps:$4 sm:$0xff]   ;;  %v6352_v19 = vld [vmem:[#allocation8 + $0x244] ss:$28 sps:$4 sm:$0xff]  }
 0x58c   :  { %v6347_v18 = vld [vmem:[#allocation8 + $0x5f8] ss:$28 sps:$4 sm:$0xff]  }
 0x58e   :  { %4548 = vmatpush2.bf16.msra.mxu1 %v6266_v20  ;;  %4591 = vmatpush2.bf16.msra.mxu0 %v6269_v21  ;;  %v6355_v20 = vld [vmem:[#allocation8 + $0x5c4] ss:$28 sps:$4 sm:$0xff]  }
 0x58f   :  { %4603 = vmatprep.subr.bf16.mxu1 %v6274_v22  ;;  %4646 = vmatprep.subr.bf16.mxu0 %v6277_v24  ;;  %v6350_v21 = vld [vmem:[#allocation8 + $0x240] ss:$28 sps:$4 sm:$0xff]   ;;  %v6358_v24 = vld [vmem:[#allocation8 + $0x20c] ss:$28 sps:$4 sm:$0xff]  }
 0x590   :  { %v6353_v22 = vld [vmem:[#allocation8 + $0x5c0] ss:$28 sps:$4 sm:$0xff]  }
 0x591   :  { %4550 = vmatmul.mubr.bf16.vlgmr.msra.gmra.mxu1 %v6858_v15  ;;  %4593 = vmatmul.mubr.bf16.vlgmr.msra.gmra.mxu0 %v6860_v16 }
 0x592   :  { %4604 = vmatpush1.bf16.msra.mxu1 %v6272_v25  ;;  %4635 = vmatprep.mubr.bf16.mxu1 %v6854_v10  ;;  %v6361_v25 = vld [vmem:[#allocation8 + $0x58c] ss:$28 sps:$4 sm:$0xff]  }
 0x593   :  { %4647 = vmatpush1.bf16.msra.mxu0 %v6275_v28  ;;  %4678 = vmatprep.mubr.bf16.mxu0 %v6856_v12  ;;  %v6356_v28 = vld [vmem:[#allocation8 + $0x208] ss:$28 sps:$4 sm:$0xff]  }
 0x594   :  { %4605 = vmatprep.subr.bf16.mxu1 %v6280_v52  ;;  %4648 = vmatprep.subr.bf16.mxu0 %v6283_v30  ;;  %v6359_v52 = vld [vmem:[#allocation8 + $0x588] ss:$28 sps:$4 sm:$0xff]   ;;  %v6364_v30 = vld [vmem:[#allocation8 + $0x1d4] ss:$28 sps:$4 sm:$0xff]  }
 0x596   :  { %4606 = vmatpush1.bf16.msra.mxu1 %v6278_v31  ;;  %v6367_v31 = vld [vmem:[#allocation8 + $0x554] ss:$28 sps:$4 sm:$0xff]  }
 0x597   :  { %4649 = vmatpush1.bf16.msra.mxu0 %v6281_v11  ;;  %4607 = vmatprep.subr.bf16.mxu1 %v6286_v0  ;;  %v6362_v11 = vld [vmem:[#allocation8 + $0x1d0] ss:$28 sps:$4 sm:$0xff]  }
 0x598   :  { %4650 = vmatprep.subr.bf16.mxu0 %v6289_v29  ;;  %v6365_v0 = vld [vmem:[#allocation8 + $0x550] ss:$28 sps:$4 sm:$0xff]   ;;  %v6368_v29 = vld [vmem:[#allocation8 + $0x360] ss:$28 sps:$4 sm:$0xff]  }
 0x59a   :  { %4608 = vmatpush1.bf16.msra.mxu1 %v6284_v32  ;;  %v6369_v32 = vld [vmem:[#allocation8 + $0x6e0] ss:$28 sps:$4 sm:$0xff]  }
 0x59b   :  { %4651 = vmatpush1.bf16.msra.mxu0 %v6287_v33  ;;  %4609 = vmatprep.subr.bf16.mxu1 %v6292_v36  ;;  %v6370_v33 = vld [vmem:[#allocation8 + $0x1a0] ss:$28 sps:$4 sm:$0xff]  }
 0x59c   :  { %4652 = vmatprep.subr.bf16.mxu0 %v6295_v37  ;;  %v6371_v36 = vld [vmem:[#allocation8 + $0x520] ss:$28 sps:$4 sm:$0xff]   ;;  %v6372_v37 = vld [vmem:[#allocation8 + $0x328] ss:$28 sps:$4 sm:$0xff]  }
 0x59e   :  { %4610 = vmatpush1.bf16.msra.mxu1 %v6290_v38  ;;  %v6373_v38 = vld [vmem:[#allocation8 + $0x6a8] ss:$28 sps:$4 sm:$0xff]  }
 0x59f   :  { %4653 = vmatpush1.bf16.msra.mxu0 %v6293_v39  ;;  %4611 = vmatprep.subr.bf16.mxu1 %v6298_v40  ;;  %v6374_v39 = vld [vmem:[#allocation8 + $0x168] ss:$28 sps:$4 sm:$0xff]  }
 0x5a0   :  { %4654 = vmatprep.subr.bf16.mxu0 %v6301_v41  ;;  %v6375_v40 = vld [vmem:[#allocation8 + $0x4e8] ss:$28 sps:$4 sm:$0xff]   ;;  %v6376_v41 = vld [vmem:[#allocation8 + $0x2f0] ss:$28 sps:$4 sm:$0xff]  }
 0x5a2   :  { %4612 = vmatpush1.bf16.msra.mxu1 %v6296_v42  ;;  %v6377_v42 = vld [vmem:[#allocation8 + $0x670] ss:$28 sps:$4 sm:$0xff]  }
 0x5a3   :  { %4655 = vmatpush1.bf16.msra.mxu0 %v6299_v43  ;;  %4613 = vmatprep.subr.bf16.mxu1 %v6304_v44  ;;  %v6378_v43 = vld [vmem:[#allocation8 + $0x130] ss:$28 sps:$4 sm:$0xff]  }
 0x5a4   :  { %4656 = vmatprep.subr.bf16.mxu0 %v6307_v45  ;;  %v6379_v44 = vld [vmem:[#allocation8 + $0x4b0] ss:$28 sps:$4 sm:$0xff]   ;;  %v6380_v45 = vld [vmem:[#allocation8 + $0x2b8] ss:$28 sps:$4 sm:$0xff]  }
 0x5a6   :  { %4614 = vmatpush1.bf16.msra.mxu1 %v6302_v46  ;;  %v6381_v46 = vld [vmem:[#allocation8 + $0x638] ss:$28 sps:$4 sm:$0xff]  }
 0x5a7   :  { %4657 = vmatpush1.bf16.msra.mxu0 %v6305_v47  ;;  %4615 = vmatprep.subr.bf16.mxu1 %v6310_v6  ;;  %v6382_v47 = vld [vmem:[#allocation8 + $0xf8] ss:$28 sps:$4 sm:$0xff]   ;;  %v6384_v6 = vld [vmem:[#allocation8 + $0x280] ss:$28 sps:$4 sm:$0xff]  }
 0x5a8   :  { %4658 = vmatprep.subr.bf16.mxu0 %v6313_v48  ;;  %v6385_v48 = vld [vmem:[#allocation8 + $0x600] ss:$28 sps:$4 sm:$0xff]  }
 0x5aa   :  { %4616 = vmatpush1.bf16.msra.mxu1 %v6308_v49  ;;  %v6387_v49 = vld [vmem:[#allocation8 + $0x440] ss:$28 sps:$4 sm:$0xff]  }
 0x5ab   :  { %4659 = vmatpush1.bf16.msra.mxu0 %v6311_v50  ;;  %4617 = vmatprep.subr.bf16.mxu1 %v6316_v35  ;;  %v6388_v50 = vld [vmem:[#allocation8 + $0x248] ss:$28 sps:$4 sm:$0xff]  }
 0x5ac   :  { %4660 = vmatprep.subr.bf16.mxu0 %v6319_v51  ;;  %v6389_v35 = vld [vmem:[#allocation8 + $0x5c8] ss:$28 sps:$4 sm:$0xff]  }
 0x5ad   :  { %v6390_v51 = vld [vmem:[#allocation8 + $0x88] ss:$28 sps:$4 sm:$0xff]  }
 0x5ae   :  { %4618 = vmatpush1.bf16.msra.mxu1 %v6314_v53  ;;  %v6391_v53 = vld [vmem:[#allocation8 + $0x408] ss:$28 sps:$4 sm:$0xff]  }
 0x5af   :  { %4661 = vmatpush1.bf16.msra.mxu0 %v6317_v54  ;;  %4619 = vmatprep.subr.bf16.mxu1 %v6322_v55  ;;  %v6392_v54 = vld [vmem:[#allocation8 + $0x210] ss:$28 sps:$4 sm:$0xff]  }
 0x5b0   :  { %4662 = vmatprep.subr.bf16.mxu0 %v6325_v56  ;;  %v6393_v55 = vld [vmem:[#allocation8 + $0x590] ss:$28 sps:$4 sm:$0xff]  }
 0x5b1   :  { %v6394_v56 = vld [vmem:[#allocation8 + $0x50] ss:$28 sps:$4 sm:$0xff]  }
 0x5b2   :  { %4620 = vmatpush2.bf16.msra.mxu1 %v6320_v34  ;;  %v6395_v34 = vld [vmem:[#allocation8 + $0x3d0] ss:$28 sps:$4 sm:$0xff]  }
 0x5b3   :  { %4663 = vmatpush2.bf16.msra.mxu0 %v6323_v57  ;;  %4621 = vmatprep.subr.bf16.mxu1 %v6328_v58  ;;  %v6396_v57 = vld [vmem:[#allocation8 + $0x1d8] ss:$28 sps:$4 sm:$0xff]  }
 0x5b4   :  { %4664 = vmatprep.subr.bf16.mxu0 %v6331_v59  ;;  %v6397_v58 = vld [vmem:[#allocation8 + $0x558] ss:$28 sps:$4 sm:$0xff]  }
 0x5b5   :  { %v6398_v59 = vld [vmem:[#allocation8 + $0x18] ss:$28 sps:$4 sm:$0xff]  }
 0x5b6   :  { %4622 = vmatpush2.bf16.msra.mxu1 %v6326_v60  ;;  %v6399_v60 = vld [vmem:[#allocation8 + $0x398] ss:$28 sps:$4 sm:$0xff]  }
 0x5b7   :  { %4665 = vmatpush2.bf16.msra.mxu0 %v6329_v61  ;;  %4623 = vmatprep.subr.bf16.mxu1 %v6334_v62  ;;  %v6881_v61 = vld [vmem:[%s6913_s13] sm:$0xff]  ;;  %s6583_s13 = smov [#allocation10]  }
 0x5b8   :  { %4666 = vmatprep.subr.bf16.mxu0 %v6337_v63  ;;  %v3247_v62 = vrot.slane %v6881_v61, %v6736_v27  ;;  %v3251_v63 = vrot.slane %v6881_v61, %v6733_v26  ;;  %s4877_s27 = sshll.u32 %s6583_s13, 4  ;;  %s4878_s27 = int_to_ptr.vmem [resolvable:$true] %s4877_s27 }
 0x5b9   :  { %s6542_s28 = scalar_lea.vmem %s4878_s27, 1792  ;;  %p6547_p7 = scmp.lt.s32.totalorder %s4878_s27, %s4878_s27 }
 0x5ba   :  { %4624 = vmatpush2.bf16.msra.mxu1 %v6332_v1  ;;  %p6543_p6 = scmp.ne.s32.totalorder %s4878_s27, %s6542_s28  ;;  %p6548_p8 = scmp.lt.s32.totalorder %s6542_s28, %s6542_s28 }
 0x5bb   :  { %4667 = vmatpush2.bf16.msra.mxu0 %v6335_v2  ;;  %4625 = vmatprep.subr.bf16.mxu1 %v6340_v3 }
 0x5bc   :  { %4668 = vmatprep.subr.bf16.mxu0 %v6343_v7  ;;  %p6549_p9 = por %p6548_p8, %p6547_p7 }
 0x5be   :  { %4626 = vmatpush2.bf16.msra.mxu1 %v6338_v8  ;;  %p6550_p10 = pnand %p6549_p9, %p6543_p6 }
 0x5bf   :  { %4669 = vmatpush2.bf16.msra.mxu0 %v6341_v9  ;;  %4627 = vmatprep.subr.bf16.mxu1 %v6346_v13 }
 0x5c0   :  { %4670 = vmatprep.subr.bf16.mxu0 %v6349_v14 }
 0x5c2   :  { %4628 = vmatpush2.bf16.msra.mxu1 %v6344_v17 }
 0x5c3   :  { %4671 = vmatpush2.bf16.msra.mxu0 %v6347_v18  ;;  %4629 = vmatprep.subr.bf16.mxu1 %v6352_v19 }
 0x5c4   :  { %4672 = vmatprep.subr.bf16.mxu0 %v6355_v20 }
 0x5c6   :  { %4630 = vmatpush2.bf16.msra.mxu1 %v6350_v21 }
 0x5c7   :  { %4673 = vmatpush2.bf16.msra.mxu0 %v6353_v22  ;;  %4631 = vmatprep.subr.bf16.mxu1 %v6358_v24 }
 0x5c8   :  { %4674 = vmatprep.subr.bf16.mxu0 %v6361_v25 }
 0x5ca   :  { %4632 = vmatpush2.bf16.msra.mxu1 %v6356_v28 }
 0x5cb   :  { %4675 = vmatpush2.bf16.msra.mxu0 %v6359_v52  ;;  %4633 = vmatprep.subr.bf16.mxu1 %v6364_v30 }
 0x5cc   :  { %4676 = vmatprep.subr.bf16.mxu0 %v6367_v31 }
 0x5ce   :  { %4634 = vmatpush2.bf16.msra.mxu1 %v6362_v11 }
 0x5cf   :  { %4677 = vmatpush2.bf16.msra.mxu0 %v6365_v0  ;;  %5505 = vmatprep.subr.bf16.mxu1 %v6368_v29 }
 0x5d0   :  { %5527 = vmatprep.subr.bf16.mxu0 %v6369_v32 }
 0x5d1   :  { %4636 = vmatmul.mubr.bf16.vlgmr.msra.gmra.mxu1 %v6858_v15 }
 0x5d2   :  { %4679 = vmatmul.mubr.bf16.vlgmr.msra.gmra.mxu0 %v6860_v16  ;;  %5506 = vmatpush3.bf16.msra.mxu1 %v6370_v33 }
 0x5d3   :  { %4721 = vmatprep.mubr.bf16.mxu1 %v6854_v10  ;;  %5528 = vmatpush3.bf16.msra.mxu0 %v6371_v36  ;;  %v6383_v10 = vld [vmem:[#allocation8 + $0x478] ss:$28 sps:$4 sm:$0xff]  }
 0x5d4   :  { %4762 = vmatprep.mubr.bf16.mxu0 %v6856_v12  ;;  %5507 = vmatprep.subr.bf16.mxu1 %v6372_v37  ;;  %v6386_v12 = vld [vmem:[#allocation8 + $0xc0] ss:$28 sps:$4 sm:$0xff]  }
 0x5d5   :  { %5529 = vmatprep.subr.bf16.mxu0 %v6373_v38 }
 0x5d6   :  { %5508 = vmatpush3.bf16.msra.mxu1 %v6374_v39  ;;  %v3255_v39 = vrot.slane %v6881_v61, %v6747_v5 }
 0x5d7   :  { %5530 = vmatpush3.bf16.msra.mxu0 %v6375_v40  ;;  %5509 = vmatprep.subr.bf16.mxu1 %v6376_v41  ;;  %v3259_v40 = vrot.slane %v6881_v61, %v6744_v4 }
 0x5d8   :  { %5531 = vmatprep.subr.bf16.mxu0 %v6377_v42 }
 0x5da   :  { %5510 = vmatpush3.bf16.msra.mxu1 %v6378_v43 }
 0x5db   :  { %5532 = vmatpush3.bf16.msra.mxu0 %v6379_v44  ;;  %5511 = vmatprep.subr.bf16.mxu1 %v6380_v45 }
 0x5dc   :  { %5533 = vmatprep.subr.bf16.mxu0 %v6381_v46 }
 0x5de   :  { %5512 = vmatpush3.bf16.msra.mxu1 %v6382_v47 }
 0x5df   :  { %5534 = vmatpush3.bf16.msra.mxu0 %v6383_v10  ;;  %5513 = vmatprep.subr.bf16.mxu1 %v6384_v6 }
 0x5e0   :  { %5535 = vmatprep.subr.bf16.mxu0 %v6385_v48 }
 0x5e2   :  { %5514 = vmatpush3.bf16.msra.mxu1 %v6386_v12 }
 0x5e3   :  { %5536 = vmatpush3.bf16.msra.mxu0 %v6387_v49  ;;  %5515 = vmatprep.subr.bf16.mxu1 %v6388_v50 }
 0x5e4   :  { %5537 = vmatprep.subr.bf16.mxu0 %v6389_v35 }
 0x5e6   :  { %5516 = vmatpush3.bf16.msra.mxu1 %v6390_v51 }
 0x5e7   :  { %5538 = vmatpush3.bf16.msra.mxu0 %v6391_v53  ;;  %5517 = vmatprep.subr.bf16.mxu1 %v6392_v54 }
 0x5e8   :  { %5539 = vmatprep.subr.bf16.mxu0 %v6393_v55 }
 0x5ea   :  { %5518 = vmatpush3.bf16.msra.mxu1 %v6394_v56 }
 0x5eb   :  { %5540 = vmatpush3.bf16.msra.mxu0 %v6395_v34  ;;  %5519 = vmatprep.subr.bf16.mxu1 %v6396_v57 }
 0x5ec   :  { %5541 = vmatprep.subr.bf16.mxu0 %v6397_v58 }
 0x5ee   :  { %5520 = vmatpush3.bf16.msra.mxu1 %v6398_v59 }
 0x5ef   :  { %5542 = vmatpush3.bf16.msra.mxu0 %v6399_v60 }
 0x5f1   :  { %4722 = vmatmul.mubr.bf16.vlgmr.msra.gmra.mxu1 %v6858_v15 }
 0x5f2   :  { %4763 = vmatmul.mubr.bf16.vlgmr.msra.gmra.mxu0 %v6860_v16 }
 0x611   :  { %v4465_v1 = vpop.f32.mrf.mxu1  ;;  %v4508_v2 = vpop.f32.mrf.mxu0 }
 0x612   :  { %v4466_v3 = vadd.f32 %v4465_v1, %v3247_v62 }
 0x613   :  { %v4467_v7 = vpop.f32.mrf.mxu1  ;;  %v4510_v8 = vpop.f32.mrf.mxu0 }
 0x614   :  { %v4509_v9 = vadd.f32 %v4508_v2, %v4466_v3  ;;  %v4468_v15 = vadd.f32 %v4467_v7, %v3251_v63 }
 0x615   :  { %v4469_v13 = vpop.f32.mrf.mxu1  ;;  %v4512_v16 = vpop.f32.mrf.mxu0 }
 0x616   :  { %v5469_v14 = vmul.f32 -1.442695, %v4509_v9  ;;  %v4511_v17 = vadd.f32 %v4510_v8, %v4468_v15  ;;  %v4470_v18 = vadd.f32 %v4469_v13, %v3247_v62  ;;  %v3262_v8 = vsub.s32 4, %v6730_v23 }
 0x617   :  { %v4471_v19 = vpop.f32.mrf.mxu1  ;;  %v4514_v22 = vpop.f32.mrf.mxu0  ;;  %v3266_v9 = vsub.s32 5, %v6730_v23 }
 0x618   :  { %6404 = vpow2.f32 %v5469_v14  ;;  %v5470_v20 = vmul.f32 -1.442695, %v4511_v17  ;;  %v4513_v21 = vadd.f32 %v4512_v16, %v4470_v18  ;;  %v4472_v27 = vadd.f32 %v4471_v19, %v3251_v63 }
 0x619   :  { %v3263_v15 = vrot.slane %v6881_v61, %v3262_v8  ;;  %v3267_v13 = vrot.slane %v6881_v61, %v3266_v9 }
 0x61a   :  { %6406 = vpow2.f32 %v5470_v20  ;;  %v5476_v26 = vmul.f32 -1.442695, %v4513_v21  ;;  %v4515_v24 = vadd.f32 %v4514_v22, %v4472_v27 }
 0x61c   :  { %6408 = vpow2.f32 %v5476_v26  ;;  %v5477_v25 = vmul.f32 -1.442695, %v4515_v24 }
 0x61e   :  { %6410 = vpow2.f32 %v5477_v25 }
 0x625   :  { %v6405_v28 = vpop.eup %6404 }
 0x626   :  { %v4813_v52 = vadd.f32 1.0, %v6405_v28 }
 0x627   :  { %v6407_v30 = vpop.eup %6406 }
 0x628   :  { %6412 = vrcp.f32 %v4813_v52  ;;  %v4814_v31 = vadd.f32 1.0, %v6407_v30 }
 0x629   :  { %v6409_v11 = vpop.eup %6408 }
 0x62a   :  { %6414 = vrcp.f32 %v4814_v31  ;;  %v4820_v0 = vadd.f32 1.0, %v6409_v11 }
 0x62b   :  { %v6411_v29 = vpop.eup %6410 }
 0x62c   :  { %6416 = vrcp.f32 %v4820_v0  ;;  %v4821_v32 = vadd.f32 1.0, %v6411_v29 }
 0x62e   :  { %6418 = vrcp.f32 %v4821_v32 }
 0x635   :  { %v6413_v33 = vpop.eup %6412 }
 0x636   :  { %4855 = vst [vmem:[#allocation10] sm:$0xff] %v6413_v33 }
 0x637   :  { %v6415_v36 = vpop.eup %6414 }
 0x638   :  { %4856 = vst [vmem:[#allocation10 + $0x8] sm:$0xff] %v6415_v36 }
 0x639   :  { %v6417_v37 = vpop.eup %6416 }
 0x63a   :  { %4862 = vst [vmem:[#allocation10 + $0x38] sm:$0xff] %v6417_v37 }
 0x63b   :  { %v6419_v38 = vpop.eup %6418 }
 0x63c   :  { %4863 = vst [vmem:[#allocation10 + $0x40] sm:$0xff] %v6419_v38 }
 0x651   :  { %v4551_v41 = vpop.f32.mrf.mxu1  ;;  %v4594_v42 = vpop.f32.mrf.mxu0 }
 0x652   :  { %v4552_v43 = vadd.f32 %v4551_v41, %v3255_v39 }
 0x653   :  { %v4553_v44 = vpop.f32.mrf.mxu1  ;;  %v4596_v45 = vpop.f32.mrf.mxu0 }
 0x654   :  { %v4595_v46 = vadd.f32 %v4594_v42, %v4552_v43  ;;  %v4554_v47 = vadd.f32 %v4553_v44, %v3259_v40  ;;  %v3270_v43 = vsub.s32 6, %v6730_v23 }
 0x655   :  { %v4555_v10 = vpop.f32.mrf.mxu1  ;;  %v4598_v6 = vpop.f32.mrf.mxu0 }
 0x656   :  { %v5471_v48 = vmul.f32 -1.442695, %v4595_v46  ;;  %v4597_v12 = vadd.f32 %v4596_v45, %v4554_v47  ;;  %v4556_v49 = vadd.f32 %v4555_v10, %v3255_v39  ;;  %v3271_v46 = vrot.slane %v6881_v61, %v3270_v43 }
 0x657   :  { %v4557_v50 = vpop.f32.mrf.mxu1  ;;  %v4600_v53 = vpop.f32.mrf.mxu0 }
 0x658   :  { %6420 = vpow2.f32 %v5471_v48  ;;  %v5472_v35 = vmul.f32 -1.442695, %v4597_v12  ;;  %v4599_v51 = vadd.f32 %v4598_v6, %v4556_v49  ;;  %v4558_v5 = vadd.f32 %v4557_v50, %v3259_v40 }
 0x65a   :  { %6422 = vpow2.f32 %v5472_v35  ;;  %v5478_v4 = vmul.f32 -1.442695, %v4599_v51  ;;  %v4601_v54 = vadd.f32 %v4600_v53, %v4558_v5 }
 0x65c   :  { %6424 = vpow2.f32 %v5478_v4  ;;  %v5479_v55 = vmul.f32 -1.442695, %v4601_v54 }
 0x65e   :  { %6426 = vpow2.f32 %v5479_v55 }
 0x665   :  { %v6421_v56 = vpop.eup %6420 }
 0x666   :  { %v4815_v34 = vadd.f32 1.0, %v6421_v56 }
 0x667   :  { %v6423_v57 = vpop.eup %6422 }
 0x668   :  { %6428 = vrcp.f32 %v4815_v34  ;;  %v4816_v58 = vadd.f32 1.0, %v6423_v57 }
 0x669   :  { %v6425_v59 = vpop.eup %6424 }
 0x66a   :  { %6430 = vrcp.f32 %v4816_v58  ;;  %v4822_v60 = vadd.f32 1.0, %v6425_v59 }
 0x66b   :  { %v6427_v62 = vpop.eup %6426 }
 0x66c   :  { %6432 = vrcp.f32 %v4822_v60  ;;  %v4823_v63 = vadd.f32 1.0, %v6427_v62 }
 0x66e   :  { %6434 = vrcp.f32 %v4823_v63 }
 0x675   :  { %v6429_v1 = vpop.eup %6428 }
 0x676   :  { %4857 = vst [vmem:[#allocation10 + $0x10] sm:$0xff] %v6429_v1 }
 0x677   :  { %v6431_v2 = vpop.eup %6430 }
 0x678   :  { %4858 = vst [vmem:[#allocation10 + $0x18] sm:$0xff] %v6431_v2 }
 0x679   :  { %v6433_v3 = vpop.eup %6432 }
 0x67a   :  { %4864 = vst [vmem:[#allocation10 + $0x48] sm:$0xff] %v6433_v3 }
 0x67b   :  { %v6435_v7 = vpop.eup %6434 }
 0x67c   :  { %4865 = vst [vmem:[#allocation10 + $0x50] sm:$0xff] %v6435_v7 }
 0x691   :  { %v4637_v16 = vpop.f32.mrf.mxu1 }
 0x692   :  { %v4638_v14 = vadd.f32 %v4637_v16, %v3263_v15  ;;  %v4680_v17 = vpop.f32.mrf.mxu0 }
 0x693   :  { %v4639_v18 = vpop.f32.mrf.mxu1 }
 0x694   :  { %v4681_v19 = vadd.f32 %v4680_v17, %v4638_v14  ;;  %v4640_v20 = vadd.f32 %v4639_v18, %v3267_v13  ;;  %v4682_v21 = vpop.f32.mrf.mxu0 }
 0x695   :  { %v4641_v27 = vpop.f32.mrf.mxu1 }
 0x696   :  { %v5473_v22 = vmul.f32 -1.442695, %v4681_v19  ;;  %v4683_v26 = vadd.f32 %v4682_v21, %v4640_v20  ;;  %v4642_v24 = vadd.f32 %v4641_v27, %v3263_v15  ;;  %v4684_v25 = vpop.f32.mrf.mxu0 }
 0x697   :  { %v4643_v28 = vpop.f32.mrf.mxu1 }
 0x698   :  { %6436 = vpow2.f32 %v5473_v22  ;;  %v5474_v52 = vmul.f32 -1.442695, %v4683_v26  ;;  %v4685_v30 = vadd.f32 %v4684_v25, %v4642_v24  ;;  %v4644_v31 = vadd.f32 %v4643_v28, %v3267_v13  ;;  %v4686_v11 = vpop.f32.mrf.mxu0 }
 0x69a   :  { %6438 = vpow2.f32 %v5474_v52  ;;  %v5480_v0 = vmul.f32 -1.442695, %v4685_v30  ;;  %v4687_v29 = vadd.f32 %v4686_v11, %v4644_v31 }
 0x69c   :  { %6440 = vpow2.f32 %v5480_v0  ;;  %v5481_v32 = vmul.f32 -1.442695, %v4687_v29 }
 0x69e   :  { %6442 = vpow2.f32 %v5481_v32 }
 0x6a5   :  { %v6437_v33 = vpop.eup %6436 }
 0x6a6   :  { %v4817_v36 = vadd.f32 1.0, %v6437_v33 }
 0x6a7   :  { %v6439_v37 = vpop.eup %6438 }
 0x6a8   :  { %6444 = vrcp.f32 %v4817_v36  ;;  %v4818_v38 = vadd.f32 1.0, %v6439_v37 }
 0x6a9   :  { %v6441_v39 = vpop.eup %6440 }
 0x6aa   :  { %6446 = vrcp.f32 %v4818_v38  ;;  %v4824_v40 = vadd.f32 1.0, %v6441_v39 }
 0x6ab   :  { %v6443_v41 = vpop.eup %6442 }
 0x6ac   :  { %6448 = vrcp.f32 %v4824_v40  ;;  %v4825_v42 = vadd.f32 1.0, %v6443_v41 }
 0x6ae   :  { %6450 = vrcp.f32 %v4825_v42 }
 0x6b1   :  { %v5521_v44 = vpop.f32.mrf.mxu1 }
 0x6b2   :  { %v5543_v45 = vpop.f32.mrf.mxu0 }
 0x6b3   :  { %v5522_v47 = vpop.f32.mrf.mxu1 }
 0x6b4   :  { %v5523_v10 = vadd.f32 %v5522_v47, %v5521_v44  ;;  %v5544_v6 = vpop.f32.mrf.mxu0 }
 0x6b5   :  { %v6445_v48 = vpop.eup %6444  ;;  %v5524_v12 = vpop.f32.mrf.mxu1  ;;  %v5545_v50 = vadd.f32 %v5544_v6, %v5543_v45 }
 0x6b6   :  { %4859 = vst [vmem:[#allocation10 + $0x20] sm:$0xff] %v6445_v48  ;;  %v4724_v49 = vadd.f32 %v5523_v10, %v3271_v46  ;;  %v5546_v35 = vpop.f32.mrf.mxu0 }
 0x6b7   :  { %v6447_v51 = vpop.eup %6446  ;;  %v5525_v5 = vpop.f32.mrf.mxu1 }
 0x6b8   :  { %4860 = vst [vmem:[#allocation10 + $0x28] sm:$0xff] %v6447_v51  ;;  %v4765_v53 = vadd.f32 %v5545_v50, %v4724_v49  ;;  %v5526_v4 = vadd.f32 %v5525_v5, %v5524_v12  ;;  %v5547_v54 = vpop.f32.mrf.mxu0 }
 0x6b9   :  { %v6449_v23 = vpop.eup %6448  ;;  %v5548_v61 = vadd.f32 %v5547_v54, %v5546_v35 }
 0x6ba   :  { %4866 = vst [vmem:[#allocation10 + $0x58] sm:$0xff] %v6449_v23  ;;  %v5475_v55 = vmul.f32 -1.442695, %v4765_v53  ;;  %v4727_v56 = vadd.f32 %v5526_v4, %v3271_v46 }
 0x6bb   :  { %v6451_v34 = vpop.eup %6450 }
 0x6bc   :  { %4867 = vst [vmem:[#allocation10 + $0x60] sm:$0xff] %v6451_v34  ;;  %6452 = vpow2.f32 %v5475_v55  ;;  %v4768_v57 = vadd.f32 %v5548_v61, %v4727_v56 }
 0x6be   :  { %v5482_v58 = vmul.f32 -1.442695, %v4768_v57 }
 0x6c0   :  { %6454 = vpow2.f32 %v5482_v58 }
 0x6c9   :  { %v6453_v59 = vpop.eup %6452 }
 0x6ca   :  { %v4819_v60 = vadd.f32 1.0, %v6453_v59 }
 0x6cc   :  { %6456 = vrcp.f32 %v4819_v60 }
 0x6cd   :  { %v6455_v62 = vpop.eup %6454 }
 0x6ce   :  { %v4826_v63 = vadd.f32 1.0, %v6455_v62 }
 0x6d0   :  { %6458 = vrcp.f32 %v4826_v63 }
 0x6d9   :  { %v6457_v1 = vpop.eup %6456 }
 0x6da   :  { %4861 = vst [vmem:[#allocation10 + $0x30] sm:$0xff] %v6457_v1 }
 0x6dd   :  { %v6459_v2 = vpop.eup %6458 }
 0x6de   :  { %4868 = vst [vmem:[#allocation10 + $0x68] sm:$0xff] %v6459_v2 }
 0x6df   :  { %6553 = shalt.err (!%p6550_p10)
}
 0x6e0   :  { %s6584_s29 = smov 896   ;;  %s6585_s30 = smov 56  }
 0x6e1   :  { %4883 = dma.vmem_to_hbm [thread:$0]  %s4878_s27, 1792, %s6914_s14, [#allocation4], %s6584_s29, %s6584_s29, %s6585_s30  }
 0x6e2   :  { %6568 = dma.done.wait [#allocation4], 1792  }
 0x6e3   :  { %6569 = vsyncadd [#allocation4], 4294965504 }
 0x6e4   :  { %4891 = vsyncpa [#allocation3], 1 }
 0x6e5   :  { %4892 = vsyncpa [#allocation6], 1 }
 0x6e6   :  { %4893 = vsyncpa [#allocation9], 1 }
 0x6e7   :  { %4894 = vsyncpa [#allocation4], 1 }

</bundles_post_ra>
